<compile_context>
chip_gen: v5e
topology: v5e:2x2
jax: 0.10.0
libtpu: 0.0.40
codegen_flags: <defaults>
</compile_context>

<pallas_src>
import functools

import jax
import jax.numpy as jnp
from jax.experimental import pallas as pl
from jax.experimental.pallas import tpu as pltpu

BN_EPS = 1e-5


# ----------------------------------------------------------------------------
# Fused 3x3 conv (stride 1, pad 1) + folded BN + leaky/ReLU, 1..N outputs that
# share the same input.  One grid step per batch element.
# ----------------------------------------------------------------------------
def _conv3x3_bn_act_kernel(x_ref, *refs, n_out, slopes, H, Wp):
    """x_ref: (1, Hp*Wp, Cin) row-flattened zero-padded image (Hp=H+3, Wp=W+2).

    refs: for each output i -> w (3,3,Cin,Ci), scale (1,Ci), bias (1,Ci);
          followed by n_out output refs, each (1, H*Wp, Ci).

    The conv is 9 contiguous shifted slices of the flattened image, each a
    2-D MXU matmul.  Columns W..Wp-1 of every output row are horizontal
    spill-over and are dropped by the wrapper.
    """
    params = refs[:3 * n_out]
    outs = refs[3 * n_out:]
    L = H * Wp

    accs = [None] * n_out
    for dy in range(3):
        for dx in range(3):
            start = dy * Wp + dx
            tap = x_ref[0, start:start + L, :]                # (L, Cin), 2-D
            for i in range(n_out):
                w = params[3 * i][dy, dx]                     # (Cin, Ci)
                contrib = jnp.dot(tap, w, preferred_element_type=jnp.float32)
                accs[i] = contrib if accs[i] is None else accs[i] + contrib

    for i in range(n_out):
        scale = params[3 * i + 1][...]                        # (1, Ci)
        bias = params[3 * i + 2][...]                         # (1, Ci)
        y = accs[i] * scale + bias                            # folded BatchNorm
        y = jnp.where(y >= 0.0, y, slopes[i] * y)             # leaky-relu / relu
        outs[i][...] = y[None].astype(outs[i].dtype)


def conv3x3_bn_act_stage(x_nhwc, branches):
    """branches: list of (w (3,3,Cin,Ci), scale (Ci,), bias (Ci,), neg_slope)."""
    N, H, W, Cin = x_nhwc.shape
    Hp, Wp = H + 3, W + 2          # +1 top / +2 bottom, +1 left / +1 right
    L = H * Wp
    xp = jnp.pad(x_nhwc, ((0, 0), (1, 2), (1, 1), (0, 0)))
    xf = xp.reshape(N, Hp * Wp, Cin)                          # contiguous, free

    n_out = len(branches)
    slopes = tuple(float(b[3]) for b in branches)
    kernel = functools.partial(_conv3x3_bn_act_kernel,
                               n_out=n_out, slopes=slopes, H=H, Wp=Wp)

    in_specs = [pl.BlockSpec((1, Hp * Wp, Cin), lambda n: (n, 0, 0))]
    args = [xf]
    out_shape, out_specs = [], []
    for (w, s, b, _) in branches:
        Ci = w.shape[-1]
        in_specs += [pl.BlockSpec((3, 3, Cin, Ci), lambda n: (0, 0, 0, 0)),
                     pl.BlockSpec((1, Ci), lambda n: (0, 0)),
                     pl.BlockSpec((1, Ci), lambda n: (0, 0))]
        args += [w, s.reshape(1, Ci), b.reshape(1, Ci)]
        out_shape.append(jax.ShapeDtypeStruct((N, L, Ci), jnp.float32))
        out_specs.append(pl.BlockSpec((1, L, Ci), lambda n: (n, 0, 0)))

    outs = pl.pallas_call(
        kernel,
        out_shape=tuple(out_shape),
        grid=(N,),
        in_specs=in_specs,
        out_specs=tuple(out_specs),
        compiler_params=pltpu.CompilerParams(
            dimension_semantics=("parallel",),
            vmem_limit_bytes=64 * 1024 * 1024),
    )(*args)
    if not isinstance(outs, (tuple, list)):
        outs = (outs,)
    # drop the horizontal spill columns and restore (N, H, W, Ci)
    return tuple(o.reshape(N, H, Wp, o.shape[-1])[:, :, :W, :] for o in outs)


# ----------------------------------------------------------------------------
# SSH forward (NCHW in / NCHW out, like the PyTorch module)
# ----------------------------------------------------------------------------
def _fold_bn(p, name):
    s = p[f'{name}_g'] * jax.lax.rsqrt(p[f'{name}_v'] + BN_EPS)
    return s, p[f'{name}_b'] - p[f'{name}_m'] * s


def ssh_forward_pallas(x_nchw, params, out_channel):
    leaky = 0.1 if out_channel <= 64 else 0.0
    x = jnp.transpose(x_nchw, (0, 2, 3, 1)).astype(jnp.float32)       # NHWC

    s3, b3 = _fold_bn(params, 'bn3')
    s51, b51 = _fold_bn(params, 'bn51')
    s52, b52 = _fold_bn(params, 'bn52')
    s72, b72 = _fold_bn(params, 'bn72')
    s73, b73 = _fold_bn(params, 'bn73')

    # stage 1: both convs read the input once.  The module's final F.relu(cat)
    # distributes over the concat, so it is fused into each branch-final conv.
    conv3, t1 = conv3x3_bn_act_stage(
        x, [(params['w3'], s3, b3, 0.0),            # conv3X3   (+ final relu)
            (params['w51'], s51, b51, leaky)])      # conv5X5_1 (+ leaky)
    # stage 2: both convs read t1 once
    conv5, t2 = conv3x3_bn_act_stage(
        t1, [(params['w52'], s52, b52, 0.0),        # conv5X5_2 (+ final relu)
             (params['w72'], s72, b72, leaky)])     # conv7X7_2 (+ leaky)
    # stage 3
    (conv7,) = conv3x3_bn_act_stage(
        t2, [(params['w73'], s73, b73, 0.0)])       # conv7x7_3 (+ final relu)

    out = jnp.concatenate([conv3, conv5, conv7], axis=-1)
    return jnp.transpose(out, (0, 3, 1, 2))                           # NCHW


# ----------------------------------------------------------------------------
# Pure-JAX reference (mirror of the PyTorch math) for sanity checking
# ----------------------------------------------------------------------------
def _ref_forward(x_nchw, p, out_channel):
    leaky = 0.1 if out_channel <= 64 else 0.0
    x = jnp.transpose(x_nchw, (0, 2, 3, 1)).astype(jnp.float32)

    def conv_bn(inp, w, name, slope=None):
        y = jax.lax.conv_general_dilated(
            inp, w, (1, 1), ((1, 1), (1, 1)),
            dimension_numbers=('NHWC', 'HWIO', 'NHWC'))
        y = (y - p[f'{name}_m']) * jax.lax.rsqrt(p[f'{name}_v'] + BN_EPS) \
            * p[f'{name}_g'] + p[f'{name}_b']
        if slope is not None:
            y = jnp.where(y >= 0.0, y, slope * y)
        return y

    a = conv_bn(x, p['w3'], 'bn3')                       # conv3X3 (no act)
    t1 = conv_bn(x, p['w51'], 'bn51', leaky)             # conv5X5_1 + leaky
    b = conv_bn(t1, p['w52'], 'bn52')                    # conv5X5_2 (no act)
    t2 = conv_bn(t1, p['w72'], 'bn72', leaky)            # conv7X7_2 + leaky
    c = conv_bn(t2, p['w73'], 'bn73')                    # conv7x7_3 (no act)
    out = jnp.maximum(jnp.concatenate([a, b, c], axis=-1), 0.0)
    return jnp.transpose(out, (0, 3, 1, 2))


# ----------------------------------------------------------------------------
# Deterministic parameter init (shapes per SSH.__init__, HWIO conv weights)
# ----------------------------------------------------------------------------
def init_params(key, in_ch, out_ch):
    c2, c4 = out_ch // 2, out_ch // 4
    keys = iter(jax.random.split(key, 32))
    p = {}

    def add_conv_bn(name_w, name_bn, cin, cout):
        p[name_w] = (jax.random.normal(next(keys), (3, 3, cin, cout), jnp.float32)
                     / jnp.sqrt(9.0 * cin))
        p[f'{name_bn}_g'] = 1.0 + 0.1 * jax.random.normal(next(keys), (cout,), jnp.float32)
        p[f'{name_bn}_b'] = 0.1 * jax.random.normal(next(keys), (cout,), jnp.float32)
        p[f'{name_bn}_m'] = 0.1 * jax.random.normal(next(keys), (cout,), jnp.float32)
        p[f'{name_bn}_v'] = 0.5 + jax.random.uniform(next(keys), (cout,), jnp.float32)

    add_conv_bn('w3', 'bn3', in_ch, c2)      # conv3X3
    add_conv_bn('w51', 'bn51', in_ch, c4)    # conv5X5_1
    add_conv_bn('w52', 'bn52', c4, c4)       # conv5X5_2
    add_conv_bn('w72', 'bn72', c4, c4)       # conv7X7_2
    add_conv_bn('w73', 'bn73', c4, c4)       # conv7x7_3
    return p


if __name__ == "__main__":
    in_channel, out_channel = 32, 64         # out_channel <= 64 -> leaky = 0.1
    N, H, W = 2, 16, 16

    key = jax.random.PRNGKey(0)
    kx, kp = jax.random.split(key)
    x = jax.random.normal(kx, (N, in_channel, H, W), jnp.float32)
    params = init_params(kp, in_channel, out_channel)

    out = jax.block_until_ready(ssh_forward_pallas(x, params, out_channel))
    ref = jax.block_until_ready(_ref_forward(x, params, out_channel))

    assert out.shape == (N, out_channel, H, W), out.shape
    assert bool(jnp.all(jnp.isfinite(out)))
    rel_err = float(jnp.max(jnp.abs(out - ref) / (jnp.abs(ref) + 1.0)))
    assert rel_err < 2e-2, f"mismatch vs reference: rel_err={rel_err}"
    print("KERNEL_OK")
</pallas_src>

<mosaic_0001>
module attributes {stable_mosaic.version = 11 : i64} {
  func.func @_conv3x3_bn_act_kernel(%arg0: i32, %arg1: memref<1x342x32xf32, #tpu.memory_space<vmem>>, %arg2: memref<3x3x32x32xf32, #tpu.memory_space<vmem>>, %arg3: memref<1x32xf32, #tpu.memory_space<vmem>>, %arg4: memref<1x32xf32, #tpu.memory_space<vmem>>, %arg5: memref<3x3x32x16xf32, #tpu.memory_space<vmem>>, %arg6: memref<1x16xf32, #tpu.memory_space<vmem>>, %arg7: memref<1x16xf32, #tpu.memory_space<vmem>>, %arg8: memref<1x288x32xf32, #tpu.memory_space<vmem>>, %arg9: memref<1x288x16xf32, #tpu.memory_space<vmem>>) attributes {dimension_semantics = [#tpu.dimension_semantics<parallel>], iteration_bounds = array<i64: 2>, scalar_prefetch = 0 : i64, scratch_operands = 0 : i64, tpu.core_type = #tpu.core_type<tc>, window_params = [{transform_indices = @transform_0, window_bounds = array<i64: 1, 342, 32>}, {pipeline_mode = #tpu.pipeline_mode<synchronous>, transform_indices = @transform_1, window_bounds = array<i64: 3, 3, 32, 32>}, {pipeline_mode = #tpu.pipeline_mode<synchronous>, transform_indices = @transform_2, window_bounds = array<i64: 1, 32>}, {pipeline_mode = #tpu.pipeline_mode<synchronous>, transform_indices = @transform_3, window_bounds = array<i64: 1, 32>}, {pipeline_mode = #tpu.pipeline_mode<synchronous>, transform_indices = @transform_4, window_bounds = array<i64: 3, 3, 32, 16>}, {pipeline_mode = #tpu.pipeline_mode<synchronous>, transform_indices = @transform_5, window_bounds = array<i64: 1, 16>}, {pipeline_mode = #tpu.pipeline_mode<synchronous>, transform_indices = @transform_6, window_bounds = array<i64: 1, 16>}, {transform_indices = @transform_7, window_bounds = array<i64: 1, 288, 32>}, {transform_indices = @transform_8, window_bounds = array<i64: 1, 288, 16>}]} {
    %c0 = arith.constant 0 : index
    %c0_0 = arith.constant 0 : index
    %c0_1 = arith.constant 0 : index
    %0 = vector.load %arg1[%c0, %c0_0, %c0_1] : memref<1x342x32xf32, #tpu.memory_space<vmem>>, vector<1x288x32xf32>
    %1 = vector.shape_cast %0 : vector<1x288x32xf32> to vector<288x32xf32>
    %c0_2 = arith.constant 0 : index
    %c0_3 = arith.constant 0 : index
    %c0_4 = arith.constant 0 : index
    %c0_5 = arith.constant 0 : index
    %2 = vector.load %arg2[%c0_2, %c0_3, %c0_4, %c0_5] : memref<3x3x32x32xf32, #tpu.memory_space<vmem>>, vector<1x1x32x32xf32>
    %3 = vector.shape_cast %2 : vector<1x1x32x32xf32> to vector<32x32xf32>
    %cst = arith.constant dense<0.000000e+00> : vector<288x32xf32>
    %4 = tpu.matmul %1, %3, %cst {dimension_numbers = #tpu.dot_dimension_numbers<[1], [0], [0], [1], [0, 0, 1, 1], [], []>} : vector<288x32xf32>, vector<32x32xf32>, vector<288x32xf32> -> vector<288x32xf32>
    %c0_6 = arith.constant 0 : index
    %c0_7 = arith.constant 0 : index
    %c0_8 = arith.constant 0 : index
    %c0_9 = arith.constant 0 : index
    %5 = vector.load %arg5[%c0_6, %c0_7, %c0_8, %c0_9] : memref<3x3x32x16xf32, #tpu.memory_space<vmem>>, vector<1x1x32x16xf32>
    %6 = vector.shape_cast %5 : vector<1x1x32x16xf32> to vector<32x16xf32>
    %cst_10 = arith.constant dense<0.000000e+00> : vector<288x16xf32>
    %7 = tpu.matmul %1, %6, %cst_10 {dimension_numbers = #tpu.dot_dimension_numbers<[1], [0], [0], [1], [0, 0, 1, 1], [], []>} : vector<288x32xf32>, vector<32x16xf32>, vector<288x16xf32> -> vector<288x16xf32>
    %c0_11 = arith.constant 0 : index
    %c1 = arith.constant 1 : index
    %c0_12 = arith.constant 0 : index
    %8 = vector.load %arg1[%c0_11, %c1, %c0_12] : memref<1x342x32xf32, #tpu.memory_space<vmem>>, vector<1x288x32xf32>
    %9 = vector.shape_cast %8 : vector<1x288x32xf32> to vector<288x32xf32>
    %c0_13 = arith.constant 0 : index
    %c1_14 = arith.constant 1 : index
    %c0_15 = arith.constant 0 : index
    %c0_16 = arith.constant 0 : index
    %10 = vector.load %arg2[%c0_13, %c1_14, %c0_15, %c0_16] : memref<3x3x32x32xf32, #tpu.memory_space<vmem>>, vector<1x1x32x32xf32>
    %11 = vector.shape_cast %10 : vector<1x1x32x32xf32> to vector<32x32xf32>
    %cst_17 = arith.constant dense<0.000000e+00> : vector<288x32xf32>
    %12 = tpu.matmul %9, %11, %cst_17 {dimension_numbers = #tpu.dot_dimension_numbers<[1], [0], [0], [1], [0, 0, 1, 1], [], []>} : vector<288x32xf32>, vector<32x32xf32>, vector<288x32xf32> -> vector<288x32xf32>
    %13 = arith.addf %4, %12 : vector<288x32xf32>
    %c0_18 = arith.constant 0 : index
    %c1_19 = arith.constant 1 : index
    %c0_20 = arith.constant 0 : index
    %c0_21 = arith.constant 0 : index
    %14 = vector.load %arg5[%c0_18, %c1_19, %c0_20, %c0_21] : memref<3x3x32x16xf32, #tpu.memory_space<vmem>>, vector<1x1x32x16xf32>
    %15 = vector.shape_cast %14 : vector<1x1x32x16xf32> to vector<32x16xf32>
    %cst_22 = arith.constant dense<0.000000e+00> : vector<288x16xf32>
    %16 = tpu.matmul %9, %15, %cst_22 {dimension_numbers = #tpu.dot_dimension_numbers<[1], [0], [0], [1], [0, 0, 1, 1], [], []>} : vector<288x32xf32>, vector<32x16xf32>, vector<288x16xf32> -> vector<288x16xf32>
    %17 = arith.addf %7, %16 : vector<288x16xf32>
    %c0_23 = arith.constant 0 : index
    %c2 = arith.constant 2 : index
    %c0_24 = arith.constant 0 : index
    %18 = vector.load %arg1[%c0_23, %c2, %c0_24] : memref<1x342x32xf32, #tpu.memory_space<vmem>>, vector<1x288x32xf32>
    %19 = vector.shape_cast %18 : vector<1x288x32xf32> to vector<288x32xf32>
    %c0_25 = arith.constant 0 : index
    %c2_26 = arith.constant 2 : index
    %c0_27 = arith.constant 0 : index
    %c0_28 = arith.constant 0 : index
    %20 = vector.load %arg2[%c0_25, %c2_26, %c0_27, %c0_28] : memref<3x3x32x32xf32, #tpu.memory_space<vmem>>, vector<1x1x32x32xf32>
    %21 = vector.shape_cast %20 : vector<1x1x32x32xf32> to vector<32x32xf32>
    %cst_29 = arith.constant dense<0.000000e+00> : vector<288x32xf32>
    %22 = tpu.matmul %19, %21, %cst_29 {dimension_numbers = #tpu.dot_dimension_numbers<[1], [0], [0], [1], [0, 0, 1, 1], [], []>} : vector<288x32xf32>, vector<32x32xf32>, vector<288x32xf32> -> vector<288x32xf32>
    %23 = arith.addf %13, %22 : vector<288x32xf32>
    %c0_30 = arith.constant 0 : index
    %c2_31 = arith.constant 2 : index
    %c0_32 = arith.constant 0 : index
    %c0_33 = arith.constant 0 : index
    %24 = vector.load %arg5[%c0_30, %c2_31, %c0_32, %c0_33] : memref<3x3x32x16xf32, #tpu.memory_space<vmem>>, vector<1x1x32x16xf32>
    %25 = vector.shape_cast %24 : vector<1x1x32x16xf32> to vector<32x16xf32>
    %cst_34 = arith.constant dense<0.000000e+00> : vector<288x16xf32>
    %26 = tpu.matmul %19, %25, %cst_34 {dimension_numbers = #tpu.dot_dimension_numbers<[1], [0], [0], [1], [0, 0, 1, 1], [], []>} : vector<288x32xf32>, vector<32x16xf32>, vector<288x16xf32> -> vector<288x16xf32>
    %27 = arith.addf %17, %26 : vector<288x16xf32>
    %c0_35 = arith.constant 0 : index
    %c18 = arith.constant 18 : index
    %c0_36 = arith.constant 0 : index
    %28 = vector.load %arg1[%c0_35, %c18, %c0_36] : memref<1x342x32xf32, #tpu.memory_space<vmem>>, vector<1x288x32xf32>
    %29 = vector.shape_cast %28 : vector<1x288x32xf32> to vector<288x32xf32>
    %c1_37 = arith.constant 1 : index
    %c0_38 = arith.constant 0 : index
    %c0_39 = arith.constant 0 : index
    %c0_40 = arith.constant 0 : index
    %30 = vector.load %arg2[%c1_37, %c0_38, %c0_39, %c0_40] : memref<3x3x32x32xf32, #tpu.memory_space<vmem>>, vector<1x1x32x32xf32>
    %31 = vector.shape_cast %30 : vector<1x1x32x32xf32> to vector<32x32xf32>
    %cst_41 = arith.constant dense<0.000000e+00> : vector<288x32xf32>
    %32 = tpu.matmul %29, %31, %cst_41 {dimension_numbers = #tpu.dot_dimension_numbers<[1], [0], [0], [1], [0, 0, 1, 1], [], []>} : vector<288x32xf32>, vector<32x32xf32>, vector<288x32xf32> -> vector<288x32xf32>
    %33 = arith.addf %23, %32 : vector<288x32xf32>
    %c1_42 = arith.constant 1 : index
    %c0_43 = arith.constant 0 : index
    %c0_44 = arith.constant 0 : index
    %c0_45 = arith.constant 0 : index
    %34 = vector.load %arg5[%c1_42, %c0_43, %c0_44, %c0_45] : memref<3x3x32x16xf32, #tpu.memory_space<vmem>>, vector<1x1x32x16xf32>
    %35 = vector.shape_cast %34 : vector<1x1x32x16xf32> to vector<32x16xf32>
    %cst_46 = arith.constant dense<0.000000e+00> : vector<288x16xf32>
    %36 = tpu.matmul %29, %35, %cst_46 {dimension_numbers = #tpu.dot_dimension_numbers<[1], [0], [0], [1], [0, 0, 1, 1], [], []>} : vector<288x32xf32>, vector<32x16xf32>, vector<288x16xf32> -> vector<288x16xf32>
    %37 = arith.addf %27, %36 : vector<288x16xf32>
    %c0_47 = arith.constant 0 : index
    %c19 = arith.constant 19 : index
    %c0_48 = arith.constant 0 : index
    %38 = vector.load %arg1[%c0_47, %c19, %c0_48] : memref<1x342x32xf32, #tpu.memory_space<vmem>>, vector<1x288x32xf32>
    %39 = vector.shape_cast %38 : vector<1x288x32xf32> to vector<288x32xf32>
    %c1_49 = arith.constant 1 : index
    %c1_50 = arith.constant 1 : index
    %c0_51 = arith.constant 0 : index
    %c0_52 = arith.constant 0 : index
    %40 = vector.load %arg2[%c1_49, %c1_50, %c0_51, %c0_52] : memref<3x3x32x32xf32, #tpu.memory_space<vmem>>, vector<1x1x32x32xf32>
    %41 = vector.shape_cast %40 : vector<1x1x32x32xf32> to vector<32x32xf32>
    %cst_53 = arith.constant dense<0.000000e+00> : vector<288x32xf32>
    %42 = tpu.matmul %39, %41, %cst_53 {dimension_numbers = #tpu.dot_dimension_numbers<[1], [0], [0], [1], [0, 0, 1, 1], [], []>} : vector<288x32xf32>, vector<32x32xf32>, vector<288x32xf32> -> vector<288x32xf32>
    %43 = arith.addf %33, %42 : vector<288x32xf32>
    %c1_54 = arith.constant 1 : index
    %c1_55 = arith.constant 1 : index
    %c0_56 = arith.constant 0 : index
    %c0_57 = arith.constant 0 : index
    %44 = vector.load %arg5[%c1_54, %c1_55, %c0_56, %c0_57] : memref<3x3x32x16xf32, #tpu.memory_space<vmem>>, vector<1x1x32x16xf32>
    %45 = vector.shape_cast %44 : vector<1x1x32x16xf32> to vector<32x16xf32>
    %cst_58 = arith.constant dense<0.000000e+00> : vector<288x16xf32>
    %46 = tpu.matmul %39, %45, %cst_58 {dimension_numbers = #tpu.dot_dimension_numbers<[1], [0], [0], [1], [0, 0, 1, 1], [], []>} : vector<288x32xf32>, vector<32x16xf32>, vector<288x16xf32> -> vector<288x16xf32>
    %47 = arith.addf %37, %46 : vector<288x16xf32>
    %c0_59 = arith.constant 0 : index
    %c20 = arith.constant 20 : index
    %c0_60 = arith.constant 0 : index
    %48 = vector.load %arg1[%c0_59, %c20, %c0_60] : memref<1x342x32xf32, #tpu.memory_space<vmem>>, vector<1x288x32xf32>
    %49 = vector.shape_cast %48 : vector<1x288x32xf32> to vector<288x32xf32>
    %c1_61 = arith.constant 1 : index
    %c2_62 = arith.constant 2 : index
    %c0_63 = arith.constant 0 : index
    %c0_64 = arith.constant 0 : index
    %50 = vector.load %arg2[%c1_61, %c2_62, %c0_63, %c0_64] : memref<3x3x32x32xf32, #tpu.memory_space<vmem>>, vector<1x1x32x32xf32>
    %51 = vector.shape_cast %50 : vector<1x1x32x32xf32> to vector<32x32xf32>
    %cst_65 = arith.constant dense<0.000000e+00> : vector<288x32xf32>
    %52 = tpu.matmul %49, %51, %cst_65 {dimension_numbers = #tpu.dot_dimension_numbers<[1], [0], [0], [1], [0, 0, 1, 1], [], []>} : vector<288x32xf32>, vector<32x32xf32>, vector<288x32xf32> -> vector<288x32xf32>
    %53 = arith.addf %43, %52 : vector<288x32xf32>
    %c1_66 = arith.constant 1 : index
    %c2_67 = arith.constant 2 : index
    %c0_68 = arith.constant 0 : index
    %c0_69 = arith.constant 0 : index
    %54 = vector.load %arg5[%c1_66, %c2_67, %c0_68, %c0_69] : memref<3x3x32x16xf32, #tpu.memory_space<vmem>>, vector<1x1x32x16xf32>
    %55 = vector.shape_cast %54 : vector<1x1x32x16xf32> to vector<32x16xf32>
    %cst_70 = arith.constant dense<0.000000e+00> : vector<288x16xf32>
    %56 = tpu.matmul %49, %55, %cst_70 {dimension_numbers = #tpu.dot_dimension_numbers<[1], [0], [0], [1], [0, 0, 1, 1], [], []>} : vector<288x32xf32>, vector<32x16xf32>, vector<288x16xf32> -> vector<288x16xf32>
    %57 = arith.addf %47, %56 : vector<288x16xf32>
    %c0_71 = arith.constant 0 : index
    %c36 = arith.constant 36 : index
    %c0_72 = arith.constant 0 : index
    %58 = vector.load %arg1[%c0_71, %c36, %c0_72] : memref<1x342x32xf32, #tpu.memory_space<vmem>>, vector<1x288x32xf32>
    %59 = vector.shape_cast %58 : vector<1x288x32xf32> to vector<288x32xf32>
    %c2_73 = arith.constant 2 : index
    %c0_74 = arith.constant 0 : index
    %c0_75 = arith.constant 0 : index
    %c0_76 = arith.constant 0 : index
    %60 = vector.load %arg2[%c2_73, %c0_74, %c0_75, %c0_76] : memref<3x3x32x32xf32, #tpu.memory_space<vmem>>, vector<1x1x32x32xf32>
    %61 = vector.shape_cast %60 : vector<1x1x32x32xf32> to vector<32x32xf32>
    %cst_77 = arith.constant dense<0.000000e+00> : vector<288x32xf32>
    %62 = tpu.matmul %59, %61, %cst_77 {dimension_numbers = #tpu.dot_dimension_numbers<[1], [0], [0], [1], [0, 0, 1, 1], [], []>} : vector<288x32xf32>, vector<32x32xf32>, vector<288x32xf32> -> vector<288x32xf32>
    %63 = arith.addf %53, %62 : vector<288x32xf32>
    %c2_78 = arith.constant 2 : index
    %c0_79 = arith.constant 0 : index
    %c0_80 = arith.constant 0 : index
    %c0_81 = arith.constant 0 : index
    %64 = vector.load %arg5[%c2_78, %c0_79, %c0_80, %c0_81] : memref<3x3x32x16xf32, #tpu.memory_space<vmem>>, vector<1x1x32x16xf32>
    %65 = vector.shape_cast %64 : vector<1x1x32x16xf32> to vector<32x16xf32>
    %cst_82 = arith.constant dense<0.000000e+00> : vector<288x16xf32>
    %66 = tpu.matmul %59, %65, %cst_82 {dimension_numbers = #tpu.dot_dimension_numbers<[1], [0], [0], [1], [0, 0, 1, 1], [], []>} : vector<288x32xf32>, vector<32x16xf32>, vector<288x16xf32> -> vector<288x16xf32>
    %67 = arith.addf %57, %66 : vector<288x16xf32>
    %c0_83 = arith.constant 0 : index
    %c37 = arith.constant 37 : index
    %c0_84 = arith.constant 0 : index
    %68 = vector.load %arg1[%c0_83, %c37, %c0_84] : memref<1x342x32xf32, #tpu.memory_space<vmem>>, vector<1x288x32xf32>
    %69 = vector.shape_cast %68 : vector<1x288x32xf32> to vector<288x32xf32>
    %c2_85 = arith.constant 2 : index
    %c1_86 = arith.constant 1 : index
    %c0_87 = arith.constant 0 : index
    %c0_88 = arith.constant 0 : index
    %70 = vector.load %arg2[%c2_85, %c1_86, %c0_87, %c0_88] : memref<3x3x32x32xf32, #tpu.memory_space<vmem>>, vector<1x1x32x32xf32>
    %71 = vector.shape_cast %70 : vector<1x1x32x32xf32> to vector<32x32xf32>
    %cst_89 = arith.constant dense<0.000000e+00> : vector<288x32xf32>
    %72 = tpu.matmul %69, %71, %cst_89 {dimension_numbers = #tpu.dot_dimension_numbers<[1], [0], [0], [1], [0, 0, 1, 1], [], []>} : vector<288x32xf32>, vector<32x32xf32>, vector<288x32xf32> -> vector<288x32xf32>
    %73 = arith.addf %63, %72 : vector<288x32xf32>
    %c2_90 = arith.constant 2 : index
    %c1_91 = arith.constant 1 : index
    %c0_92 = arith.constant 0 : index
    %c0_93 = arith.constant 0 : index
    %74 = vector.load %arg5[%c2_90, %c1_91, %c0_92, %c0_93] : memref<3x3x32x16xf32, #tpu.memory_space<vmem>>, vector<1x1x32x16xf32>
    %75 = vector.shape_cast %74 : vector<1x1x32x16xf32> to vector<32x16xf32>
    %cst_94 = arith.constant dense<0.000000e+00> : vector<288x16xf32>
    %76 = tpu.matmul %69, %75, %cst_94 {dimension_numbers = #tpu.dot_dimension_numbers<[1], [0], [0], [1], [0, 0, 1, 1], [], []>} : vector<288x32xf32>, vector<32x16xf32>, vector<288x16xf32> -> vector<288x16xf32>
    %77 = arith.addf %67, %76 : vector<288x16xf32>
    %c0_95 = arith.constant 0 : index
    %c38 = arith.constant 38 : index
    %c0_96 = arith.constant 0 : index
    %78 = vector.load %arg1[%c0_95, %c38, %c0_96] : memref<1x342x32xf32, #tpu.memory_space<vmem>>, vector<1x288x32xf32>
    %79 = vector.shape_cast %78 : vector<1x288x32xf32> to vector<288x32xf32>
    %c2_97 = arith.constant 2 : index
    %c2_98 = arith.constant 2 : index
    %c0_99 = arith.constant 0 : index
    %c0_100 = arith.constant 0 : index
    %80 = vector.load %arg2[%c2_97, %c2_98, %c0_99, %c0_100] : memref<3x3x32x32xf32, #tpu.memory_space<vmem>>, vector<1x1x32x32xf32>
    %81 = vector.shape_cast %80 : vector<1x1x32x32xf32> to vector<32x32xf32>
    %cst_101 = arith.constant dense<0.000000e+00> : vector<288x32xf32>
    %82 = tpu.matmul %79, %81, %cst_101 {dimension_numbers = #tpu.dot_dimension_numbers<[1], [0], [0], [1], [0, 0, 1, 1], [], []>} : vector<288x32xf32>, vector<32x32xf32>, vector<288x32xf32> -> vector<288x32xf32>
    %83 = arith.addf %73, %82 : vector<288x32xf32>
    %c2_102 = arith.constant 2 : index
    %c2_103 = arith.constant 2 : index
    %c0_104 = arith.constant 0 : index
    %c0_105 = arith.constant 0 : index
    %84 = vector.load %arg5[%c2_102, %c2_103, %c0_104, %c0_105] : memref<3x3x32x16xf32, #tpu.memory_space<vmem>>, vector<1x1x32x16xf32>
    %85 = vector.shape_cast %84 : vector<1x1x32x16xf32> to vector<32x16xf32>
    %cst_106 = arith.constant dense<0.000000e+00> : vector<288x16xf32>
    %86 = tpu.matmul %79, %85, %cst_106 {dimension_numbers = #tpu.dot_dimension_numbers<[1], [0], [0], [1], [0, 0, 1, 1], [], []>} : vector<288x32xf32>, vector<32x16xf32>, vector<288x16xf32> -> vector<288x16xf32>
    %87 = arith.addf %77, %86 : vector<288x16xf32>
    %c0_107 = arith.constant 0 : index
    %c0_108 = arith.constant 0 : index
    %88 = vector.load %arg3[%c0_107, %c0_108] : memref<1x32xf32, #tpu.memory_space<vmem>>, vector<1x32xf32>
    %c0_109 = arith.constant 0 : index
    %c0_110 = arith.constant 0 : index
    %89 = vector.load %arg4[%c0_109, %c0_110] : memref<1x32xf32, #tpu.memory_space<vmem>>, vector<1x32xf32>
    %90 = vector.broadcast %88 : vector<1x32xf32> to vector<288x32xf32>
    %91 = arith.mulf %83, %90 : vector<288x32xf32>
    %92 = vector.broadcast %89 : vector<1x32xf32> to vector<288x32xf32>
    %93 = arith.addf %91, %92 : vector<288x32xf32>
    %cst_111 = arith.constant 0.000000e+00 : f32
    %94 = vector.broadcast %cst_111 : f32 to vector<288x32xf32>
    %95 = arith.cmpf oge, %93, %94 : vector<288x32xf32>
    %cst_112 = arith.constant 0.000000e+00 : f32
    %96 = vector.broadcast %cst_112 : f32 to vector<288x32xf32>
    %97 = arith.mulf %96, %93 : vector<288x32xf32>
    %98 = arith.select %95, %93, %97 : vector<288x32xi1>, vector<288x32xf32>
    %99 = vector.shape_cast %98 : vector<288x32xf32> to vector<1x288x32xf32>
    %c0_113 = arith.constant 0 : index
    %c0_114 = arith.constant 0 : index
    %c0_115 = arith.constant 0 : index
    %100 = vector.load %arg8[%c0_113, %c0_114, %c0_115] : memref<1x288x32xf32, #tpu.memory_space<vmem>>, vector<1x288x32xf32>
    tpu.vector_store %arg8[%c0_113, %c0_114, %c0_115], %99 {strides = array<i32>} : memref<1x288x32xf32, #tpu.memory_space<vmem>>, vector<1x288x32xf32>,
    %c0_116 = arith.constant 0 : index
    %c0_117 = arith.constant 0 : index
    %101 = vector.load %arg6[%c0_116, %c0_117] : memref<1x16xf32, #tpu.memory_space<vmem>>, vector<1x16xf32>
    %c0_118 = arith.constant 0 : index
    %c0_119 = arith.constant 0 : index
    %102 = vector.load %arg7[%c0_118, %c0_119] : memref<1x16xf32, #tpu.memory_space<vmem>>, vector<1x16xf32>
    %103 = vector.broadcast %101 : vector<1x16xf32> to vector<288x16xf32>
    %104 = arith.mulf %87, %103 : vector<288x16xf32>
    %105 = vector.broadcast %102 : vector<1x16xf32> to vector<288x16xf32>
    %106 = arith.addf %104, %105 : vector<288x16xf32>
    %cst_120 = arith.constant 0.000000e+00 : f32
    %107 = vector.broadcast %cst_120 : f32 to vector<288x16xf32>
    %108 = arith.cmpf oge, %106, %107 : vector<288x16xf32>
    %cst_121 = arith.constant 1.000000e-01 : f32
    %109 = vector.broadcast %cst_121 : f32 to vector<288x16xf32>
    %110 = arith.mulf %109, %106 : vector<288x16xf32>
    %111 = arith.select %108, %106, %110 : vector<288x16xi1>, vector<288x16xf32>
    %112 = vector.shape_cast %111 : vector<288x16xf32> to vector<1x288x16xf32>
    %c0_122 = arith.constant 0 : index
    %c0_123 = arith.constant 0 : index
    %c0_124 = arith.constant 0 : index
    %113 = vector.load %arg9[%c0_122, %c0_123, %c0_124] : memref<1x288x16xf32, #tpu.memory_space<vmem>>, vector<1x288x16xf32>
    tpu.vector_store %arg9[%c0_122, %c0_123, %c0_124], %112 {strides = array<i32>} : memref<1x288x16xf32, #tpu.memory_space<vmem>>, vector<1x288x16xf32>,
    return
  }
  func.func @transform_0(%arg0: i32) -> (i32, i32, i32) {
    %c0_i32 = arith.constant 0 : i32
    %c0_i32_0 = arith.constant 0 : i32
    %c0_i32_1 = arith.constant 0 : i32
    return %arg0, %c0_i32, %c0_i32_0 : i32, i32, i32
  }
  func.func @transform_1(%arg0: i32) -> (i32, i32, i32, i32) {
    %c0_i32 = arith.constant 0 : i32
    %c0_i32_0 = arith.constant 0 : i32
    %c0_i32_1 = arith.constant 0 : i32
    %c0_i32_2 = arith.constant 0 : i32
    %c0_i32_3 = arith.constant 0 : i32
    return %c0_i32, %c0_i32_0, %c0_i32_1, %c0_i32_2 : i32, i32, i32, i32
  }
  func.func @transform_2(%arg0: i32) -> (i32, i32) {
    %c0_i32 = arith.constant 0 : i32
    %c0_i32_0 = arith.constant 0 : i32
    %c0_i32_1 = arith.constant 0 : i32
    return %c0_i32, %c0_i32_0 : i32, i32
  }
  func.func @transform_3(%arg0: i32) -> (i32, i32) {
    %c0_i32 = arith.constant 0 : i32
    %c0_i32_0 = arith.constant 0 : i32
    %c0_i32_1 = arith.constant 0 : i32
    return %c0_i32, %c0_i32_0 : i32, i32
  }
  func.func @transform_4(%arg0: i32) -> (i32, i32, i32, i32) {
    %c0_i32 = arith.constant 0 : i32
    %c0_i32_0 = arith.constant 0 : i32
    %c0_i32_1 = arith.constant 0 : i32
    %c0_i32_2 = arith.constant 0 : i32
    %c0_i32_3 = arith.constant 0 : i32
    return %c0_i32, %c0_i32_0, %c0_i32_1, %c0_i32_2 : i32, i32, i32, i32
  }
  func.func @transform_5(%arg0: i32) -> (i32, i32) {
    %c0_i32 = arith.constant 0 : i32
    %c0_i32_0 = arith.constant 0 : i32
    %c0_i32_1 = arith.constant 0 : i32
    return %c0_i32, %c0_i32_0 : i32, i32
  }
  func.func @transform_6(%arg0: i32) -> (i32, i32) {
    %c0_i32 = arith.constant 0 : i32
    %c0_i32_0 = arith.constant 0 : i32
    %c0_i32_1 = arith.constant 0 : i32
    return %c0_i32, %c0_i32_0 : i32, i32
  }
  func.func @transform_7(%arg0: i32) -> (i32, i32, i32) {
    %c0_i32 = arith.constant 0 : i32
    %c0_i32_0 = arith.constant 0 : i32
    %c0_i32_1 = arith.constant 0 : i32
    return %arg0, %c0_i32, %c0_i32_0 : i32, i32, i32
  }
  func.func @transform_8(%arg0: i32) -> (i32, i32, i32) {
    %c0_i32 = arith.constant 0 : i32
    %c0_i32_0 = arith.constant 0 : i32
    %c0_i32_1 = arith.constant 0 : i32
    return %arg0, %c0_i32, %c0_i32_0 : i32, i32, i32
  }
}

</mosaic_0001>

<bundles_post_ra>
// kernel: tpu_custom_call.1
= control target key start
LH: loop header
LB: loop body
LE: loop exit
PB: predicated region body
PF: predicated region fallthrough
CT: control target
= control target key end

     0   :  { %s5796_s27 = smov 0   ;;  %s8576_s0 = inlined_call_operand.vmem [shape: f32[2,342,32], index: 0, kind: input, shape index: {}]   ;;  %s8577_s1 = inlined_call_operand.vmem [shape: f32[3,3,32,32], index: 1, kind: input, shape index: {}]   ;;  %s8578_s2 = inlined_call_operand.vmem [shape: f32[1,32], index: 2, kind: input, shape index: {}]   ;;  %s8579_s3 = inlined_call_operand.vmem [shape: f32[1,32], index: 3, kind: input, shape index: {}]   ;;  %s8580_s4 = inlined_call_operand.vmem [shape: f32[3,3,32,16], index: 4, kind: input, shape index: {}]   ;;  %s8581_s5 = inlined_call_operand.vmem [shape: f32[1,16], index: 5, kind: input, shape index: {}]   ;;  %s8582_s6 = inlined_call_operand.vmem [shape: f32[1,16], index: 6, kind: input, shape index: {}]   ;;  %s8583_s7 = inlined_call_operand.vmem [shape: f32[2,288,32], index: 7, kind: output, shape index: {0}]   ;;  %s8584_s8 = inlined_call_operand.vmem [shape: f32[2,288,16], index: 8, kind: output, shape index: {1}]  }
   0x1 LB: > { %s4995_s28 = sadd.s32 4294967295, %s5749_s27   ;;  %p4999_p0 = scmp.ge.s32.totalorder %s5749_s27, 1  ;;  %s5749_s27 = sphi %s5796_s27, %s19_s27  }
   0x2   : > { %p265_p1 = scmp.lt.s32.totalorder %s5749_s27, 3 }
   0x4   : > { %p266_p2 = pnand %p4999_p0, %p265_p1 }
   0x6   : > { %269 = sbr.rel (%p266_p2) target bundleno = 1454 (0x5ae), region = 48 }
   0xb   : > { %v5006_v0 = vld [vmem:[%s8577_s1 + $0x38] sm:$0xff]  ;;  %v5005_v2 = vld [vmem:[%s8577_s1 + $0x30] sm:$0xff]  ;;  %p304_p3 = scmp.lt.s32.totalorder %s4995_s28, 1  ;;  %v5004_v4 = vld [vmem:[%s8577_s1 + $0x28] sm:$0xff]  ;;  %vm404_vm0 = vcmask 261120   ;;  %vm4870_vm3 = vcmask 130048  }
   0xc   : > { %v358_v1 = vld [vmem:[%s8577_s1 + $0x18] sm:$0xff]  ;;  %525 = vmatpush.msra.mxu0 %v5006_v0  ;;  %5717 = vmatpush.msra.mxu2 %v5006_v0  ;;  %v357_v3 = vld [vmem:[%s8577_s1 + $0x10] sm:$0xff]  ;;  %v356_v5 = vld [vmem:[%s8577_s1 + $0x8] sm:$0xff] }
   0xd   : > { %5721 = vmatpush.msra.mxu3 %v358_v1  ;;  %s8942_s28 = smov (!%p304_p3, %s4995_s28), 1  ;;  %758 = vmatpush.msra.mxu1 %v358_v1  ;;  %v5003_v6 = vld [vmem:[%s8577_s1 + $0x20] sm:$0xff]  ;;  %v5082_v8 = vld [vmem:[%s8580_s4 + $0x38] sm:$0xff]  ;;  %v5081_v17 = vld [vmem:[%s8580_s4 + $0x30] sm:$0xff] }
   0xe   : > { %526 = vmatpush.msra.mxu0 %v5005_v2  ;;  %5718 = vmatpush.msra.mxu2 %v5005_v2  ;;  %s5725_s21 = smul.u32 344, %s8942_s28  ;;  %v355_v7 = vld [vmem:[%s8577_s1] sm:$0xff]  ;;  %v362_v9 = vld [vmem:[%s8580_s4 + $0x18] sm:$0xff]  ;;  %v361_v18 = vld [vmem:[%s8580_s4 + $0x10] sm:$0xff] }
   0xf   : > { %5722 = vmatpush.msra.mxu3 %v357_v3  ;;  %759 = vmatpush.msra.mxu1 %v357_v3  ;;  %v5158_v13 = vld [vmem:[%s8577_s1 + $0x58] sm:$0xff]  ;;  %v5157_v22 = vld [vmem:[%s8577_s1 + $0x50] sm:$0xff]  ;;  %v5080_v40 = vld [vmem:[%s8580_s4 + $0x28] sm:$0xff]  ;;  %s5726_s10 = smul.u32 288, %s8942_s28 }
  0x10   : > { %527 = vmatpush.msra.mxu0 %v5004_v4  ;;  %5719 = vmatpush.msra.mxu2 %v5004_v4  ;;  %s5834_s26 = scalar_lea.vmem %s8576_s0, %s5725_s21  ;;  %v5198_v15 = vld [vmem:[%s8580_s4 + $0x58] sm:$0xff]  ;;  %v5197_v23 = vld [vmem:[%s8580_s4 + $0x50] sm:$0xff]  ;;  %v360_v41 = vld [vmem:[%s8580_s4 + $0x8] sm:$0xff] }
  0x11   : > { %5723 = vmatpush.msra.mxu3 %v356_v5  ;;  %760 = vmatpush.msra.mxu1 %v356_v5  ;;  %v5843_v10 = vld [vmem:[%s5834_s26 + $0x1] sm:$0xff]  ;;  %v5846_v11 = vld [vmem:[%s5834_s26 + $0x91] sm:$0xff]  ;;  %v5869_v16 = vld [vmem:[%s5834_s26 + $0x9] sm:$0xff]  ;;  %s8084_s12 = scalar_lea.vmem %s8583_s7, %s5726_s10  ;;  %s8090_s15 = scalar_lea.vmem %s8584_s8, %s5726_s10 }
  0x12   : > { %528 = vmatpush.msra.mxu0 %v5003_v6  ;;  %5720 = vmatpush.msra.mxu2 %v5003_v6  ;;  %v5849_v12 = vld [vmem:[%s5834_s26 + $0x90] sm:$0xff]  ;;  %v5861_v14 = vld [vmem:[%s5834_s26] sm:$0xff]  ;;  %v5881_v20 = vld [vmem:[%s5834_s26 + $0x98] sm:$0xff] }
  0x13   : > { %5724 = vmatpush.msra.mxu3 %v355_v7  ;;  %5007 = vmatmul.msk.f32.vlgmr.msra.gmra.mxu0 %vm404_vm0, %v5843_v10  ;;  %v5878_v19 = vld [vmem:[%s5834_s26 + $0x99] sm:$0xff]  ;;  %v5890_v21 = vld [vmem:[%s5834_s26 + $0x8] sm:$0xff]  ;;  %v5901_v24 = vld [vmem:[%s5834_s26 + $0x11] sm:$0xff] }
  0x14   : > { %5025 = vmatmul.msk.f32.vlgmr.msra.gmra.mxu2 %vm404_vm0, %v5846_v11  ;;  %5061 = vmatmul.msk.f32.vlgmr.msra.gmra.mxu3 %vm404_vm0, %v5849_v12  ;;  %v5904_v25 = vld [vmem:[%s5834_s26 + $0xa1] sm:$0xff]  ;;  %v5916_v27 = vld [vmem:[%s5834_s26 + $0x10] sm:$0xff]  ;;  %v5921_v28 = vld [vmem:[%s5834_s26 + $0x19] sm:$0xff] }
  0x15   : > { %888 = vmatpush.msrb.mxu2 %v5082_v8  ;;  %1013 = vmatpush.msrb.mxu3 %v362_v9  ;;  %v5907_v26 = vld [vmem:[%s5834_s26 + $0xa0] sm:$0xff]  ;;  %v5924_v29 = vld [vmem:[%s5834_s26 + $0xa9] sm:$0xff]  ;;  %v5936_v31 = vld [vmem:[%s5834_s26 + $0x18] sm:$0xff] }
  0x16   : > { %761 = vmatpush.msra.mxu1 %v355_v7  ;;  %1287 = vmatpush.msrb.mxu0 %v5158_v13  ;;  %v5927_v30 = vld [vmem:[%s5834_s26 + $0xa8] sm:$0xff]  ;;  %v5944_v33 = vld [vmem:[%s5834_s26 + $0xb1] sm:$0xff]  ;;  %v5956_v35 = vld [vmem:[%s5834_s26 + $0x20] sm:$0xff] }
  0x17   : > { %5043 = vmatmul.msk.f32.vlgmr.msra.gmra.mxu1 %vm404_vm0, %v5861_v14  ;;  %889 = vmatpush.msrb.mxu2 %v5081_v17  ;;  %v5941_v32 = vld [vmem:[%s5834_s26 + $0x21] sm:$0xff]  ;;  %v5947_v34 = vld [vmem:[%s5834_s26 + $0xb0] sm:$0xff]  ;;  %v5964_v37 = vld [vmem:[%s5834_s26 + $0xb9] sm:$0xff] }
  0x18   : > { %1453 = vmatpush.msrb.mxu1 %v5198_v15  ;;  %1014 = vmatpush.msrb.mxu3 %v361_v18  ;;  %v5961_v36 = vld [vmem:[%s5834_s26 + $0x29] sm:$0xff]  ;;  %v5967_v38 = vld [vmem:[%s5834_s26 + $0xb8] sm:$0xff]  ;;  %v5990_v43 = vld [vmem:[%s5834_s26 + $0xc1] sm:$0xff] }
  0x19   : > { %1288 = vmatpush.msrb.mxu0 %v5157_v22  ;;  %v5976_v39 = vld [vmem:[%s5834_s26 + $0x28] sm:$0xff]  ;;  %890 = vmatpush.msrb.mxu2 %v5080_v40  ;;  %v5987_v42 = vld [vmem:[%s5834_s26 + $0x31] sm:$0xff]  ;;  %v5993_v44 = vld [vmem:[%s5834_s26 + $0xc0] sm:$0xff] }
  0x1a   : > { %1454 = vmatpush.msrb.mxu1 %v5197_v23  ;;  %1015 = vmatpush.msrb.mxu3 %v360_v41  ;;  %v6002_v45 = vld [vmem:[%s5834_s26 + $0x30] sm:$0xff]  ;;  %v5156_v46 = vld [vmem:[%s8577_s1 + $0x48] sm:$0xff]  ;;  %v6013_v48 = vld [vmem:[%s5834_s26 + $0x39] sm:$0xff] }
  0x1b   : > { %5008 = vmatmul.msk.f32.gmra.mxu0 %vm404_vm0, %v5869_v16  ;;  %v5196_v47 = vld [vmem:[%s8580_s4 + $0x48] sm:$0xff]  ;;  %v6028_v51 = vld [vmem:[%s5834_s26 + $0x38] sm:$0xff]  ;;  %v6039_v54 = vld [vmem:[%s5834_s26 + $0xd0] sm:$0xff] }
  0x1c   : > { %5026 = vmatmul.msk.f32.gmra.mxu2 %vm404_vm0, %v5878_v19  ;;  %5062 = vmatmul.msk.f32.gmra.mxu3 %vm404_vm0, %v5881_v20  ;;  %v6016_v49 = vld [vmem:[%s5834_s26 + $0xc9] sm:$0xff]  ;;  %v6033_v52 = vld [vmem:[%s5834_s26 + $0x41] sm:$0xff]  ;;  %v6036_v53 = vld [vmem:[%s5834_s26 + $0xd1] sm:$0xff] }
  0x1d   : > { %1289 = vmatpush.msrb.mxu0 %v5156_v46  ;;  %1455 = vmatpush.msrb.mxu1 %v5196_v47  ;;  %v6019_v50 = vld [vmem:[%s5834_s26 + $0xc8] sm:$0xff]  ;;  %v6048_v55 = vld [vmem:[%s5834_s26 + $0x40] sm:$0xff]  ;;  %v6059_v58 = vld [vmem:[%s5834_s26 + $0xd8] sm:$0xff] }
  0x1e   : > { %v6053_v56 = vld [vmem:[%s5834_s26 + $0x49] sm:$0xff]  ;;  %v6056_v57 = vld [vmem:[%s5834_s26 + $0xd9] sm:$0xff]  ;;  %v6079_v62 = vld [vmem:[%s5834_s26 + $0x51] sm:$0xff] }
  0x1f   : > { %5044 = vmatmul.msk.f32.gmra.mxu1 %vm404_vm0, %v5890_v21  ;;  %v6068_v59 = vld [vmem:[%s5834_s26 + $0x48] sm:$0xff]  ;;  %v5079_v60 = vld [vmem:[%s8580_s4 + $0x20] sm:$0xff]  ;;  %v6094_v1 = vld [vmem:[%s5834_s26 + $0x50] sm:$0xff] }
  0x20   : > { %v359_v61 = vld [vmem:[%s8580_s4] sm:$0xff]  ;;  %891 = vmatpush.msrb.mxu2 %v5079_v60  ;;  %v6108_v5 = vld [vmem:[%s5834_s26 + $0xe9] sm:$0xff]  ;;  %v6120_v7 = vld [vmem:[%s5834_s26 + $0x58] sm:$0xff] }
  0x21   : > { %1016 = vmatpush.msrb.mxu3 %v359_v61  ;;  %v6082_v63 = vld [vmem:[%s5834_s26 + $0xe1] sm:$0xff]  ;;  %v6105_v4 = vld [vmem:[%s5834_s26 + $0x59] sm:$0xff]  ;;  %8617 = vst [vmem:[#allocation4_spill] sm:$0xff] %v6108_v5  ;;  %v6128_v9 = vld [vmem:[%s5834_s26 + $0xf1] sm:$0xff] }
  0x22   : > { %8615 = vst [vmem:[#allocation2_spill] sm:$0xff] %v6082_v63  ;;  %v6085_v0 = vld [vmem:[%s5834_s26 + $0xe0] sm:$0xff]  ;;  %v6111_v6 = vld [vmem:[%s5834_s26 + $0xe8] sm:$0xff]  ;;  %v6131_v13 = vld [vmem:[%s5834_s26 + $0xf0] sm:$0xff] }
  0x23   : > { %5009 = vmatmul.msk.f32.gmra.mxu0 %vm404_vm0, %v5901_v24  ;;  %8616 = vst [vmem:[#allocation3_spill] sm:$0xff] %v6085_v0  ;;  %v5155_v2 = vld [vmem:[%s8577_s1 + $0x40] sm:$0xff]  ;;  %v6145_v17 = vld [vmem:[%s5834_s26 + $0x69] sm:$0xff]  ;;  %v6151_v22 = vld [vmem:[%s5834_s26 + $0xf8] sm:$0xff] }
  0x24   : > { %5027 = vmatmul.msk.f32.gmra.mxu2 %vm404_vm0, %v5904_v25  ;;  %5063 = vmatmul.msk.f32.gmra.mxu3 %vm404_vm0, %v5907_v26  ;;  %v5195_v3 = vld [vmem:[%s8580_s4 + $0x40] sm:$0xff]  ;;  %8618 = vst [vmem:[#allocation5_spill] sm:$0xff] %v6111_v6  ;;  %v6160_v23 = vld [vmem:[%s5834_s26 + $0x68] sm:$0xff]  ;;  %v6165_v40 = vld [vmem:[%s5834_s26 + $0x71] sm:$0xff] }
  0x25   : > { %1290 = vmatpush.msrb.mxu0 %v5155_v2  ;;  %1456 = vmatpush.msrb.mxu1 %v5195_v3  ;;  %v6125_v8 = vld [vmem:[%s5834_s26 + $0x61] sm:$0xff]  ;;  %8619 = vst [vmem:[#allocation6_spill] sm:$0xff] %v6128_v9  ;;  %v6148_v18 = vld [vmem:[%s5834_s26 + $0xf9] sm:$0xff]  ;;  %v6180_v47 = vld [vmem:[%s5834_s26 + $0x70] sm:$0xff] }
  0x26   : > { %8620 = vst [vmem:[#allocation7_spill] sm:$0xff] %v6131_v13  ;;  %v6140_v15 = vld [vmem:[%s5834_s26 + $0x60] sm:$0xff]  ;;  %v5238_v60 = vld [vmem:[%s8577_s1 + $0x78] sm:$0xff]  ;;  %v6194_v3 = vld [vmem:[%s5834_s26 + $0x109] sm:$0xff] }
  0x27   : > { %5045 = vmatmul.msk.f32.gmra.mxu1 %vm404_vm0, %v5916_v27  ;;  %8621 = vst [vmem:[#allocation8_spill] sm:$0xff] %v6148_v18  ;;  %v6168_v41 = vld [vmem:[%s5834_s26 + $0x101] sm:$0xff]  ;;  %v5278_v61 = vld [vmem:[%s8580_s4 + $0x78] sm:$0xff]  ;;  %1763 = vmatpush.msra.mxu2 %v5238_v60 }
  0x28   : > { %8622 = vst [vmem:[#allocation9_spill] sm:$0xff] %v6151_v22  ;;  %v6171_v46 = vld [vmem:[%s5834_s26 + $0x100] sm:$0xff]  ;;  %1929 = vmatpush.msra.mxu3 %v5278_v61  ;;  %v6206_v60 = vld [vmem:[%s5834_s26 + $0x78] sm:$0xff] }
  0x29   : > { %8623 = vst [vmem:[#allocation10_spill] sm:$0xff] %v6168_v41  ;;  %v6191_v2 = vld [vmem:[%s5834_s26 + $0x79] sm:$0xff] }
  0x2a   : > { %8624 = vst [vmem:[#allocation11_spill] sm:$0xff] %v6171_v46  ;;  %v5318_v61 = vld [vmem:[%s8577_s1 + $0x98] sm:$0xff] }
  0x2b   : > { %5010 = vmatmul.msk.f32.gmra.mxu0 %vm404_vm0, %v5921_v28  ;;  %8625 = vst [vmem:[#allocation12_spill] sm:$0xff] %v6194_v3 }
  0x2c   : > { %5028 = vmatmul.msk.f32.gmra.mxu2 %vm404_vm0, %v5924_v29  ;;  %5064 = vmatmul.msk.f32.gmra.mxu3 %vm404_vm0, %v5927_v30 }
  0x2d   : > { %2239 = vmatpush.msra.mxu0 %v5318_v61  ;;  %v6236_v61 = vld [vmem:[%s5834_s26 + $0x80] sm:$0xff] }
  0x2f   : > { %5046 = vmatmul.msk.f32.gmra.mxu1 %vm404_vm0, %v5936_v31 }
  0x33   : > { %5011 = vmatmul.msk.f32.gmra.mxu0 %vm404_vm0, %v5941_v32 }
  0x34   : > { %5029 = vmatmul.msk.f32.gmra.mxu2 %vm404_vm0, %v5944_v33  ;;  %5065 = vmatmul.msk.f32.gmra.mxu3 %vm404_vm0, %v5947_v34 }
  0x37   : > { %5047 = vmatmul.msk.f32.gmra.mxu1 %vm404_vm0, %v5956_v35 }
  0x3b   : > { %5012 = vmatmul.msk.f32.gmra.mxu0 %vm404_vm0, %v5961_v36 }
  0x3c   : > { %5030 = vmatmul.msk.f32.gmra.mxu2 %vm404_vm0, %v5964_v37  ;;  %5066 = vmatmul.msk.f32.gmra.mxu3 %vm404_vm0, %v5967_v38 }
  0x3f   : > { %5048 = vmatmul.msk.f32.gmra.mxu1 %vm404_vm0, %v5976_v39 }
  0x43   : > { %5013 = vmatmul.msk.f32.gmra.mxu0 %vm404_vm0, %v5987_v42 }
  0x44   : > { %5031 = vmatmul.msk.f32.gmra.mxu2 %vm404_vm0, %v5990_v43  ;;  %5067 = vmatmul.msk.f32.gmra.mxu3 %vm404_vm0, %v5993_v44 }
  0x47   : > { %5049 = vmatmul.msk.f32.gmra.mxu1 %vm404_vm0, %v6002_v45 }
  0x4b   : > { %5014 = vmatmul.msk.f32.gmra.mxu0 %vm404_vm0, %v6013_v48 }
  0x4c   : > { %5032 = vmatmul.msk.f32.gmra.mxu2 %vm404_vm0, %v6016_v49  ;;  %5068 = vmatmul.msk.f32.gmra.mxu3 %vm404_vm0, %v6019_v50 }
  0x4f   : > { %5050 = vmatmul.msk.f32.gmra.mxu1 %vm404_vm0, %v6028_v51 }
  0x53   : > { %5015 = vmatmul.msk.f32.gmra.mxu0 %vm404_vm0, %v6033_v52 }
  0x54   : > { %5033 = vmatmul.msk.f32.gmra.mxu2 %vm404_vm0, %v6036_v53  ;;  %5069 = vmatmul.msk.f32.gmra.mxu3 %vm404_vm0, %v6039_v54 }
  0x57   : > { %5051 = vmatmul.msk.f32.gmra.mxu1 %vm404_vm0, %v6048_v55 }
  0x5b   : > { %5016 = vmatmul.msk.f32.gmra.mxu0 %vm404_vm0, %v6053_v56 }
  0x5c   : > { %5034 = vmatmul.msk.f32.gmra.mxu2 %vm404_vm0, %v6056_v57  ;;  %5070 = vmatmul.msk.f32.gmra.mxu3 %vm404_vm0, %v6059_v58 }
  0x5f   : > { %5052 = vmatmul.msk.f32.gmra.mxu1 %vm404_vm0, %v6068_v59 }
  0x63   : > { %5017 = vmatmul.msk.f32.gmra.mxu0 %vm404_vm0, %v6079_v62 }
  0x64   : > { %5035 = vmatmul.msk.f32.gmra.mxu2 %vm404_vm0, %v6082_v63  ;;  %5071 = vmatmul.msk.f32.gmra.mxu3 %vm404_vm0, %v6085_v0  ;;  %v6251_v0 = vld [vmem:[%s5834_s26 + $0x118] sm:$0xff]  ;;  %v1126_v63 = vld [vmem:[%s5834_s26 + $0x2] sm:$0xff] }
  0x65   : > { %8634 = vst [vmem:[#allocation21_spill] sm:$0xff] %v6251_v0 }
  0x67   : > { %5053 = vmatmul.msk.f32.gmra.mxu1 %vm404_vm0, %v6094_v1 }
  0x6b   : > { %5018 = vmatmul.msk.f32.gmra.mxu0 %vm404_vm0, %v6105_v4 }
  0x6c   : > { %5036 = vmatmul.msk.f32.gmra.mxu2 %vm404_vm0, %v6108_v5  ;;  %5072 = vmatmul.msk.f32.gmra.mxu3 %vm404_vm0, %v6111_v6  ;;  %v6245_v5 = vld [vmem:[%s5834_s26 + $0x89] sm:$0xff] }
  0x6f   : > { %5054 = vmatmul.msk.f32.gmra.mxu1 %vm404_vm0, %v6120_v7 }
  0x73   : > { %5019 = vmatmul.msk.f32.gmra.mxu0 %vm404_vm0, %v6125_v8 }
  0x74   : > { %5037 = vmatmul.msk.f32.gmra.mxu2 %vm404_vm0, %v6128_v9  ;;  %5073 = vmatmul.msk.f32.gmra.mxu3 %vm404_vm0, %v6131_v13 }
  0x77   : > { %5055 = vmatmul.msk.f32.gmra.mxu1 %vm404_vm0, %v6140_v15 }
  0x7b   : > { %5020 = vmatmul.msk.f32.gmra.mxu0 %vm404_vm0, %v6145_v17 }
  0x7c   : > { %5038 = vmatmul.msk.f32.gmra.mxu2 %vm404_vm0, %v6148_v18  ;;  %5074 = vmatmul.msk.f32.gmra.mxu3 %vm404_vm0, %v6151_v22  ;;  %v6222_v22 = vld [vmem:[%s5834_s26 + $0x111] sm:$0xff] }
  0x7d   : > { %8628 = vst [vmem:[#allocation15_spill] sm:$0xff] %v6222_v22  ;;  %v6225_v18 = vld [vmem:[%s5834_s26 + $0x110] sm:$0xff] }
  0x7e   : > { %8629 = vst [vmem:[#allocation16_spill] sm:$0xff] %v6225_v18 }
  0x7f   : > { %5056 = vmatmul.msk.f32.gmra.mxu1 %vm404_vm0, %v6160_v23 }
  0x83   : > { %5021 = vmatmul.msk.f32.gmra.mxu0 %vm404_vm0, %v6165_v40 }
  0x84   : > { %5039 = vmatmul.msk.f32.gmra.mxu2 %vm404_vm0, %v6168_v41  ;;  %5075 = vmatmul.msk.f32.gmra.mxu3 %vm404_vm0, %v6171_v46  ;;  %v6197_v46 = vld [vmem:[%s5834_s26 + $0x108] sm:$0xff]  ;;  %v5358_v41 = vld [vmem:[%s8580_s4 + $0x98] sm:$0xff] }
  0x85   : > { %8626 = vst [vmem:[#allocation13_spill] sm:$0xff] %v6197_v46  ;;  %2405 = vmatpush.msra.mxu1 %v5358_v41 }
  0x87   : > { %5057 = vmatmul.msk.f32.gmra.mxu1 %vm404_vm0, %v6180_v47 }
  0x8b   : > { %5022 = vmatmul.msk.f32.gmra.mxu0 %vm404_vm0, %v6191_v2 }
  0x8c   : > { %5040 = vmatmul.msk.f32.gmra.mxu2 %vm404_vm0, %v6194_v3  ;;  %5076 = vmatmul.msk.f32.gmra.mxu3 %vm404_vm0, %v6197_v46  ;;  %v6219_v46 = vld [vmem:[%s5834_s26 + $0x81] sm:$0xff] }
  0x8f   : > { %5058 = vmatmul.msk.f32.gmra.mxu1 %vm404_vm0, %v6206_v60 }
  0x90   : > { %v6216_v3 = vpop.f32.mrf.mxu0 }
  0x91   : > { %8627 = vst [vmem:[#allocation14_spill] sm:$0xff] %v6216_v3 }
  0x93   : > { %5023 = vmatmul.msk.f32.gmra.mxu0 %vm404_vm0, %v6219_v46 }
  0x94   : > { %5041 = vmatmul.msk.f32.gmra.mxu2 %vm404_vm0, %v6222_v22  ;;  %5077 = vmatmul.msk.f32.gmra.mxu3 %vm404_vm0, %v6225_v18  ;;  %v6233_v41 = vpop.f32.mrf.mxu1  ;;  %v6248_v22 = vld [vmem:[%s5834_s26 + $0x119] sm:$0xff] }
  0x95   : > { %8630 = vst [vmem:[#allocation17_spill] sm:$0xff] %v6233_v41 }
  0x96   : > { %8633 = vst [vmem:[#allocation20_spill] sm:$0xff] %v6248_v22 }
  0x97   : > { %v584_v3 = vpop.f32.mrf.mxu2  ;;  %v817_v13 = vpop.f32.mrf.mxu3  ;;  %5059 = vmatmul.msk.f32.gmra.mxu1 %vm404_vm0, %v6236_v61 }
  0x98   : > { %v6240_v9 = vadd.f32 %v817_v13, %v584_v3  ;;  %v6242_v6 = vpop.f32.mrf.mxu0  ;;  %v6262_v13 = vld [vmem:[%s5834_s26 + $0x88] sm:$0xff] }
  0x99   : > { %8632 = vst [vmem:[#allocation19_spill] sm:$0xff] %v6242_v6 }
  0x9a   : > { %8631 = vst [vmem:[#allocation18_spill] sm:$0xff] %v6240_v9 }
  0x9b   : > { %5024 = vmatmul.msk.f32.gmra.mxu0 %vm404_vm0, %v6245_v5 }
  0x9c   : > { %5042 = vmatmul.msk.f32.gmra.mxu2 %vm404_vm0, %v6248_v22  ;;  %5078 = vmatmul.msk.f32.gmra.mxu3 %vm404_vm0, %v6251_v0  ;;  %v6259_v41 = vpop.f32.mrf.mxu1 }
  0x9d   : > { %8635 = vst [vmem:[#allocation22_spill] sm:$0xff] %v6259_v41 }
  0x9f   : > { %v587_v3 = vpop.f32.mrf.mxu2  ;;  %v820_v9 = vpop.f32.mrf.mxu3  ;;  %5060 = vmatmul.msk.f32.gmra.mxu1 %vm404_vm0, %v6262_v13 }
  0xa0   : > { %v6266_v6 = vadd.f32 %v820_v9, %v587_v3  ;;  %v6268_v18 = vpop.f32.mrf.mxu0 }
  0xa2   : > { %8636 = vst [vmem:[#allocation23_spill] sm:$0xff] %v6266_v6  ;;  %v1127_v6 = vld [vmem:[%s5834_s26 + $0xa] sm:$0xff] }
  0xa3   : > { %5159 = vmatmul.msk.f32.vlgmr.msrb.gmra.mxu0 %vm404_vm0, %v1126_v63 }
  0xa4   : > { %5083 = vmatmul.msk.f32.vlgmr.msrb.gmra.mxu2 %vm404_vm0, %v5843_v10  ;;  %5119 = vmatmul.msk.f32.vlgmr.msrb.gmra.mxu3 %vm404_vm0, %v5861_v14  ;;  %v6276_v41 = vpop.f32.mrf.mxu1 }
  0xa5   : > { %8637 = vst [vmem:[#allocation24_spill] sm:$0xff] %v6276_v41 }
  0xa7   : > { %v590_v0 = vpop.f32.mrf.mxu2  ;;  %v823_v22 = vpop.f32.mrf.mxu3  ;;  %5199 = vmatmul.msk.f32.vlgmr.msrb.gmra.mxu1 %vm404_vm0, %v1126_v63 }
  0xa8   : > { %v6279_v9 = vadd.f32 %v823_v22, %v590_v0  ;;  %v6281_v3 = vpop.f32.mrf.mxu0  ;;  %v6297_v22 = vld [vmem:[%s5834_s26 + $0x12] sm:$0xff] }
  0xaa   : > { %8638 = vst [vmem:[#allocation25_spill] sm:$0xff] %v6279_v9 }
  0xab   : > { %5160 = vmatmul.msk.f32.gmra.mxu0 %vm404_vm0, %v1127_v6 }
  0xac   : > { %5084 = vmatmul.msk.f32.gmra.mxu2 %vm404_vm0, %v5869_v16  ;;  %5120 = vmatmul.msk.f32.gmra.mxu3 %vm404_vm0, %v5890_v21  ;;  %v6289_v10 = vpop.f32.mrf.mxu1 }
  0xaf   : > { %v593_v14 = vpop.f32.mrf.mxu2  ;;  %v826_v41 = vpop.f32.mrf.mxu3  ;;  %5200 = vmatmul.msk.f32.gmra.mxu1 %vm404_vm0, %v1127_v6 }
  0xb0   : > { %v6292_v63 = vadd.f32 %v826_v41, %v593_v14  ;;  %v6294_v0 = vpop.f32.mrf.mxu0 }
  0xb2   : > { %8639 = vst [vmem:[#allocation26_spill] sm:$0xff] %v6292_v63  ;;  %v6314_v63 = vld [vmem:[%s5834_s26 + $0x1a] sm:$0xff] }
  0xb3   : > { %5161 = vmatmul.msk.f32.gmra.mxu0 %vm404_vm0, %v6297_v22 }
  0xb4   : > { %5085 = vmatmul.msk.f32.gmra.mxu2 %vm404_vm0, %v5901_v24  ;;  %5121 = vmatmul.msk.f32.gmra.mxu3 %vm404_vm0, %v5916_v27  ;;  %v6305_v16 = vpop.f32.mrf.mxu1 }
  0xb7   : > { %v596_v21 = vpop.f32.mrf.mxu2  ;;  %v829_v6 = vpop.f32.mrf.mxu3  ;;  %5201 = vmatmul.msk.f32.gmra.mxu1 %vm404_vm0, %v6297_v22 }
  0xb8   : > { %v6309_v41 = vadd.f32 %v829_v6, %v596_v21  ;;  %v6311_v14 = vpop.f32.mrf.mxu0 }
  0xba   : > { %8640 = vst [vmem:[#allocation27_spill] sm:$0xff] %v6309_v41  ;;  %v6331_v41 = vld [vmem:[%s5834_s26 + $0x22] sm:$0xff] }
  0xbb   : > { %5162 = vmatmul.msk.f32.gmra.mxu0 %vm404_vm0, %v6314_v63 }
  0xbc   : > { %5086 = vmatmul.msk.f32.gmra.mxu2 %vm404_vm0, %v5921_v28  ;;  %5122 = vmatmul.msk.f32.gmra.mxu3 %vm404_vm0, %v5936_v31  ;;  %v6322_v24 = vpop.f32.mrf.mxu1 }
  0xbd   : > { %8641 = vst [vmem:[#allocation28_spill] sm:$0xff] %v6322_v24 }
  0xbf   : > { %v599_v27 = vpop.f32.mrf.mxu2  ;;  %v832_v9 = vpop.f32.mrf.mxu3  ;;  %5202 = vmatmul.msk.f32.gmra.mxu1 %vm404_vm0, %v6314_v63 }
  0xc0   : > { %v6326_v21 = vadd.f32 %v832_v9, %v599_v27  ;;  %v6328_v6 = vpop.f32.mrf.mxu0 }
  0xc2   : > { %8642 = vst [vmem:[#allocation29_spill] sm:$0xff] %v6326_v21  ;;  %v6348_v21 = vld [vmem:[%s5834_s26 + $0x2a] sm:$0xff] }
  0xc3   : > { %5163 = vmatmul.msk.f32.gmra.mxu0 %vm404_vm0, %v6331_v41 }
  0xc4   : > { %5087 = vmatmul.msk.f32.gmra.mxu2 %vm404_vm0, %v5941_v32  ;;  %5123 = vmatmul.msk.f32.gmra.mxu3 %vm404_vm0, %v5956_v35  ;;  %v6339_v28 = vpop.f32.mrf.mxu1  ;;  %v5237_v35 = vld [vmem:[%s8577_s1 + $0x70] sm:$0xff] }
  0xc5   : > { %1764 = vmatpush.msra.mxu2 %v5237_v35 }
  0xc7   : > { %v602_v31 = vpop.f32.mrf.mxu2  ;;  %v835_v24 = vpop.f32.mrf.mxu3  ;;  %5203 = vmatmul.msk.f32.gmra.mxu1 %vm404_vm0, %v6331_v41 }
  0xc8   : > { %v6343_v9 = vadd.f32 %v835_v24, %v602_v31  ;;  %v6345_v27 = vpop.f32.mrf.mxu0  ;;  %v5277_v24 = vld [vmem:[%s8580_s4 + $0x70] sm:$0xff] }
  0xc9   : > { %1930 = vmatpush.msra.mxu3 %v5277_v24  ;;  %v5357_v24 = vld [vmem:[%s8580_s4 + $0x90] sm:$0xff] }
  0xca   : > { %8643 = vst [vmem:[#allocation30_spill] sm:$0xff] %v6343_v9  ;;  %2406 = vmatpush.msra.mxu1 %v5357_v24 }
  0xcb   : > { %5164 = vmatmul.msk.f32.gmra.mxu0 %vm404_vm0, %v6348_v21 }
  0xcc   : > { %5088 = vmatmul.msk.f32.gmra.mxu2 %vm404_vm0, %v5961_v36  ;;  %5124 = vmatmul.msk.f32.gmra.mxu3 %vm404_vm0, %v5976_v39  ;;  %v6356_v32 = vpop.f32.mrf.mxu1 }
  0xcd   : > { %8644 = vst [vmem:[#allocation31_spill] sm:$0xff] %v6356_v32  ;;  %v6371_v32 = vld [vmem:[%s5834_s26 + $0x32] sm:$0xff] }
  0xcf   : > { %v605_v31 = vpop.f32.mrf.mxu2  ;;  %v838_v9 = vpop.f32.mrf.mxu3  ;;  %5204 = vmatmul.msk.f32.gmra.mxu1 %vm404_vm0, %v6348_v21 }
  0xd0   : > { %v6366_v36 = vadd.f32 %v838_v9, %v605_v31  ;;  %v6368_v39 = vpop.f32.mrf.mxu0  ;;  %v5317_v9 = vld [vmem:[%s8577_s1 + $0x90] sm:$0xff] }
  0xd1   : > { %8646 = vst [vmem:[#allocation33_spill] sm:$0xff] %v6368_v39  ;;  %2240 = vmatpush.msra.mxu0 %v5317_v9 }
  0xd2   : > { %8645 = vst [vmem:[#allocation32_spill] sm:$0xff] %v6366_v36 }
  0xd3   : > { %5165 = vmatmul.msk.f32.gmra.mxu0 %vm404_vm0, %v6371_v32 }
  0xd4   : > { %5089 = vmatmul.msk.f32.gmra.mxu2 %vm404_vm0, %v5987_v42  ;;  %5125 = vmatmul.msk.f32.gmra.mxu3 %vm404_vm0, %v6002_v45  ;;  %v6379_v35 = vpop.f32.mrf.mxu1 }
  0xd5   : > { %8647 = vst [vmem:[#allocation34_spill] sm:$0xff] %v6379_v35  ;;  %v6394_v35 = vld [vmem:[%s5834_s26 + $0x3a] sm:$0xff] }
  0xd7   : > { %v608_v31 = vpop.f32.mrf.mxu2  ;;  %v841_v36 = vpop.f32.mrf.mxu3  ;;  %5205 = vmatmul.msk.f32.gmra.mxu1 %vm404_vm0, %v6371_v32 }
  0xd8   : > { %v6389_v42 = vadd.f32 %v841_v36, %v608_v31  ;;  %v6391_v45 = vpop.f32.mrf.mxu0 }
  0xd9   : > { %8649 = vst [vmem:[#allocation36_spill] sm:$0xff] %v6391_v45 }
  0xda   : > { %8648 = vst [vmem:[#allocation35_spill] sm:$0xff] %v6389_v42  ;;  %v6411_v42 = vld [vmem:[%s5834_s26 + $0x42] sm:$0xff] }
  0xdb   : > { %5166 = vmatmul.msk.f32.gmra.mxu0 %vm404_vm0, %v6394_v35 }
  0xdc   : > { %5090 = vmatmul.msk.f32.gmra.mxu2 %vm404_vm0, %v6013_v48  ;;  %5126 = vmatmul.msk.f32.gmra.mxu3 %vm404_vm0, %v6028_v51  ;;  %v6402_v9 = vpop.f32.mrf.mxu1 }
  0xdd   : > { %8650 = vst [vmem:[#allocation37_spill] sm:$0xff] %v6402_v9 }
  0xdf   : > { %v611_v24 = vpop.f32.mrf.mxu2  ;;  %v844_v39 = vpop.f32.mrf.mxu3  ;;  %5206 = vmatmul.msk.f32.gmra.mxu1 %vm404_vm0, %v6394_v35 }
  0xe0   : > { %v6406_v36 = vadd.f32 %v844_v39, %v611_v24  ;;  %v6408_v31 = vpop.f32.mrf.mxu0 }
  0xe1   : > { %8652 = vst [vmem:[#allocation39_spill] sm:$0xff] %v6408_v31 }
  0xe2   : > { %8651 = vst [vmem:[#allocation38_spill] sm:$0xff] %v6406_v36  ;;  %v6428_v36 = vld [vmem:[%s5834_s26 + $0x4a] sm:$0xff] }
  0xe3   : > { %5167 = vmatmul.msk.f32.gmra.mxu0 %vm404_vm0, %v6411_v42 }
  0xe4   : > { %5091 = vmatmul.msk.f32.gmra.mxu2 %vm404_vm0, %v6033_v52  ;;  %5127 = vmatmul.msk.f32.gmra.mxu3 %vm404_vm0, %v6048_v55  ;;  %v6419_v48 = vpop.f32.mrf.mxu1 }
  0xe5   : > { %8653 = vst [vmem:[#allocation40_spill] sm:$0xff] %v6419_v48 }
  0xe7   : > { %v614_v51 = vpop.f32.mrf.mxu2  ;;  %v847_v9 = vpop.f32.mrf.mxu3  ;;  %5207 = vmatmul.msk.f32.gmra.mxu1 %vm404_vm0, %v6411_v42 }
  0xe8   : > { %v6423_v39 = vadd.f32 %v847_v9, %v614_v51  ;;  %v6425_v24 = vpop.f32.mrf.mxu0 }
  0xe9   : > { %8655 = vst [vmem:[#allocation42_spill] sm:$0xff] %v6425_v24 }
  0xea   : > { %8654 = vst [vmem:[#allocation41_spill] sm:$0xff] %v6423_v39  ;;  %v6445_v39 = vld [vmem:[%s5834_s26 + $0x52] sm:$0xff] }
  0xeb   : > { %5168 = vmatmul.msk.f32.gmra.mxu0 %vm404_vm0, %v6428_v36 }
  0xec   : > { %5092 = vmatmul.msk.f32.gmra.mxu2 %vm404_vm0, %v6053_v56  ;;  %5128 = vmatmul.msk.f32.gmra.mxu3 %vm404_vm0, %v6068_v59  ;;  %v6436_v52 = vpop.f32.mrf.mxu1 }
  0xed   : > { %8656 = vst [vmem:[#allocation43_spill] sm:$0xff] %v6436_v52 }
  0xef   : > { %v617_v55 = vpop.f32.mrf.mxu2  ;;  %v850_v48 = vpop.f32.mrf.mxu3  ;;  %5208 = vmatmul.msk.f32.gmra.mxu1 %vm404_vm0, %v6428_v36 }
  0xf0   : > { %v6440_v9 = vadd.f32 %v850_v48, %v617_v55  ;;  %v6442_v51 = vpop.f32.mrf.mxu0 }
  0xf1   : > { %8658 = vst [vmem:[#allocation45_spill] sm:$0xff] %v6442_v51 }
  0xf2   : > { %8657 = vst [vmem:[#allocation44_spill] sm:$0xff] %v6440_v9  ;;  %v6462_v9 = vld [vmem:[%s5834_s26 + $0x5a] sm:$0xff] }
  0xf3   : > { %5169 = vmatmul.msk.f32.gmra.mxu0 %vm404_vm0, %v6445_v39 }
  0xf4   : > { %5093 = vmatmul.msk.f32.gmra.mxu2 %vm404_vm0, %v6079_v62  ;;  %5129 = vmatmul.msk.f32.gmra.mxu3 %vm404_vm0, %v6094_v1  ;;  %v6453_v56 = vpop.f32.mrf.mxu1 }
  0xf5   : > { %8659 = vst [vmem:[#allocation46_spill] sm:$0xff] %v6453_v56 }
  0xf7   : > { %v620_v59 = vpop.f32.mrf.mxu2  ;;  %v853_v52 = vpop.f32.mrf.mxu3  ;;  %5209 = vmatmul.msk.f32.gmra.mxu1 %vm404_vm0, %v6445_v39 }
  0xf8   : > { %v6457_v48 = vadd.f32 %v853_v52, %v620_v59  ;;  %v6459_v55 = vpop.f32.mrf.mxu0 }
  0xf9   : > { %8661 = vst [vmem:[#allocation48_spill] sm:$0xff] %v6459_v55 }
  0xfa   : > { %8660 = vst [vmem:[#allocation47_spill] sm:$0xff] %v6457_v48  ;;  %v6479_v48 = vld [vmem:[%s5834_s26 + $0x62] sm:$0xff] }
  0xfb   : > { %5170 = vmatmul.msk.f32.gmra.mxu0 %vm404_vm0, %v6462_v9 }
  0xfc   : > { %5094 = vmatmul.msk.f32.gmra.mxu2 %vm404_vm0, %v6105_v4  ;;  %5130 = vmatmul.msk.f32.gmra.mxu3 %vm404_vm0, %v6120_v7  ;;  %v6470_v62 = vpop.f32.mrf.mxu1 }
  0xfd   : > { %8662 = vst [vmem:[#allocation49_spill] sm:$0xff] %v6470_v62 }
  0xff   : > { %v623_v1 = vpop.f32.mrf.mxu2  ;;  %v856_v56 = vpop.f32.mrf.mxu3  ;;  %5210 = vmatmul.msk.f32.gmra.mxu1 %vm404_vm0, %v6462_v9 }
 0x100   : > { %v6474_v52 = vadd.f32 %v856_v56, %v623_v1  ;;  %v6476_v59 = vpop.f32.mrf.mxu0 }
 0x101   : > { %8664 = vst [vmem:[#allocation51_spill] sm:$0xff] %v6476_v59 }
 0x102   : > { %8663 = vst [vmem:[#allocation50_spill] sm:$0xff] %v6474_v52  ;;  %v6496_v52 = vld [vmem:[%s5834_s26 + $0x6a] sm:$0xff] }
 0x103   : > { %5171 = vmatmul.msk.f32.gmra.mxu0 %vm404_vm0, %v6479_v48 }
 0x104   : > { %5095 = vmatmul.msk.f32.gmra.mxu2 %vm404_vm0, %v6125_v8  ;;  %5131 = vmatmul.msk.f32.gmra.mxu3 %vm404_vm0, %v6140_v15  ;;  %v6487_v4 = vpop.f32.mrf.mxu1 }
 0x105   : > { %8665 = vst [vmem:[#allocation52_spill] sm:$0xff] %v6487_v4 }
 0x107   : > { %v626_v7 = vpop.f32.mrf.mxu2  ;;  %v859_v62 = vpop.f32.mrf.mxu3  ;;  %5211 = vmatmul.msk.f32.gmra.mxu1 %vm404_vm0, %v6479_v48 }
 0x108   : > { %v6491_v56 = vadd.f32 %v859_v62, %v626_v7  ;;  %v6493_v1 = vpop.f32.mrf.mxu0 }
 0x109   : > { %8667 = vst [vmem:[#allocation54_spill] sm:$0xff] %v6493_v1 }
 0x10a   : > { %8666 = vst [vmem:[#allocation53_spill] sm:$0xff] %v6491_v56  ;;  %v6513_v56 = vld [vmem:[%s5834_s26 + $0x72] sm:$0xff] }
 0x10b   : > { %5172 = vmatmul.msk.f32.gmra.mxu0 %vm404_vm0, %v6496_v52 }
 0x10c   : > { %5096 = vmatmul.msk.f32.gmra.mxu2 %vm404_vm0, %v6145_v17  ;;  %5132 = vmatmul.msk.f32.gmra.mxu3 %vm404_vm0, %v6160_v23  ;;  %v6504_v8 = vpop.f32.mrf.mxu1  ;;  %v5236_v23 = vld [vmem:[%s8577_s1 + $0x68] sm:$0xff] }
 0x10d   : > { %8668 = vst [vmem:[#allocation55_spill] sm:$0xff] %v6504_v8  ;;  %1765 = vmatpush.msra.mxu2 %v5236_v23 }
 0x10f   : > { %v629_v15 = vpop.f32.mrf.mxu2  ;;  %v862_v4 = vpop.f32.mrf.mxu3  ;;  %5212 = vmatmul.msk.f32.gmra.mxu1 %vm404_vm0, %v6496_v52 }
 0x110   : > { %v6508_v62 = vadd.f32 %v862_v4, %v629_v15  ;;  %v6510_v7 = vpop.f32.mrf.mxu0  ;;  %v5276_v4 = vld [vmem:[%s8580_s4 + $0x68] sm:$0xff] }
 0x111   : > { %8670 = vst [vmem:[#allocation57_spill] sm:$0xff] %v6510_v7  ;;  %1931 = vmatpush.msra.mxu3 %v5276_v4  ;;  %v5356_v4 = vld [vmem:[%s8580_s4 + $0x88] sm:$0xff] }
 0x112   : > { %8669 = vst [vmem:[#allocation56_spill] sm:$0xff] %v6508_v62  ;;  %2407 = vmatpush.msra.mxu1 %v5356_v4 }
 0x113   : > { %5173 = vmatmul.msk.f32.gmra.mxu0 %vm404_vm0, %v6513_v56 }
 0x114   : > { %5097 = vmatmul.msk.f32.gmra.mxu2 %vm404_vm0, %v6165_v40  ;;  %5133 = vmatmul.msk.f32.gmra.mxu3 %vm404_vm0, %v6180_v47  ;;  %v6521_v17 = vpop.f32.mrf.mxu1 }
 0x115   : > { %8671 = vst [vmem:[#allocation58_spill] sm:$0xff] %v6521_v17  ;;  %v6536_v17 = vld [vmem:[%s5834_s26 + $0x7a] sm:$0xff] }
 0x117   : > { %v632_v15 = vpop.f32.mrf.mxu2  ;;  %v865_v62 = vpop.f32.mrf.mxu3  ;;  %5213 = vmatmul.msk.f32.gmra.mxu1 %vm404_vm0, %v6513_v56 }
 0x118   : > { %v6531_v40 = vadd.f32 %v865_v62, %v632_v15  ;;  %v6533_v47 = vpop.f32.mrf.mxu0  ;;  %v5316_v62 = vld [vmem:[%s8577_s1 + $0x88] sm:$0xff] }
 0x119   : > { %8673 = vst [vmem:[#allocation60_spill] sm:$0xff] %v6533_v47  ;;  %2241 = vmatpush.msra.mxu0 %v5316_v62 }
 0x11a   : > { %8672 = vst [vmem:[#allocation59_spill] sm:$0xff] %v6531_v40 }
 0x11b   : > { %5174 = vmatmul.msk.f32.gmra.mxu0 %vm404_vm0, %v6536_v17 }
 0x11c   : > { %5098 = vmatmul.msk.f32.gmra.mxu2 %vm404_vm0, %v6191_v2  ;;  %5134 = vmatmul.msk.f32.gmra.mxu3 %vm404_vm0, %v6206_v60  ;;  %v6544_v23 = vpop.f32.mrf.mxu1 }
 0x11d   : > { %8674 = vst [vmem:[#allocation61_spill] sm:$0xff] %v6544_v23  ;;  %v6559_v23 = vld [vmem:[%s5834_s26 + $0x82] sm:$0xff] }
 0x11f   : > { %v635_v15 = vpop.f32.mrf.mxu2  ;;  %v868_v40 = vpop.f32.mrf.mxu3  ;;  %5214 = vmatmul.msk.f32.gmra.mxu1 %vm404_vm0, %v6536_v17 }
 0x120   : > { %v6554_v2 = vadd.f32 %v868_v40, %v635_v15  ;;  %v6556_v60 = vpop.f32.mrf.mxu0 }
 0x122   : > { %8675 = vst [vmem:[#allocation62_spill] sm:$0xff] %v6554_v2  ;;  %v6572_v2 = vld [vmem:[%s5834_s26 + $0x8a] sm:$0xff] }
 0x123   : > { %5175 = vmatmul.msk.f32.gmra.mxu0 %vm404_vm0, %v6559_v23 }
 0x124   : > { %5099 = vmatmul.msk.f32.gmra.mxu2 %vm404_vm0, %v6219_v46  ;;  %5135 = vmatmul.msk.f32.gmra.mxu3 %vm404_vm0, %v6236_v61  ;;  %v1458_v62 = vpop.f32.mrf.mxu1 }
 0x127   : > { %v893_v4 = vpop.f32.mrf.mxu2  ;;  %v1018_v47 = vpop.f32.mrf.mxu3  ;;  %5215 = vmatmul.msk.f32.gmra.mxu1 %vm404_vm0, %v6559_v23 }
 0x128   : > { %v1019_v40 = vadd.f32 %v1018_v47, %v893_v4  ;;  %v6569_v15 = vpop.f32.mrf.mxu0 }
 0x12a   : > { %v6574_v7 = vadd.f32 %v1458_v62, %v1019_v40  ;;  %v6587_v62 = vld [vmem:[%s5834_s26 + $0x92] sm:$0xff] }
 0x12b   : > { %5176 = vmatmul.msk.f32.gmra.mxu0 %vm404_vm0, %v6572_v2 }
 0x12c   : > { %5100 = vmatmul.msk.f32.gmra.mxu2 %vm404_vm0, %v6245_v5  ;;  %5136 = vmatmul.msk.f32.gmra.mxu3 %vm404_vm0, %v6262_v13  ;;  %v1461_v46 = vpop.f32.mrf.mxu1 }
 0x12f   : > { %v896_v61 = vpop.f32.mrf.mxu2  ;;  %v1021_v8 = vpop.f32.mrf.mxu3  ;;  %5216 = vmatmul.msk.f32.gmra.mxu1 %vm404_vm0, %v6572_v2 }
 0x130   : > { %v1022_v47 = vadd.f32 %v1021_v8, %v896_v61  ;;  %v6584_v4 = vpop.f32.mrf.mxu0 }
 0x132   : > { %v6589_v40 = vadd.f32 %v1461_v46, %v1022_v47  ;;  %v6602_v46 = vld [vmem:[%s5834_s26 + $0x9a] sm:$0xff] }
 0x133   : > { %5177 = vmatmul.msk.f32.gmra.mxu0 %vm404_vm0, %v6587_v62 }
 0x134   : > { %5101 = vmatmul.msk.f32.gmra.mxu2 %vm404_vm0, %v5846_v11  ;;  %5137 = vmatmul.msk.f32.gmra.mxu3 %vm404_vm0, %v5849_v12  ;;  %v1464_v5 = vpop.f32.mrf.mxu1 }
 0x137   : > { %v899_v13 = vpop.f32.mrf.mxu2  ;;  %v1024_v1 = vpop.f32.mrf.mxu3  ;;  %5217 = vmatmul.msk.f32.gmra.mxu1 %vm404_vm0, %v6587_v62 }
 0x138   : > { %v1025_v8 = vadd.f32 %v1024_v1, %v899_v13  ;;  %v6599_v61 = vpop.f32.mrf.mxu0 }
 0x13a   : > { %v6604_v47 = vadd.f32 %v1464_v5, %v1025_v8  ;;  %v6617_v5 = vld [vmem:[%s5834_s26 + $0xa2] sm:$0xff] }
 0x13b   : > { %5178 = vmatmul.msk.f32.gmra.mxu0 %vm404_vm0, %v6602_v46 }
 0x13c   : > { %5102 = vmatmul.msk.f32.gmra.mxu2 %vm404_vm0, %v5878_v19  ;;  %5138 = vmatmul.msk.f32.gmra.mxu3 %vm404_vm0, %v5881_v20  ;;  %v1467_v11 = vpop.f32.mrf.mxu1 }
 0x13f   : > { %v902_v12 = vpop.f32.mrf.mxu2  ;;  %v1027_v59 = vpop.f32.mrf.mxu3  ;;  %5218 = vmatmul.msk.f32.gmra.mxu1 %vm404_vm0, %v6602_v46 }
 0x140   : > { %v1028_v1 = vadd.f32 %v1027_v59, %v902_v12  ;;  %v6614_v13 = vpop.f32.mrf.mxu0 }
 0x142   : > { %v6619_v8 = vadd.f32 %v1467_v11, %v1028_v1  ;;  %v6632_v11 = vld [vmem:[%s5834_s26 + $0xaa] sm:$0xff] }
 0x143   : > { %5179 = vmatmul.msk.f32.gmra.mxu0 %vm404_vm0, %v6617_v5 }
 0x144   : > { %5103 = vmatmul.msk.f32.gmra.mxu2 %vm404_vm0, %v5904_v25  ;;  %5139 = vmatmul.msk.f32.gmra.mxu3 %vm404_vm0, %v5907_v26  ;;  %v1470_v19 = vpop.f32.mrf.mxu1 }
 0x147   : > { %v905_v20 = vpop.f32.mrf.mxu2  ;;  %v1030_v55 = vpop.f32.mrf.mxu3  ;;  %5219 = vmatmul.msk.f32.gmra.mxu1 %vm404_vm0, %v6617_v5 }
 0x148   : > { %v1031_v59 = vadd.f32 %v1030_v55, %v905_v20  ;;  %v6629_v12 = vpop.f32.mrf.mxu0 }
 0x14a   : > { %v6634_v1 = vadd.f32 %v1470_v19, %v1031_v59  ;;  %v6647_v19 = vld [vmem:[%s5834_s26 + $0xb2] sm:$0xff] }
 0x14b   : > { %5180 = vmatmul.msk.f32.gmra.mxu0 %vm404_vm0, %v6632_v11 }
 0x14c   : > { %5104 = vmatmul.msk.f32.gmra.mxu2 %vm404_vm0, %v5924_v29  ;;  %5140 = vmatmul.msk.f32.gmra.mxu3 %vm404_vm0, %v5927_v30  ;;  %v1473_v25 = vpop.f32.mrf.mxu1 }
 0x14f   : > { %v908_v26 = vpop.f32.mrf.mxu2  ;;  %v1033_v51 = vpop.f32.mrf.mxu3  ;;  %5220 = vmatmul.msk.f32.gmra.mxu1 %vm404_vm0, %v6632_v11 }
 0x150   : > { %v1034_v55 = vadd.f32 %v1033_v51, %v908_v26  ;;  %v6644_v20 = vpop.f32.mrf.mxu0 }
 0x152   : > { %v6649_v59 = vadd.f32 %v1473_v25, %v1034_v55  ;;  %v6662_v25 = vld [vmem:[%s5834_s26 + $0xba] sm:$0xff] }
 0x153   : > { %5181 = vmatmul.msk.f32.gmra.mxu0 %vm404_vm0, %v6647_v19 }
 0x154   : > { %5105 = vmatmul.msk.f32.gmra.mxu2 %vm404_vm0, %v5944_v33  ;;  %5141 = vmatmul.msk.f32.gmra.mxu3 %vm404_vm0, %v5947_v34  ;;  %v1476_v29 = vpop.f32.mrf.mxu1  ;;  %v5235_v34 = vld [vmem:[%s8577_s1 + $0x60] sm:$0xff] }
 0x155   : > { %1766 = vmatpush.msra.mxu2 %v5235_v34 }
 0x157   : > { %v911_v30 = vpop.f32.mrf.mxu2  ;;  %v1036_v24 = vpop.f32.mrf.mxu3  ;;  %5221 = vmatmul.msk.f32.gmra.mxu1 %vm404_vm0, %v6647_v19 }
 0x158   : > { %v1037_v51 = vadd.f32 %v1036_v24, %v911_v30  ;;  %v6659_v26 = vpop.f32.mrf.mxu0  ;;  %v5275_v24 = vld [vmem:[%s8580_s4 + $0x60] sm:$0xff] }
 0x159   : > { %1932 = vmatpush.msra.mxu3 %v5275_v24  ;;  %v5315_v24 = vld [vmem:[%s8577_s1 + $0x80] sm:$0xff] }
 0x15a   : > { %v6664_v55 = vadd.f32 %v1476_v29, %v1037_v51  ;;  %2242 = vmatpush.msra.mxu0 %v5315_v24 }
 0x15b   : > { %5182 = vmatmul.msk.f32.gmra.mxu0 %vm404_vm0, %v6662_v25 }
 0x15c   : > { %5106 = vmatmul.msk.f32.gmra.mxu2 %vm404_vm0, %v5964_v37  ;;  %5142 = vmatmul.msk.f32.gmra.mxu3 %vm404_vm0, %v5967_v38  ;;  %v1479_v33 = vpop.f32.mrf.mxu1  ;;  %v6683_v38 = vld [vmem:[%s5834_s26 + $0xc2] sm:$0xff] }
 0x15f   : > { %v914_v29 = vpop.f32.mrf.mxu2  ;;  %v1039_v30 = vpop.f32.mrf.mxu3  ;;  %5222 = vmatmul.msk.f32.gmra.mxu1 %vm404_vm0, %v6662_v25 }
 0x160   : > { %v1040_v37 = vadd.f32 %v1039_v30, %v914_v29  ;;  %v6680_v51 = vpop.f32.mrf.mxu0  ;;  %v5355_v29 = vld [vmem:[%s8580_s4 + $0x80] sm:$0xff] }
 0x161   : > { %8676 = vst [vmem:[#allocation63_spill] sm:$0xff] %v6680_v51  ;;  %2408 = vmatpush.msra.mxu1 %v5355_v29 }
 0x162   : > { %v6685_v31 = vadd.f32 %v1479_v33, %v1040_v37 }
 0x163   : > { %5183 = vmatmul.msk.f32.gmra.mxu0 %vm404_vm0, %v6683_v38 }
 0x164   : > { %5107 = vmatmul.msk.f32.gmra.mxu2 %vm404_vm0, %v5990_v43  ;;  %5143 = vmatmul.msk.f32.gmra.mxu3 %vm404_vm0, %v5993_v44  ;;  %v1482_v34 = vpop.f32.mrf.mxu1  ;;  %v6704_v44 = vld [vmem:[%s5834_s26 + $0xca] sm:$0xff] }
 0x167   : > { %v917_v33 = vpop.f32.mrf.mxu2  ;;  %v1042_v30 = vpop.f32.mrf.mxu3  ;;  %5223 = vmatmul.msk.f32.gmra.mxu1 %vm404_vm0, %v6683_v38 }
 0x168   : > { %v1043_v43 = vadd.f32 %v1042_v30, %v917_v33  ;;  %v6701_v37 = vpop.f32.mrf.mxu0 }
 0x169   : > { %8677 = vst [vmem:[#allocation64_spill] sm:$0xff] %v6701_v37 }
 0x16a   : > { %v6706_v45 = vadd.f32 %v1482_v34, %v1043_v43  ;;  %v6719_v34 = vld [vmem:[%s5834_s26 + $0xd2] sm:$0xff] }
 0x16b   : > { %5184 = vmatmul.msk.f32.gmra.mxu0 %vm404_vm0, %v6704_v44 }
 0x16c   : > { %5108 = vmatmul.msk.f32.gmra.mxu2 %vm404_vm0, %v6016_v49  ;;  %5144 = vmatmul.msk.f32.gmra.mxu3 %vm404_vm0, %v6019_v50  ;;  %v1485_v24 = vpop.f32.mrf.mxu1 }
 0x16f   : > { %v920_v29 = vpop.f32.mrf.mxu2  ;;  %v1045_v51 = vpop.f32.mrf.mxu3  ;;  %5224 = vmatmul.msk.f32.gmra.mxu1 %vm404_vm0, %v6704_v44 }
 0x170   : > { %v1046_v33 = vadd.f32 %v1045_v51, %v920_v29  ;;  %v6716_v30 = vpop.f32.mrf.mxu0 }
 0x171   : > { %8678 = vst [vmem:[#allocation65_spill] sm:$0xff] %v6716_v30 }
 0x172   : > { %v6721_v43 = vadd.f32 %v1485_v24, %v1046_v33  ;;  %v6734_v24 = vld [vmem:[%s5834_s26 + $0xda] sm:$0xff] }
 0x173   : > { %5185 = vmatmul.msk.f32.gmra.mxu0 %vm404_vm0, %v6719_v34  ;;  %8681 = vst [vmem:[#allocation68_spill] sm:$0xff] %v6734_v24 }
 0x174   : > { %8679 = vst [vmem:[#allocation66_spill] sm:$0xff] %v6721_v43  ;;  %5109 = vmatmul.msk.f32.gmra.mxu2 %vm404_vm0, %v6036_v53  ;;  %5145 = vmatmul.msk.f32.gmra.mxu3 %vm404_vm0, %v6039_v54  ;;  %v1488_v49 = vpop.f32.mrf.mxu1 }
 0x177   : > { %v923_v50 = vpop.f32.mrf.mxu2  ;;  %v1048_v37 = vpop.f32.mrf.mxu3  ;;  %5225 = vmatmul.msk.f32.gmra.mxu1 %vm404_vm0, %v6719_v34 }
 0x178   : > { %v1049_v51 = vadd.f32 %v1048_v37, %v923_v50  ;;  %v6731_v29 = vpop.f32.mrf.mxu0 }
 0x179   : > { %8680 = vst [vmem:[#allocation67_spill] sm:$0xff] %v6731_v29 }
 0x17a   : > { %v6736_v33 = vadd.f32 %v1488_v49, %v1049_v51  ;;  %v6749_v49 = vld [vmem:[%s5834_s26 + $0xe2] sm:$0xff] }
 0x17b   : > { %5186 = vmatmul.msk.f32.gmra.mxu0 %vm404_vm0, %v6734_v24  ;;  %8684 = vst [vmem:[#allocation71_spill] sm:$0xff] %v6749_v49 }
 0x17c   : > { %8682 = vst [vmem:[#allocation69_spill] sm:$0xff] %v6736_v33  ;;  %5110 = vmatmul.msk.f32.gmra.mxu2 %vm404_vm0, %v6056_v57  ;;  %5146 = vmatmul.msk.f32.gmra.mxu3 %vm404_vm0, %v6059_v58  ;;  %v1491_v53 = vpop.f32.mrf.mxu1  ;;  %v8686_v57 = vld [vmem:[#allocation2_spill] sm:$0xff]  ;;  %v8687_v58 = vld [vmem:[#allocation3_spill] sm:$0xff] }
 0x17f   : > { %v926_v54 = vpop.f32.mrf.mxu2  ;;  %v1051_v30 = vpop.f32.mrf.mxu3  ;;  %5226 = vmatmul.msk.f32.gmra.mxu1 %vm404_vm0, %v6734_v24 }
 0x180   : > { %v1052_v37 = vadd.f32 %v1051_v30, %v926_v54  ;;  %v6746_v50 = vpop.f32.mrf.mxu0 }
 0x181   : > { %8683 = vst [vmem:[#allocation70_spill] sm:$0xff] %v6746_v50 }
 0x182   : > { %v6751_v51 = vadd.f32 %v1491_v53, %v1052_v37  ;;  %v6764_v53 = vld [vmem:[%s5834_s26 + $0xea] sm:$0xff] }
 0x183   : > { %5187 = vmatmul.msk.f32.gmra.mxu0 %vm404_vm0, %v6749_v49  ;;  %8689 = vst [vmem:[#allocation3_spill] sm:$0xff] %v6764_v53 }
 0x184   : > { %8685 = vst [vmem:[#allocation72_spill] sm:$0xff] %v6751_v51  ;;  %5111 = vmatmul.msk.f32.gmra.mxu2 %vm404_vm0, %v8686_v57  ;;  %5147 = vmatmul.msk.f32.gmra.mxu3 %vm404_vm0, %v8687_v58  ;;  %v1494_v29 = vpop.f32.mrf.mxu1  ;;  %v8691_v57 = vld [vmem:[#allocation4_spill] sm:$0xff]  ;;  %v8692_v58 = vld [vmem:[#allocation5_spill] sm:$0xff] }
 0x187   : > { %v929_v33 = vpop.f32.mrf.mxu2  ;;  %v1054_v43 = vpop.f32.mrf.mxu3  ;;  %5227 = vmatmul.msk.f32.gmra.mxu1 %vm404_vm0, %v6749_v49 }
 0x188   : > { %v1055_v30 = vadd.f32 %v1054_v43, %v929_v33  ;;  %v6761_v54 = vpop.f32.mrf.mxu0 }
 0x189   : > { %8688 = vst [vmem:[#allocation2_spill] sm:$0xff] %v6761_v54 }
 0x18a   : > { %v6766_v37 = vadd.f32 %v1494_v29, %v1055_v30  ;;  %v6779_v29 = vld [vmem:[%s5834_s26 + $0xf2] sm:$0xff] }
 0x18b   : > { %5188 = vmatmul.msk.f32.gmra.mxu0 %vm404_vm0, %v6764_v53 }
 0x18c   : > { %8690 = vst [vmem:[#allocation73_spill] sm:$0xff] %v6766_v37  ;;  %5112 = vmatmul.msk.f32.gmra.mxu2 %vm404_vm0, %v8691_v57  ;;  %5148 = vmatmul.msk.f32.gmra.mxu3 %vm404_vm0, %v8692_v58  ;;  %v1497_v50 = vpop.f32.mrf.mxu1  ;;  %v8695_v57 = vld [vmem:[#allocation6_spill] sm:$0xff]  ;;  %v8696_v58 = vld [vmem:[#allocation7_spill] sm:$0xff] }
 0x18f   : > { %v932_v51 = vpop.f32.mrf.mxu2  ;;  %v1057_v49 = vpop.f32.mrf.mxu3  ;;  %5228 = vmatmul.msk.f32.gmra.mxu1 %vm404_vm0, %v6764_v53 }
 0x190   : > { %v1058_v43 = vadd.f32 %v1057_v49, %v932_v51  ;;  %v6776_v33 = vpop.f32.mrf.mxu0 }
 0x191   : > { %8693 = vst [vmem:[#allocation4_spill] sm:$0xff] %v6776_v33 }
 0x192   : > { %v6781_v30 = vadd.f32 %v1497_v50, %v1058_v43  ;;  %v6794_v50 = vld [vmem:[%s5834_s26 + $0xfa] sm:$0xff] }
 0x193   : > { %5189 = vmatmul.msk.f32.gmra.mxu0 %vm404_vm0, %v6779_v29  ;;  %8698 = vst [vmem:[#allocation7_spill] sm:$0xff] %v6794_v50 }
 0x194   : > { %8694 = vst [vmem:[#allocation5_spill] sm:$0xff] %v6781_v30  ;;  %5113 = vmatmul.msk.f32.gmra.mxu2 %vm404_vm0, %v8695_v57  ;;  %5149 = vmatmul.msk.f32.gmra.mxu3 %vm404_vm0, %v8696_v58  ;;  %v1500_v54 = vpop.f32.mrf.mxu1  ;;  %v8700_v57 = vld [vmem:[#allocation8_spill] sm:$0xff]  ;;  %v8701_v58 = vld [vmem:[#allocation9_spill] sm:$0xff] }
 0x197   : > { %v935_v37 = vpop.f32.mrf.mxu2  ;;  %v1060_v53 = vpop.f32.mrf.mxu3  ;;  %5229 = vmatmul.msk.f32.gmra.mxu1 %vm404_vm0, %v6779_v29 }
 0x198   : > { %v1061_v49 = vadd.f32 %v1060_v53, %v935_v37  ;;  %v6791_v51 = vpop.f32.mrf.mxu0 }
 0x199   : > { %8697 = vst [vmem:[#allocation6_spill] sm:$0xff] %v6791_v51 }
 0x19a   : > { %v6796_v43 = vadd.f32 %v1500_v54, %v1061_v49  ;;  %v6809_v54 = vld [vmem:[%s5834_s26 + $0x102] sm:$0xff] }
 0x19b   : > { %5190 = vmatmul.msk.f32.gmra.mxu0 %vm404_vm0, %v6794_v50  ;;  %8703 = vst [vmem:[#allocation9_spill] sm:$0xff] %v6809_v54 }
 0x19c   : > { %8699 = vst [vmem:[#allocation74_spill] sm:$0xff] %v6796_v43  ;;  %5114 = vmatmul.msk.f32.gmra.mxu2 %vm404_vm0, %v8700_v57  ;;  %5150 = vmatmul.msk.f32.gmra.mxu3 %vm404_vm0, %v8701_v58  ;;  %v1503_v33 = vpop.f32.mrf.mxu1  ;;  %v8705_v57 = vld [vmem:[#allocation10_spill] sm:$0xff]  ;;  %v8706_v58 = vld [vmem:[#allocation11_spill] sm:$0xff]  ;;  %v8710_v43 = vld [vmem:[#allocation12_spill] sm:$0xff] }
 0x19f   : > { %v938_v30 = vpop.f32.mrf.mxu2  ;;  %v1063_v24 = vpop.f32.mrf.mxu3  ;;  %5230 = vmatmul.msk.f32.gmra.mxu1 %vm404_vm0, %v6794_v50 }
 0x1a0   : > { %v1064_v53 = vadd.f32 %v1063_v24, %v938_v30  ;;  %v6806_v37 = vpop.f32.mrf.mxu0  ;;  %v5398_v24 = vld [vmem:[%s8577_s1 + $0xb8] sm:$0xff] }
 0x1a1   : > { %8702 = vst [vmem:[#allocation8_spill] sm:$0xff] %v6806_v37  ;;  %v5438_v30 = vld [vmem:[%s8580_s4 + $0xb8] sm:$0xff]  ;;  %2715 = vmatpush.msrb.mxu2 %v5398_v24 }
 0x1a2   : > { %v6811_v49 = vadd.f32 %v1503_v33, %v1064_v53  ;;  %2881 = vmatpush.msrb.mxu3 %v5438_v30  ;;  %v8711_v24 = vld [vmem:[#allocation13_spill] sm:$0xff] }
 0x1a3   : > { %5191 = vmatmul.msk.f32.gmra.mxu0 %vm404_vm0, %v6809_v54 }
 0x1a4   : > { %8704 = vst [vmem:[#allocation75_spill] sm:$0xff] %v6811_v49  ;;  %5115 = vmatmul.msk.f32.gmra.mxu2 %vm404_vm0, %v8705_v57  ;;  %5151 = vmatmul.msk.f32.gmra.mxu3 %vm404_vm0, %v8706_v58  ;;  %v1506_v51 = vpop.f32.mrf.mxu1  ;;  %v6830_v58 = vld [vmem:[%s5834_s26 + $0x10a] sm:$0xff] }
 0x1a5   : > { %8708 = vst [vmem:[#allocation11_spill] sm:$0xff] %v6830_v58 }
 0x1a7   : > { %v941_v33 = vpop.f32.mrf.mxu2  ;;  %v1066_v53 = vpop.f32.mrf.mxu3  ;;  %5231 = vmatmul.msk.f32.gmra.mxu1 %vm404_vm0, %v6809_v54  ;;  %v8715_v54 = vld [vmem:[#allocation15_spill] sm:$0xff] }
 0x1a8   : > { %v1067_v57 = vadd.f32 %v1066_v53, %v941_v33  ;;  %v6827_v37 = vpop.f32.mrf.mxu0  ;;  %v5478_v33 = vld [vmem:[%s8577_s1 + $0xd8] sm:$0xff] }
 0x1a9   : > { %8707 = vst [vmem:[#allocation10_spill] sm:$0xff] %v6827_v37  ;;  %v5518_v53 = vld [vmem:[%s8580_s4 + $0xd8] sm:$0xff]  ;;  %3191 = vmatpush.msrb.mxu0 %v5478_v33  ;;  %v8716_v33 = vld [vmem:[#allocation16_spill] sm:$0xff] }
 0x1aa   : > { %v6832_v49 = vadd.f32 %v1506_v51, %v1067_v57  ;;  %3357 = vmatpush.msrb.mxu1 %v5518_v53 }
 0x1ab   : > { %5192 = vmatmul.msk.f32.gmra.mxu0 %vm404_vm0, %v6830_v58 }
 0x1ac   : > { %8709 = vst [vmem:[#allocation76_spill] sm:$0xff] %v6832_v49  ;;  %5116 = vmatmul.msk.f32.gmra.mxu2 %vm404_vm0, %v8710_v43  ;;  %5152 = vmatmul.msk.f32.gmra.mxu3 %vm404_vm0, %v8711_v24  ;;  %v1509_v30 = vpop.f32.mrf.mxu1  ;;  %v6851_v24 = vld [vmem:[%s5834_s26 + $0x112] sm:$0xff] }
 0x1ad   : > { %8713 = vst [vmem:[#allocation13_spill] sm:$0xff] %v6851_v24 }
 0x1af   : > { %v944_v51 = vpop.f32.mrf.mxu2  ;;  %v1069_v57 = vpop.f32.mrf.mxu3  ;;  %5232 = vmatmul.msk.f32.gmra.mxu1 %vm404_vm0, %v6830_v58 }
 0x1b0   : > { %v1070_v43 = vadd.f32 %v1069_v57, %v944_v51  ;;  %v6848_v37 = vpop.f32.mrf.mxu0 }
 0x1b1   : > { %8712 = vst [vmem:[#allocation12_spill] sm:$0xff] %v6848_v37 }
 0x1b2   : > { %v6853_v49 = vadd.f32 %v1509_v30, %v1070_v43  ;;  %v6866_v30 = vld [vmem:[%s5834_s26 + $0x11a] sm:$0xff] }
 0x1b3   : > { %5193 = vmatmul.msk.f32.gmra.mxu0 %vm404_vm0, %v6851_v24 }
 0x1b4   : > { %8714 = vst [vmem:[#allocation77_spill] sm:$0xff] %v6853_v49  ;;  %5117 = vmatmul.msk.f32.gmra.mxu2 %vm404_vm0, %v8715_v54  ;;  %5153 = vmatmul.msk.f32.gmra.mxu3 %vm404_vm0, %v8716_v33  ;;  %v1512_v53 = vpop.f32.mrf.mxu1  ;;  %v8718_v54 = vld [vmem:[#allocation20_spill] sm:$0xff]  ;;  %v8719_v33 = vld [vmem:[#allocation21_spill] sm:$0xff] }
 0x1b7   : > { %v947_v50 = vpop.f32.mrf.mxu2  ;;  %v1072_v58 = vpop.f32.mrf.mxu3  ;;  %5233 = vmatmul.msk.f32.gmra.mxu1 %vm404_vm0, %v6851_v24 }
 0x1b8   : > { %v1073_v51 = vadd.f32 %v1072_v58, %v947_v50  ;;  %v6863_v57 = vpop.f32.mrf.mxu0 }
 0x1b9   : > { %8717 = vst [vmem:[#allocation15_spill] sm:$0xff] %v6863_v57 }
 0x1ba   : > { %v6868_v43 = vadd.f32 %v1512_v53, %v1073_v51  ;;  %v2078_v53 = vld [vmem:[%s5834_s26 + $0x13] sm:$0xff] }
 0x1bb   : > { %5194 = vmatmul.msk.f32.gmra.mxu0 %vm404_vm0, %v6866_v30 }
 0x1bc   : > { %5118 = vmatmul.msk.f32.gmra.mxu2 %vm404_vm0, %v8718_v54  ;;  %5154 = vmatmul.msk.f32.gmra.mxu3 %vm404_vm0, %v8719_v33  ;;  %v1515_v37 = vpop.f32.mrf.mxu1 }
 0x1bf   : > { %v950_v49 = vpop.f32.mrf.mxu2  ;;  %v1075_v24 = vpop.f32.mrf.mxu3  ;;  %5234 = vmatmul.msk.f32.gmra.mxu1 %vm404_vm0, %v6866_v30 }
 0x1c0   : > { %v1076_v50 = vadd.f32 %v1075_v24, %v950_v49  ;;  %v6878_v58 = vpop.f32.mrf.mxu0 }
 0x1c1   : > { %8720 = vst [vmem:[#allocation16_spill] sm:$0xff] %v6878_v58  ;;  %v2079_v58 = vld [vmem:[%s5834_s26 + $0x1b] sm:$0xff] }
 0x1c2   : > { %v6881_v51 = vadd.f32 %v1515_v37, %v1076_v50 }
 0x1c3   : > { %5319 = vmatmul.msk.f32.vlgmr.msra.gmra.mxu0 %vm404_vm0, %v2078_v53 }
 0x1c4   : > { %8721 = vst [vmem:[#allocation20_spill] sm:$0xff] %v6881_v51  ;;  %5239 = vmatmul.msk.f32.vlgmr.msra.gmra.mxu2 %vm404_vm0, %v6297_v22  ;;  %5279 = vmatmul.msk.f32.vlgmr.msra.gmra.mxu3 %vm404_vm0, %v6297_v22  ;;  %v1518_v54 = vpop.f32.mrf.mxu1 }
 0x1c7   : > { %v953_v33 = vpop.f32.mrf.mxu2  ;;  %v1078_v57 = vpop.f32.mrf.mxu3  ;;  %5359 = vmatmul.msk.f32.vlgmr.msra.gmra.mxu1 %vm404_vm0, %v2078_v53 }
 0x1c8   : > { %v1079_v49 = vadd.f32 %v1078_v57, %v953_v33  ;;  %v6889_v24 = vpop.f32.mrf.mxu0  ;;  %v2080_v33 = vld [vmem:[%s5834_s26 + $0x23] sm:$0xff] }
 0x1c9   : > { %8722 = vst [vmem:[#allocation21_spill] sm:$0xff] %v6889_v24 }
 0x1ca   : > { %v6892_v37 = vadd.f32 %v1518_v54, %v1079_v49 }
 0x1cb   : > { %5320 = vmatmul.msk.f32.gmra.mxu0 %vm404_vm0, %v2079_v58 }
 0x1cc   : > { %5240 = vmatmul.msk.f32.gmra.mxu2 %vm404_vm0, %v6314_v63  ;;  %5280 = vmatmul.msk.f32.gmra.mxu3 %vm404_vm0, %v6314_v63  ;;  %v1521_v22 = vpop.f32.mrf.mxu1 }
 0x1cf   : > { %v956_v50 = vpop.f32.mrf.mxu2  ;;  %v1081_v51 = vpop.f32.mrf.mxu3  ;;  %5360 = vmatmul.msk.f32.gmra.mxu1 %vm404_vm0, %v2079_v58 }
 0x1d0   : > { %v1082_v57 = vadd.f32 %v1081_v51, %v956_v50  ;;  %v6900_v53 = vpop.f32.mrf.mxu0  ;;  %v2081_v50 = vld [vmem:[%s5834_s26 + $0x2b] sm:$0xff] }
 0x1d1   : > { %8723 = vst [vmem:[#allocation78_spill] sm:$0xff] %v6900_v53 }
 0x1d2   : > { %v6903_v54 = vadd.f32 %v1521_v22, %v1082_v57 }
 0x1d3   : > { %5321 = vmatmul.msk.f32.gmra.mxu0 %vm404_vm0, %v2080_v33 }
 0x1d4   : > { %5241 = vmatmul.msk.f32.gmra.mxu2 %vm404_vm0, %v6331_v41  ;;  %5281 = vmatmul.msk.f32.gmra.mxu3 %vm404_vm0, %v6331_v41  ;;  %v1524_v63 = vpop.f32.mrf.mxu1 }
 0x1d7   : > { %v959_v49 = vpop.f32.mrf.mxu2  ;;  %v1084_v24 = vpop.f32.mrf.mxu3  ;;  %5361 = vmatmul.msk.f32.gmra.mxu1 %vm404_vm0, %v2080_v33 }
 0x1d8   : > { %v1085_v58 = vadd.f32 %v1084_v24, %v959_v49  ;;  %v6911_v51 = vpop.f32.mrf.mxu0  ;;  %v2082_v49 = vld [vmem:[%s5834_s26 + $0x33] sm:$0xff] }
 0x1d9   : > { %8724 = vst [vmem:[#allocation79_spill] sm:$0xff] %v6911_v51 }
 0x1da   : > { %v6914_v22 = vadd.f32 %v1524_v63, %v1085_v58 }
 0x1db   : > { %5322 = vmatmul.msk.f32.gmra.mxu0 %vm404_vm0, %v2081_v50 }
 0x1dc   : > { %5242 = vmatmul.msk.f32.gmra.mxu2 %vm404_vm0, %v6348_v21  ;;  %5282 = vmatmul.msk.f32.gmra.mxu3 %vm404_vm0, %v6348_v21  ;;  %v1527_v41 = vpop.f32.mrf.mxu1 }
 0x1df   : > { %v962_v57 = vpop.f32.mrf.mxu2  ;;  %v1087_v53 = vpop.f32.mrf.mxu3  ;;  %5362 = vmatmul.msk.f32.gmra.mxu1 %vm404_vm0, %v2081_v50 }
 0x1e0   : > { %v1088_v24 = vadd.f32 %v1087_v53, %v962_v57  ;;  %v6922_v33 = vpop.f32.mrf.mxu0  ;;  %v2083_v57 = vld [vmem:[%s5834_s26 + $0x3b] sm:$0xff] }
 0x1e2   : > { %v6925_v63 = vadd.f32 %v1527_v41, %v1088_v24  ;;  %v5397_v24 = vld [vmem:[%s8577_s1 + $0xb0] sm:$0xff] }
 0x1e3   : > { %5323 = vmatmul.msk.f32.gmra.mxu0 %vm404_vm0, %v2082_v49  ;;  %2716 = vmatpush.msrb.mxu2 %v5397_v24 }
 0x1e4   : > { %5243 = vmatmul.msk.f32.gmra.mxu2 %vm404_vm0, %v6371_v32  ;;  %5283 = vmatmul.msk.f32.gmra.mxu3 %vm404_vm0, %v6371_v32  ;;  %v1530_v21 = vpop.f32.mrf.mxu1 }
 0x1e7   : > { %v965_v58 = vpop.f32.mrf.mxu2  ;;  %v1090_v51 = vpop.f32.mrf.mxu3  ;;  %5363 = vmatmul.msk.f32.gmra.mxu1 %vm404_vm0, %v2082_v49 }
 0x1e8   : > { %v1091_v50 = vadd.f32 %v1090_v51, %v965_v58  ;;  %v6933_v53 = vpop.f32.mrf.mxu0  ;;  %v5437_v51 = vld [vmem:[%s8580_s4 + $0xb0] sm:$0xff] }
 0x1e9   : > { %8725 = vst [vmem:[#allocation80_spill] sm:$0xff] %v6933_v53  ;;  %2882 = vmatpush.msrb.mxu3 %v5437_v51  ;;  %v5517_v51 = vld [vmem:[%s8580_s4 + $0xd0] sm:$0xff] }
 0x1ea   : > { %v6936_v41 = vadd.f32 %v1530_v21, %v1091_v50  ;;  %3358 = vmatpush.msrb.mxu1 %v5517_v51 }
 0x1eb   : > { %5324 = vmatmul.msk.f32.gmra.mxu0 %vm404_vm0, %v2083_v57 }
 0x1ec   : > { %5244 = vmatmul.msk.f32.gmra.mxu2 %vm404_vm0, %v6394_v35  ;;  %5284 = vmatmul.msk.f32.gmra.mxu3 %vm404_vm0, %v6394_v35  ;;  %v1533_v32 = vpop.f32.mrf.mxu1  ;;  %v2084_v35 = vld [vmem:[%s5834_s26 + $0x43] sm:$0xff] }
 0x1ef   : > { %v968_v49 = vpop.f32.mrf.mxu2  ;;  %v1093_v21 = vpop.f32.mrf.mxu3  ;;  %5364 = vmatmul.msk.f32.gmra.mxu1 %vm404_vm0, %v2083_v57  ;;  %v5477_v57 = vld [vmem:[%s8577_s1 + $0xd0] sm:$0xff] }
 0x1f0   : > { %v1094_v58 = vadd.f32 %v1093_v21, %v968_v49  ;;  %v6950_v50 = vpop.f32.mrf.mxu0  ;;  %3192 = vmatpush.msrb.mxu0 %v5477_v57 }
 0x1f1   : > { %8726 = vst [vmem:[#allocation81_spill] sm:$0xff] %v6950_v50 }
 0x1f2   : > { %v6953_v53 = vadd.f32 %v1533_v32, %v1094_v58 }
 0x1f3   : > { %5325 = vmatmul.msk.f32.gmra.mxu0 %vm404_vm0, %v2084_v35 }
 0x1f4   : > { %8727 = vst [vmem:[#allocation82_spill] sm:$0xff] %v6953_v53  ;;  %5245 = vmatmul.msk.f32.gmra.mxu2 %vm404_vm0, %v6411_v42  ;;  %5285 = vmatmul.msk.f32.gmra.mxu3 %vm404_vm0, %v6411_v42  ;;  %v1536_v24 = vpop.f32.mrf.mxu1  ;;  %v2085_v42 = vld [vmem:[%s5834_s26 + $0x4b] sm:$0xff] }
 0x1f7   : > { %v971_v32 = vpop.f32.mrf.mxu2  ;;  %v1096_v49 = vpop.f32.mrf.mxu3  ;;  %5365 = vmatmul.msk.f32.gmra.mxu1 %vm404_vm0, %v2084_v35 }
 0x1f8   : > { %v1097_v21 = vadd.f32 %v1096_v49, %v971_v32  ;;  %v6967_v58 = vpop.f32.mrf.mxu0  ;;  %v2086_v49 = vld [vmem:[%s5834_s26 + $0x53] sm:$0xff] }
 0x1f9   : > { %8728 = vst [vmem:[#allocation83_spill] sm:$0xff] %v6967_v58 }
 0x1fa   : > { %v6970_v50 = vadd.f32 %v1536_v24, %v1097_v21 }
 0x1fb   : > { %5326 = vmatmul.msk.f32.gmra.mxu0 %vm404_vm0, %v2085_v42 }
 0x1fc   : > { %5246 = vmatmul.msk.f32.gmra.mxu2 %vm404_vm0, %v6428_v36  ;;  %5286 = vmatmul.msk.f32.gmra.mxu3 %vm404_vm0, %v6428_v36  ;;  %v1539_v57 = vpop.f32.mrf.mxu1 }
 0x1ff   : > { %v974_v51 = vpop.f32.mrf.mxu2  ;;  %v1099_v53 = vpop.f32.mrf.mxu3  ;;  %5366 = vmatmul.msk.f32.gmra.mxu1 %vm404_vm0, %v2085_v42 }
 0x200   : > { %v1100_v35 = vadd.f32 %v1099_v53, %v974_v51  ;;  %v6978_v32 = vpop.f32.mrf.mxu0  ;;  %v2087_v51 = vld [vmem:[%s5834_s26 + $0x5b] sm:$0xff] }
 0x201   : > { %8729 = vst [vmem:[#allocation84_spill] sm:$0xff] %v6978_v32 }
 0x202   : > { %v6981_v24 = vadd.f32 %v1539_v57, %v1100_v35 }
 0x203   : > { %5327 = vmatmul.msk.f32.gmra.mxu0 %vm404_vm0, %v2086_v49 }
 0x204   : > { %5247 = vmatmul.msk.f32.gmra.mxu2 %vm404_vm0, %v6445_v39  ;;  %5287 = vmatmul.msk.f32.gmra.mxu3 %vm404_vm0, %v6445_v39  ;;  %v1542_v36 = vpop.f32.mrf.mxu1 }
 0x207   : > { %v977_v21 = vpop.f32.mrf.mxu2  ;;  %v1102_v58 = vpop.f32.mrf.mxu3  ;;  %5367 = vmatmul.msk.f32.gmra.mxu1 %vm404_vm0, %v2086_v49 }
 0x208   : > { %v1103_v53 = vadd.f32 %v1102_v58, %v977_v21  ;;  %v6989_v42 = vpop.f32.mrf.mxu0  ;;  %v2088_v21 = vld [vmem:[%s5834_s26 + $0x63] sm:$0xff] }
 0x209   : > { %8730 = vst [vmem:[#allocation85_spill] sm:$0xff] %v6989_v42 }
 0x20a   : > { %v6992_v57 = vadd.f32 %v1542_v36, %v1103_v53 }
 0x20b   : > { %5328 = vmatmul.msk.f32.gmra.mxu0 %vm404_vm0, %v2087_v51 }
 0x20c   : > { %5248 = vmatmul.msk.f32.gmra.mxu2 %vm404_vm0, %v6462_v9  ;;  %5288 = vmatmul.msk.f32.gmra.mxu3 %vm404_vm0, %v6462_v9  ;;  %v1545_v39 = vpop.f32.mrf.mxu1 }
 0x20f   : > { %v980_v35 = vpop.f32.mrf.mxu2  ;;  %v1105_v32 = vpop.f32.mrf.mxu3  ;;  %5368 = vmatmul.msk.f32.gmra.mxu1 %vm404_vm0, %v2087_v51 }
 0x210   : > { %v1106_v58 = vadd.f32 %v1105_v32, %v980_v35  ;;  %v7000_v49 = vpop.f32.mrf.mxu0  ;;  %v2089_v35 = vld [vmem:[%s5834_s26 + $0x6b] sm:$0xff] }
 0x211   : > { %8731 = vst [vmem:[#allocation86_spill] sm:$0xff] %v7000_v49 }
 0x212   : > { %v7003_v36 = vadd.f32 %v1545_v39, %v1106_v58 }
 0x213   : > { %5329 = vmatmul.msk.f32.gmra.mxu0 %vm404_vm0, %v2088_v21 }
 0x214   : > { %5249 = vmatmul.msk.f32.gmra.mxu2 %vm404_vm0, %v6479_v48  ;;  %5289 = vmatmul.msk.f32.gmra.mxu3 %vm404_vm0, %v6479_v48  ;;  %v1548_v9 = vpop.f32.mrf.mxu1 }
 0x217   : > { %v983_v53 = vpop.f32.mrf.mxu2  ;;  %v1108_v42 = vpop.f32.mrf.mxu3  ;;  %5369 = vmatmul.msk.f32.gmra.mxu1 %vm404_vm0, %v2088_v21 }
 0x218   : > { %v1109_v32 = vadd.f32 %v1108_v42, %v983_v53  ;;  %v7011_v51 = vpop.f32.mrf.mxu0  ;;  %v2090_v53 = vld [vmem:[%s5834_s26 + $0x73] sm:$0xff] }
 0x219   : > { %8732 = vst [vmem:[#allocation87_spill] sm:$0xff] %v7011_v51 }
 0x21a   : > { %v7014_v39 = vadd.f32 %v1548_v9, %v1109_v32 }
 0x21b   : > { %5330 = vmatmul.msk.f32.gmra.mxu0 %vm404_vm0, %v2089_v35 }
 0x21c   : > { %5250 = vmatmul.msk.f32.gmra.mxu2 %vm404_vm0, %v6496_v52  ;;  %5290 = vmatmul.msk.f32.gmra.mxu3 %vm404_vm0, %v6496_v52  ;;  %v1551_v48 = vpop.f32.mrf.mxu1 }
 0x21f   : > { %v986_v58 = vpop.f32.mrf.mxu2  ;;  %v1111_v49 = vpop.f32.mrf.mxu3  ;;  %5370 = vmatmul.msk.f32.gmra.mxu1 %vm404_vm0, %v2089_v35 }
 0x220   : > { %v1112_v42 = vadd.f32 %v1111_v49, %v986_v58  ;;  %v7022_v21 = vpop.f32.mrf.mxu0  ;;  %v2091_v58 = vld [vmem:[%s5834_s26 + $0x7b] sm:$0xff] }
 0x221   : > { %8733 = vst [vmem:[#allocation88_spill] sm:$0xff] %v7022_v21 }
 0x222   : > { %v7025_v9 = vadd.f32 %v1551_v48, %v1112_v42 }
 0x223   : > { %5331 = vmatmul.msk.f32.gmra.mxu0 %vm404_vm0, %v2090_v53 }
 0x224   : > { %8734 = vst [vmem:[#allocation89_spill] sm:$0xff] %v7025_v9  ;;  %5251 = vmatmul.msk.f32.gmra.mxu2 %vm404_vm0, %v6513_v56  ;;  %5291 = vmatmul.msk.f32.gmra.mxu3 %vm404_vm0, %v6513_v56  ;;  %v1554_v52 = vpop.f32.mrf.mxu1 }
 0x227   : > { %v989_v32 = vpop.f32.mrf.mxu2  ;;  %v1114_v51 = vpop.f32.mrf.mxu3  ;;  %5371 = vmatmul.msk.f32.gmra.mxu1 %vm404_vm0, %v2090_v53 }
 0x228   : > { %v1115_v49 = vadd.f32 %v1114_v51, %v989_v32  ;;  %v7033_v35 = vpop.f32.mrf.mxu0  ;;  %v2092_v32 = vld [vmem:[%s5834_s26 + $0x83] sm:$0xff] }
 0x229   : > { %8735 = vst [vmem:[#allocation90_spill] sm:$0xff] %v7033_v35 }
 0x22a   : > { %v7036_v48 = vadd.f32 %v1554_v52, %v1115_v49  ;;  %v5396_v49 = vld [vmem:[%s8577_s1 + $0xa8] sm:$0xff] }
 0x22b   : > { %5332 = vmatmul.msk.f32.gmra.mxu0 %vm404_vm0, %v2091_v58  ;;  %2717 = vmatpush.msrb.mxu2 %v5396_v49 }
 0x22c   : > { %8736 = vst [vmem:[#allocation91_spill] sm:$0xff] %v7036_v48  ;;  %5252 = vmatmul.msk.f32.gmra.mxu2 %vm404_vm0, %v6536_v17  ;;  %5292 = vmatmul.msk.f32.gmra.mxu3 %vm404_vm0, %v6536_v17  ;;  %v1557_v56 = vpop.f32.mrf.mxu1  ;;  %v8745_v48 = vld [vmem:[#allocation22_spill] sm:$0xff] }
 0x22f   : > { %v992_v42 = vpop.f32.mrf.mxu2  ;;  %v1117_v21 = vpop.f32.mrf.mxu3  ;;  %5372 = vmatmul.msk.f32.gmra.mxu1 %vm404_vm0, %v2091_v58 }
 0x230   : > { %v1118_v53 = vadd.f32 %v1117_v21, %v992_v42  ;;  %v7044_v51 = vpop.f32.mrf.mxu0  ;;  %v5436_v21 = vld [vmem:[%s8580_s4 + $0xa8] sm:$0xff] }
 0x231   : > { %8737 = vst [vmem:[#allocation92_spill] sm:$0xff] %v7044_v51  ;;  %2883 = vmatpush.msrb.mxu3 %v5436_v21  ;;  %v5516_v21 = vld [vmem:[%s8580_s4 + $0xc8] sm:$0xff] }
 0x232   : > { %v7047_v52 = vadd.f32 %v1557_v56, %v1118_v53  ;;  %3359 = vmatpush.msrb.mxu1 %v5516_v21 }
 0x233   : > { %5333 = vmatmul.msk.f32.gmra.mxu0 %vm404_vm0, %v2092_v32 }
 0x234   : > { %8738 = vst [vmem:[#allocation93_spill] sm:$0xff] %v7047_v52  ;;  %5253 = vmatmul.msk.f32.gmra.mxu2 %vm404_vm0, %v6559_v23  ;;  %5293 = vmatmul.msk.f32.gmra.mxu3 %vm404_vm0, %v6559_v23  ;;  %v1560_v17 = vpop.f32.mrf.mxu1  ;;  %v2093_v23 = vld [vmem:[%s5834_s26 + $0x8b] sm:$0xff]  ;;  %v8743_v52 = vld [vmem:[#allocation17_spill] sm:$0xff] }
 0x237   : > { %v995_v58 = vpop.f32.mrf.mxu2  ;;  %v1120_v56 = vpop.f32.mrf.mxu3  ;;  %5373 = vmatmul.msk.f32.gmra.mxu1 %vm404_vm0, %v2092_v32  ;;  %v5476_v32 = vld [vmem:[%s8577_s1 + $0xc8] sm:$0xff] }
 0x238   : > { %v1121_v42 = vadd.f32 %v1120_v56, %v995_v58  ;;  %v7061_v53 = vpop.f32.mrf.mxu0  ;;  %3193 = vmatpush.msrb.mxu0 %v5476_v32 }
 0x239   : > { %8739 = vst [vmem:[#allocation94_spill] sm:$0xff] %v7061_v53  ;;  %v2094_v53 = vld [vmem:[%s5834_s26 + $0x93] sm:$0xff] }
 0x23a   : > { %v7064_v51 = vadd.f32 %v1560_v17, %v1121_v42 }
 0x23b   : > { %5334 = vmatmul.msk.f32.gmra.mxu0 %vm404_vm0, %v2093_v23 }
 0x23c   : > { %8740 = vst [vmem:[#allocation95_spill] sm:$0xff] %v7064_v51  ;;  %5254 = vmatmul.msk.f32.gmra.mxu2 %vm404_vm0, %v6572_v2  ;;  %5294 = vmatmul.msk.f32.gmra.mxu3 %vm404_vm0, %v6572_v2  ;;  %v1563_v49 = vpop.f32.mrf.mxu1  ;;  %v8742_v51 = vld [vmem:[#allocation14_spill] sm:$0xff] }
 0x23d   : > { %v764_v35 = vadd.f32 %v8743_v52, %v8742_v51 }
 0x23f   : > { %v998_v17 = vpop.f32.mrf.mxu2  ;;  %v1123_v58 = vpop.f32.mrf.mxu3  ;;  %5374 = vmatmul.msk.f32.gmra.mxu1 %vm404_vm0, %v2093_v23  ;;  %v1400_v23 = vadd.f32 %v6556_v60, %v764_v35 }
 0x240   : > { %v1124_v56 = vadd.f32 %v1123_v58, %v998_v17  ;;  %v2244_v42 = vpop.f32.mrf.mxu0 }
 0x242   : > { %v7079_v2 = vadd.f32 %v1563_v49, %v1124_v56 }
 0x243   : > { %5335 = vmatmul.msk.f32.gmra.mxu0 %vm404_vm0, %v2094_v53 }
 0x244   : > { %8741 = vst [vmem:[#allocation96_spill] sm:$0xff] %v7079_v2  ;;  %5255 = vmatmul.msk.f32.gmra.mxu2 %vm404_vm0, %v6587_v62  ;;  %5295 = vmatmul.msk.f32.gmra.mxu3 %vm404_vm0, %v6587_v62  ;;  %v2410_v32 = vpop.f32.mrf.mxu1  ;;  %v2095_v2 = vld [vmem:[%s5834_s26 + $0x9b] sm:$0xff]  ;;  %v8744_v62 = vld [vmem:[#allocation19_spill] sm:$0xff] }
 0x245   : > { %v767_v9 = vadd.f32 %v8745_v48, %v8744_v62 }
 0x247   : > { %v1768_v21 = vpop.f32.mrf.mxu2  ;;  %v1934_v17 = vpop.f32.mrf.mxu3  ;;  %5375 = vmatmul.msk.f32.gmra.mxu1 %vm404_vm0, %v2094_v53 }
 0x248   : > { %v1876_v49 = vadd.f32 %v1768_v21, %v1400_v23  ;;  %v2042_v58 = vadd.f32 %v1934_v17, %v6574_v7  ;;  %v2247_v56 = vpop.f32.mrf.mxu0  ;;  %v1401_v7 = vadd.f32 %v6569_v15, %v767_v9  ;;  %v2096_v21 = vld [vmem:[%s5834_s26 + $0xa3] sm:$0xff] }
 0x24a   : > { %v7092_v51 = vadd.f32 %v2244_v42, %v1876_v49  ;;  %v7094_v52 = vadd.f32 %v2410_v32, %v2042_v58 }
 0x24b   : > { %5336 = vmatmul.msk.f32.gmra.mxu0 %vm404_vm0, %v2095_v2 }
 0x24c   : > { %5256 = vmatmul.msk.f32.gmra.mxu2 %vm404_vm0, %v6602_v46  ;;  %5296 = vmatmul.msk.f32.gmra.mxu3 %vm404_vm0, %v6602_v46  ;;  %v2413_v60 = vpop.f32.mrf.mxu1  ;;  %v8746_v46 = vld [vmem:[#allocation24_spill] sm:$0xff] }
 0x24d   : > { %v770_v49 = vadd.f32 %v8746_v46, %v6268_v18 }
 0x24f   : > { %v1771_v35 = vpop.f32.mrf.mxu2  ;;  %v1937_v53 = vpop.f32.mrf.mxu3  ;;  %5376 = vmatmul.msk.f32.gmra.mxu1 %vm404_vm0, %v2095_v2 }
 0x250   : > { %v1877_v42 = vadd.f32 %v1771_v35, %v1401_v7  ;;  %v2043_v32 = vadd.f32 %v1937_v53, %v6589_v40  ;;  %v2250_v23 = vpop.f32.mrf.mxu0  ;;  %v1402_v40 = vadd.f32 %v6584_v4, %v770_v49 }
 0x252   : > { %v7107_v48 = vadd.f32 %v2247_v56, %v1877_v42  ;;  %v7109_v17 = vadd.f32 %v2413_v60, %v2043_v32  ;;  %v2097_v60 = vld [vmem:[%s5834_s26 + $0xab] sm:$0xff] }
 0x253   : > { %5337 = vmatmul.msk.f32.gmra.mxu0 %vm404_vm0, %v2096_v21 }
 0x254   : > { %5257 = vmatmul.msk.f32.gmra.mxu2 %vm404_vm0, %v6617_v5  ;;  %5297 = vmatmul.msk.f32.gmra.mxu3 %vm404_vm0, %v6617_v5  ;;  %v2416_v15 = vpop.f32.mrf.mxu1  ;;  %v773_v5 = vadd.f32 %v6289_v10, %v6281_v3 }
 0x257   : > { %v1774_v9 = vpop.f32.mrf.mxu2  ;;  %v1940_v2 = vpop.f32.mrf.mxu3  ;;  %5377 = vmatmul.msk.f32.gmra.mxu1 %vm404_vm0, %v2096_v21  ;;  %v2098_v21 = vld [vmem:[%s5834_s26 + $0xb3] sm:$0xff] }
 0x258   : > { %v1878_v58 = vadd.f32 %v1774_v9, %v1402_v40  ;;  %v2044_v56 = vadd.f32 %v1940_v2, %v6604_v47  ;;  %v2253_v62 = vpop.f32.mrf.mxu0  ;;  %v1403_v47 = vadd.f32 %v6599_v61, %v773_v5  ;;  %v2099_v2 = vld [vmem:[%s5834_s26 + $0xbb] sm:$0xff] }
 0x25a   : > { %v7122_v18 = vadd.f32 %v2250_v23, %v1878_v58  ;;  %v7124_v7 = vadd.f32 %v2416_v15, %v2044_v56 }
 0x25b   : > { %5338 = vmatmul.msk.f32.gmra.mxu0 %vm404_vm0, %v2097_v60 }
 0x25c   : > { %5258 = vmatmul.msk.f32.gmra.mxu2 %vm404_vm0, %v6632_v11  ;;  %5298 = vmatmul.msk.f32.gmra.mxu3 %vm404_vm0, %v6632_v11  ;;  %v2419_v4 = vpop.f32.mrf.mxu1  ;;  %v776_v11 = vadd.f32 %v6305_v16, %v6294_v0 }
 0x25f   : > { %v1777_v35 = vpop.f32.mrf.mxu2  ;;  %v1943_v53 = vpop.f32.mrf.mxu3  ;;  %5378 = vmatmul.msk.f32.gmra.mxu1 %vm404_vm0, %v2097_v60 }
 0x260   : > { %v1879_v42 = vadd.f32 %v1777_v35, %v1403_v47  ;;  %v2045_v32 = vadd.f32 %v1943_v53, %v6619_v8  ;;  %v2256_v23 = vpop.f32.mrf.mxu0  ;;  %v1404_v8 = vadd.f32 %v6614_v13, %v776_v11  ;;  %v2100_v47 = vld [vmem:[%s5834_s26 + $0xc3] sm:$0xff]  ;;  %v2101_v11 = vld [vmem:[%s5834_s26 + $0xcb] sm:$0xff] }
 0x262   : > { %v7137_v3 = vadd.f32 %v2253_v62, %v1879_v42  ;;  %v7139_v10 = vadd.f32 %v2419_v4, %v2045_v32 }
 0x263   : > { %5339 = vmatmul.msk.f32.gmra.mxu0 %vm404_vm0, %v2098_v21 }
 0x264   : > { %5259 = vmatmul.msk.f32.gmra.mxu2 %vm404_vm0, %v6647_v19  ;;  %5299 = vmatmul.msk.f32.gmra.mxu3 %vm404_vm0, %v6647_v19  ;;  %v2422_v61 = vpop.f32.mrf.mxu1  ;;  %v8747_v19 = vld [vmem:[#allocation28_spill] sm:$0xff] }
 0x265   : > { %v779_v58 = vadd.f32 %v8747_v19, %v6311_v14 }
 0x267   : > { %v1780_v46 = vpop.f32.mrf.mxu2  ;;  %v1946_v49 = vpop.f32.mrf.mxu3  ;;  %5379 = vmatmul.msk.f32.gmra.mxu1 %vm404_vm0, %v2098_v21 }
 0x268   : > { %v1880_v15 = vadd.f32 %v1780_v46, %v1404_v8  ;;  %v2046_v40 = vadd.f32 %v1946_v49, %v6634_v1  ;;  %v2259_v9 = vpop.f32.mrf.mxu0  ;;  %v1405_v1 = vadd.f32 %v6629_v12, %v779_v58  ;;  %v5435_v8 = vld [vmem:[%s8580_s4 + $0xa0] sm:$0xff]  ;;  %v8749_v58 = vld [vmem:[#allocation33_spill] sm:$0xff] }
 0x269   : > { %2884 = vmatpush.msrb.mxu3 %v5435_v8  ;;  %v8756_v8 = vld [vmem:[#allocation66_spill] sm:$0xff] }
 0x26a   : > { %v7152_v0 = vadd.f32 %v2256_v23, %v1880_v15  ;;  %v7154_v16 = vadd.f32 %v2422_v61, %v2046_v40 }
 0x26b   : > { %5340 = vmatmul.msk.f32.gmra.mxu0 %vm404_vm0, %v2099_v2 }
 0x26c   : > { %5260 = vmatmul.msk.f32.gmra.mxu2 %vm404_vm0, %v6662_v25  ;;  %5300 = vmatmul.msk.f32.gmra.mxu3 %vm404_vm0, %v6662_v25  ;;  %v2425_v13 = vpop.f32.mrf.mxu1  ;;  %v782_v25 = vadd.f32 %v6339_v28, %v6328_v6  ;;  %v8748_v28 = vld [vmem:[#allocation31_spill] sm:$0xff] }
 0x26f   : > { %v1783_v56 = vpop.f32.mrf.mxu2  ;;  %v1949_v62 = vpop.f32.mrf.mxu3  ;;  %5380 = vmatmul.msk.f32.gmra.mxu1 %vm404_vm0, %v2099_v2 }
 0x270   : > { %v1881_v60 = vadd.f32 %v1783_v56, %v1405_v1  ;;  %v2047_v5 = vadd.f32 %v1949_v62, %v6649_v59  ;;  %v2262_v4 = vpop.f32.mrf.mxu0  ;;  %v1406_v59 = vadd.f32 %v6644_v20, %v782_v25  ;;  %v5515_v56 = vld [vmem:[%s8580_s4 + $0xc0] sm:$0xff]  ;;  %v8751_v62 = vld [vmem:[#allocation63_spill] sm:$0xff] }
 0x271   : > { %3360 = vmatpush.msrb.mxu1 %v5515_v56 }
 0x272   : > { %v7167_v14 = vadd.f32 %v2259_v9, %v1881_v60  ;;  %v7169_v35 = vadd.f32 %v2425_v13, %v2047_v5  ;;  %v2102_v9 = vld [vmem:[%s5834_s26 + $0xd3] sm:$0xff]  ;;  %v8750_v13 = vld [vmem:[#allocation34_spill] sm:$0xff] }
 0x273   : > { %5341 = vmatmul.msk.f32.gmra.mxu0 %vm404_vm0, %v2100_v47  ;;  %v788_v1 = vadd.f32 %v8750_v13, %v8749_v58  ;;  %v8759_v13 = vld [vmem:[#allocation71_spill] sm:$0xff] }
 0x274   : > { %5261 = vmatmul.msk.f32.gmra.mxu2 %vm404_vm0, %v6683_v38  ;;  %5301 = vmatmul.msk.f32.gmra.mxu3 %vm404_vm0, %v6683_v38  ;;  %v2428_v12 = vpop.f32.mrf.mxu1  ;;  %v785_v38 = vadd.f32 %v8748_v28, %v6345_v27 }
 0x275   : > { %v1408_v60 = vadd.f32 %v8751_v62, %v788_v1 }
 0x276   : > { %v1407_v46 = vadd.f32 %v6659_v26, %v785_v38 }
 0x277   : > { %v1786_v53 = vpop.f32.mrf.mxu2  ;;  %v1952_v42 = vpop.f32.mrf.mxu3  ;;  %5381 = vmatmul.msk.f32.gmra.mxu1 %vm404_vm0, %v2100_v47 }
 0x278   : > { %v1882_v32 = vadd.f32 %v1786_v53, %v1406_v59  ;;  %v2048_v23 = vadd.f32 %v1952_v42, %v6664_v55  ;;  %v2265_v21 = vpop.f32.mrf.mxu0  ;;  %v5395_v55 = vld [vmem:[%s8577_s1 + $0xa0] sm:$0xff]  ;;  %v8752_v42 = vld [vmem:[#allocation36_spill] sm:$0xff] }
 0x279   : > { %2718 = vmatpush.msrb.mxu2 %v5395_v55 }
 0x27a   : > { %v7182_v61 = vadd.f32 %v2262_v4, %v1882_v32  ;;  %v7184_v6 = vadd.f32 %v2428_v12, %v2048_v23  ;;  %v2103_v12 = vld [vmem:[%s5834_s26 + $0xdb] sm:$0xff] }
 0x27b   : > { %5342 = vmatmul.msk.f32.gmra.mxu0 %vm404_vm0, %v2101_v11  ;;  %v8753_v32 = vld [vmem:[#allocation37_spill] sm:$0xff] }
 0x27c   : > { %5262 = vmatmul.msk.f32.gmra.mxu2 %vm404_vm0, %v6704_v44  ;;  %5302 = vmatmul.msk.f32.gmra.mxu3 %vm404_vm0, %v6704_v44  ;;  %v2431_v20 = vpop.f32.mrf.mxu1  ;;  %v791_v23 = vadd.f32 %v8753_v32, %v8752_v42  ;;  %v8762_v42 = vld [vmem:[#allocation42_spill] sm:$0xff]  ;;  %v8763_v32 = vld [vmem:[#allocation43_spill] sm:$0xff] }
 0x27f   : > { %v1789_v27 = vpop.f32.mrf.mxu2  ;;  %v1955_v49 = vpop.f32.mrf.mxu3  ;;  %5382 = vmatmul.msk.f32.gmra.mxu1 %vm404_vm0, %v2101_v11 }
 0x280   : > { %v1883_v15 = vadd.f32 %v1789_v27, %v1407_v46  ;;  %v2049_v44 = vadd.f32 %v1955_v49, %v6685_v31  ;;  %v2268_v40 = vpop.f32.mrf.mxu0  ;;  %v5475_v31 = vld [vmem:[%s8577_s1 + $0xc0] sm:$0xff] }
 0x281   : > { %3194 = vmatpush.msrb.mxu0 %v5475_v31  ;;  %v2104_v49 = vld [vmem:[%s5834_s26 + $0xe3] sm:$0xff] }
 0x282   : > { %v7203_v2 = vadd.f32 %v2265_v21, %v1883_v15  ;;  %v7205_v19 = vadd.f32 %v2431_v20, %v2049_v44  ;;  %v8754_v21 = vld [vmem:[#allocation68_spill] sm:$0xff] }
 0x283   : > { %5343 = vmatmul.msk.f32.gmra.mxu0 %vm404_vm0, %v2102_v9 }
 0x284   : > { %5263 = vmatmul.msk.f32.gmra.mxu2 %vm404_vm0, %v6719_v34  ;;  %5303 = vmatmul.msk.f32.gmra.mxu3 %vm404_vm0, %v6719_v34  ;;  %v2434_v26 = vpop.f32.mrf.mxu1 }
 0x287   : > { %v1792_v5 = vpop.f32.mrf.mxu2  ;;  %v1958_v4 = vpop.f32.mrf.mxu3  ;;  %5383 = vmatmul.msk.f32.gmra.mxu1 %vm404_vm0, %v2102_v9  ;;  %v8758_v9 = vld [vmem:[#allocation40_spill] sm:$0xff] }
 0x288   : > { %v1884_v47 = vadd.f32 %v1792_v5, %v1408_v60  ;;  %v2050_v34 = vadd.f32 %v1958_v4, %v6706_v45  ;;  %v2271_v25 = vpop.f32.mrf.mxu0  ;;  %v8755_v45 = vld [vmem:[#allocation64_spill] sm:$0xff]  ;;  %v8761_v5 = vld [vmem:[#allocation69_spill] sm:$0xff] }
 0x289   : > { %v1409_v28 = vadd.f32 %v8755_v45, %v791_v23  ;;  %v797_v23 = vadd.f32 %v8763_v32, %v8762_v42  ;;  %v8765_v45 = vld [vmem:[#allocation67_spill] sm:$0xff]  ;;  %v2107_v42 = vld [vmem:[%s5834_s26 + $0xfb] sm:$0xff] }
 0x28a   : > { %v7224_v59 = vadd.f32 %v2268_v40, %v1884_v47  ;;  %v7226_v53 = vadd.f32 %v2434_v26, %v2050_v34  ;;  %v8757_v40 = vld [vmem:[#allocation39_spill] sm:$0xff]  ;;  %v8760_v26 = vld [vmem:[#allocation65_spill] sm:$0xff] }
 0x28b   : > { %5344 = vmatmul.msk.f32.gmra.mxu0 %vm404_vm0, %v2103_v12  ;;  %v794_v58 = vadd.f32 %v8758_v9, %v8757_v40  ;;  %v2105_v34 = vld [vmem:[%s5834_s26 + $0xeb] sm:$0xff] }
 0x28c   : > { %5264 = vmatmul.msk.f32.gmra.mxu2 %vm404_vm0, %v8754_v21  ;;  %5304 = vmatmul.msk.f32.gmra.mxu3 %vm404_vm0, %v8754_v21  ;;  %v2437_v11 = vpop.f32.mrf.mxu1  ;;  %v8764_v21 = vld [vmem:[#allocation3_spill] sm:$0xff] }
 0x28d   : > { %v1410_v31 = vadd.f32 %v8760_v26, %v794_v58  ;;  %v8767_v58 = vld [vmem:[#allocation45_spill] sm:$0xff] }
 0x28f   : > { %v1795_v38 = vpop.f32.mrf.mxu2  ;;  %v1961_v20 = vpop.f32.mrf.mxu3  ;;  %5384 = vmatmul.msk.f32.gmra.mxu1 %vm404_vm0, %v2103_v12 }
 0x290   : > { %v1885_v55 = vadd.f32 %v1795_v38, %v1409_v28  ;;  %v2051_v46 = vadd.f32 %v1961_v20, %v8756_v8  ;;  %v2274_v27 = vpop.f32.mrf.mxu0  ;;  %v1411_v28 = vadd.f32 %v8765_v45, %v797_v23  ;;  %v8766_v8 = vld [vmem:[#allocation72_spill] sm:$0xff]  ;;  %v8773_v45 = vld [vmem:[#allocation7_spill] sm:$0xff] }
 0x292   : > { %v7239_v15 = vadd.f32 %v2271_v25, %v1885_v55  ;;  %v7241_v44 = vadd.f32 %v2437_v11, %v2051_v46 }
 0x293   : > { %5345 = vmatmul.msk.f32.gmra.mxu0 %vm404_vm0, %v2104_v49 }
 0x294   : > { %5265 = vmatmul.msk.f32.gmra.mxu2 %vm404_vm0, %v8759_v13  ;;  %5305 = vmatmul.msk.f32.gmra.mxu3 %vm404_vm0, %v8759_v13  ;;  %v2440_v1 = vpop.f32.mrf.mxu1  ;;  %v8768_v13 = vld [vmem:[#allocation46_spill] sm:$0xff] }
 0x297   : > { %v1798_v56 = vpop.f32.mrf.mxu2  ;;  %v1964_v62 = vpop.f32.mrf.mxu3  ;;  %5385 = vmatmul.msk.f32.gmra.mxu1 %vm404_vm0, %v2104_v49  ;;  %v2106_v49 = vld [vmem:[%s5834_s26 + $0xf3] sm:$0xff] }
 0x298   : > { %v1886_v60 = vadd.f32 %v1798_v56, %v1410_v31  ;;  %v2052_v4 = vadd.f32 %v1964_v62, %v8761_v5  ;;  %v2277_v47 = vpop.f32.mrf.mxu0  ;;  %v8769_v31 = vld [vmem:[#allocation70_spill] sm:$0xff] }
 0x29a   : > { %v7254_v25 = vadd.f32 %v2274_v27, %v1886_v60  ;;  %v7256_v12 = vadd.f32 %v2440_v1, %v2052_v4  ;;  %v800_v1 = vadd.f32 %v8768_v13, %v8767_v58  ;;  %v8770_v4 = vld [vmem:[#allocation73_spill] sm:$0xff]  ;;  %v2108_v13 = vld [vmem:[%s5834_s26 + $0x103] sm:$0xff] }
 0x29b   : > { %5346 = vmatmul.msk.f32.gmra.mxu0 %vm404_vm0, %v2105_v34 }
 0x29c   : > { %5266 = vmatmul.msk.f32.gmra.mxu2 %vm404_vm0, %v8764_v21  ;;  %5306 = vmatmul.msk.f32.gmra.mxu3 %vm404_vm0, %v8764_v21  ;;  %v2443_v11 = vpop.f32.mrf.mxu1  ;;  %v1412_v56 = vadd.f32 %v8769_v31, %v800_v1  ;;  %v8772_v21 = vld [vmem:[#allocation49_spill] sm:$0xff]  ;;  %v8776_v31 = vld [vmem:[#allocation51_spill] sm:$0xff] }
 0x29f   : > { %v1801_v38 = vpop.f32.mrf.mxu2  ;;  %v1967_v20 = vpop.f32.mrf.mxu3  ;;  %5386 = vmatmul.msk.f32.gmra.mxu1 %vm404_vm0, %v2105_v34 }
 0x2a0   : > { %v1887_v55 = vadd.f32 %v1801_v38, %v1411_v28  ;;  %v2053_v46 = vadd.f32 %v1967_v20, %v8766_v8  ;;  %v2280_v27 = vpop.f32.mrf.mxu0  ;;  %v8774_v38 = vld [vmem:[#allocation2_spill] sm:$0xff] }
 0x2a2   : > { %v7269_v40 = vadd.f32 %v2277_v47, %v1887_v55  ;;  %v7271_v9 = vadd.f32 %v2443_v11, %v2053_v46 }
 0x2a3   : > { %5347 = vmatmul.msk.f32.gmra.mxu0 %vm404_vm0, %v2106_v49 }
 0x2a4   : > { %5267 = vmatmul.msk.f32.gmra.mxu2 %vm404_vm0, %v6779_v29  ;;  %5307 = vmatmul.msk.f32.gmra.mxu3 %vm404_vm0, %v6779_v29  ;;  %v2446_v26 = vpop.f32.mrf.mxu1  ;;  %v8771_v29 = vld [vmem:[#allocation48_spill] sm:$0xff] }
 0x2a5   : > { %v803_v11 = vadd.f32 %v8772_v21, %v8771_v29  ;;  %v8780_v21 = vld [vmem:[#allocation74_spill] sm:$0xff] }
 0x2a7   : > { %v1804_v62 = vpop.f32.mrf.mxu2  ;;  %v1970_v60 = vpop.f32.mrf.mxu3  ;;  %5387 = vmatmul.msk.f32.gmra.mxu1 %vm404_vm0, %v2106_v49  ;;  %v1413_v20 = vadd.f32 %v8774_v38, %v803_v11 }
 0x2a8   : > { %v1888_v5 = vadd.f32 %v1804_v62, %v1412_v56  ;;  %v2054_v47 = vadd.f32 %v1970_v60, %v8770_v4  ;;  %v2283_v34 = vpop.f32.mrf.mxu0  ;;  %v8777_v56 = vld [vmem:[#allocation52_spill] sm:$0xff]  ;;  %v8778_v60 = vld [vmem:[#allocation9_spill] sm:$0xff] }
 0x2a9   : > { %v806_v62 = vadd.f32 %v8777_v56, %v8776_v31  ;;  %v8779_v4 = vld [vmem:[#allocation4_spill] sm:$0xff] }
 0x2aa   : > { %v7284_v32 = vadd.f32 %v2280_v27, %v1888_v5  ;;  %v7286_v23 = vadd.f32 %v2446_v26, %v2054_v47  ;;  %v8775_v27 = vld [vmem:[#allocation5_spill] sm:$0xff] }
 0x2ab   : > { %5348 = vmatmul.msk.f32.gmra.mxu0 %vm404_vm0, %v2107_v42  ;;  %v1414_v47 = vadd.f32 %v8779_v4, %v806_v62 }
 0x2ac   : > { %5268 = vmatmul.msk.f32.gmra.mxu2 %vm404_vm0, %v8773_v45  ;;  %5308 = vmatmul.msk.f32.gmra.mxu3 %vm404_vm0, %v8773_v45  ;;  %v2449_v28 = vpop.f32.mrf.mxu1 }
 0x2af   : > { %v1807_v55 = vpop.f32.mrf.mxu2  ;;  %v1973_v8 = vpop.f32.mrf.mxu3  ;;  %5388 = vmatmul.msk.f32.gmra.mxu1 %vm404_vm0, %v2107_v42 }
 0x2b0   : > { %v1889_v46 = vadd.f32 %v1807_v55, %v1413_v20  ;;  %v2055_v49 = vadd.f32 %v1973_v8, %v8775_v27  ;;  %v2286_v58 = vpop.f32.mrf.mxu0  ;;  %v8781_v55 = vld [vmem:[#allocation54_spill] sm:$0xff]  ;;  %v8782_v8 = vld [vmem:[#allocation55_spill] sm:$0xff] }
 0x2b1   : > { %v8783_v27 = vld [vmem:[#allocation11_spill] sm:$0xff] }
 0x2b2   : > { %v7299_v1 = vadd.f32 %v2283_v34, %v1889_v46  ;;  %v7301_v26 = vadd.f32 %v2449_v28, %v2055_v49  ;;  %v2109_v28 = vld [vmem:[%s5834_s26 + $0x10b] sm:$0xff]  ;;  %v809_v46 = vadd.f32 %v8782_v8, %v8781_v55  ;;  %v8788_v55 = vld [vmem:[#allocation13_spill] sm:$0xff] }
 0x2b3   : > { %5349 = vmatmul.msk.f32.gmra.mxu0 %vm404_vm0, %v2108_v13  ;;  %v5598_v8 = vld [vmem:[%s8580_s4 + $0xf8] sm:$0xff] }
 0x2b4   : > { %5269 = vmatmul.msk.f32.gmra.mxu2 %vm404_vm0, %v8778_v60  ;;  %5309 = vmatmul.msk.f32.gmra.mxu3 %vm404_vm0, %v8778_v60  ;;  %v2452_v5 = vpop.f32.mrf.mxu1  ;;  %v8785_v60 = vld [vmem:[#allocation75_spill] sm:$0xff] }
 0x2b5   : > { %3833 = vmatpush.msra.mxu3 %v5598_v8 }
 0x2b7   : > { %v1810_v42 = vpop.f32.mrf.mxu2  ;;  %v1976_v29 = vpop.f32.mrf.mxu3  ;;  %5389 = vmatmul.msk.f32.gmra.mxu1 %vm404_vm0, %v2108_v13  ;;  %v8784_v13 = vld [vmem:[#allocation6_spill] sm:$0xff] }
 0x2b8   : > { %v1890_v34 = vadd.f32 %v1810_v42, %v1414_v47  ;;  %v2056_v11 = vadd.f32 %v1976_v29, %v8780_v21  ;;  %v2289_v45 = vpop.f32.mrf.mxu0  ;;  %v1415_v31 = vadd.f32 %v8784_v13, %v809_v46  ;;  %v2110_v47 = vld [vmem:[%s5834_s26 + $0x113] sm:$0xff]  ;;  %v8787_v21 = vld [vmem:[#allocation58_spill] sm:$0xff] }
 0x2b9   : > { %v8789_v46 = vld [vmem:[#allocation8_spill] sm:$0xff] }
 0x2ba   : > { %v7314_v38 = vadd.f32 %v2286_v58, %v1890_v34  ;;  %v7316_v20 = vadd.f32 %v2452_v5, %v2056_v11  ;;  %v8786_v34 = vld [vmem:[#allocation57_spill] sm:$0xff] }
 0x2bb   : > { %5350 = vmatmul.msk.f32.gmra.mxu0 %vm404_vm0, %v2109_v28  ;;  %v812_v11 = vadd.f32 %v8787_v21, %v8786_v34  ;;  %v8791_v21 = vld [vmem:[#allocation60_spill] sm:$0xff] }
 0x2bc   : > { %5270 = vmatmul.msk.f32.gmra.mxu2 %vm404_vm0, %v8783_v27  ;;  %5310 = vmatmul.msk.f32.gmra.mxu3 %vm404_vm0, %v8783_v27  ;;  %v2455_v49 = vpop.f32.mrf.mxu1 }
 0x2bd   : > { %v1416_v27 = vadd.f32 %v8789_v46, %v812_v11  ;;  %v5678_v11 = vld [vmem:[%s8580_s4 + $0x118] sm:$0xff] }
 0x2be   : > { %4309 = vmatpush.msra.mxu1 %v5678_v11 }
 0x2bf   : > { %v1813_v56 = vpop.f32.mrf.mxu2  ;;  %v1979_v62 = vpop.f32.mrf.mxu3  ;;  %5390 = vmatmul.msk.f32.gmra.mxu1 %vm404_vm0, %v2109_v28 }
 0x2c0   : > { %v1891_v58 = vadd.f32 %v1813_v56, %v1415_v31  ;;  %v2057_v5 = vadd.f32 %v1979_v62, %v8785_v60  ;;  %v2292_v4 = vpop.f32.mrf.mxu0  ;;  %v8790_v56 = vld [vmem:[#allocation76_spill] sm:$0xff]  ;;  %v2111_v60 = vld [vmem:[%s5834_s26 + $0x11b] sm:$0xff] }
 0x2c2   : > { %v7329_v42 = vadd.f32 %v2289_v45, %v1891_v58  ;;  %v7331_v29 = vadd.f32 %v2455_v49, %v2057_v5  ;;  %v5558_v45 = vld [vmem:[%s8577_s1 + $0xf8] sm:$0xff] }
 0x2c3   : > { %5351 = vmatmul.msk.f32.gmra.mxu0 %vm404_vm0, %v2110_v47  ;;  %3667 = vmatpush.msra.mxu2 %v5558_v45 }
 0x2c4   : > { %5271 = vmatmul.msk.f32.gmra.mxu2 %vm404_vm0, %v8788_v55  ;;  %5311 = vmatmul.msk.f32.gmra.mxu3 %vm404_vm0, %v8788_v55  ;;  %v2458_v28 = vpop.f32.mrf.mxu1  ;;  %v8792_v55 = vld [vmem:[#allocation61_spill] sm:$0xff] }
 0x2c5   : > { %v815_v45 = vadd.f32 %v8792_v55, %v8791_v21 }
 0x2c7   : > { %v1816_v49 = vpop.f32.mrf.mxu2  ;;  %v1982_v13 = vpop.f32.mrf.mxu3  ;;  %5391 = vmatmul.msk.f32.gmra.mxu1 %vm404_vm0, %v2110_v47 }
 0x2c8   : > { %v1892_v31 = vadd.f32 %v1816_v49, %v1416_v27  ;;  %v2058_v62 = vadd.f32 %v1982_v13, %v8790_v56  ;;  %v2295_v58 = vpop.f32.mrf.mxu0  ;;  %v8794_v13 = vld [vmem:[#allocation77_spill] sm:$0xff]  ;;  %v2112_v56 = vld [vmem:[%s5834_s26 + $0x123] sm:$0xff] }
 0x2ca   : > { %v7350_v5 = vadd.f32 %v2292_v4, %v1892_v31  ;;  %v7352_v34 = vadd.f32 %v2458_v28, %v2058_v62  ;;  %v5638_v4 = vld [vmem:[%s8577_s1 + $0x118] sm:$0xff]  ;;  %v8793_v28 = vld [vmem:[#allocation10_spill] sm:$0xff] }
 0x2cb   : > { %5352 = vmatmul.msk.f32.gmra.mxu0 %vm404_vm0, %v2111_v60  ;;  %v1417_v8 = vadd.f32 %v8793_v28, %v815_v45  ;;  %v1636_v62 = vld [vmem:[%s5834_s26 + $0x122] sm:$0xff] }
 0x2cc   : > { %5272 = vmatmul.msk.f32.gmra.mxu2 %vm404_vm0, %v6866_v30  ;;  %5312 = vmatmul.msk.f32.gmra.mxu3 %vm404_vm0, %v6866_v30  ;;  %v2461_v47 = vpop.f32.mrf.mxu1 }
 0x2cd   : > { %4143 = vmatpush.msra.mxu0 %v5638_v4  ;;  %v8796_v4 = vld [vmem:[#allocation12_spill] sm:$0xff] }
 0x2cf   : > { %v1819_v46 = vpop.f32.mrf.mxu2  ;;  %v1985_v27 = vpop.f32.mrf.mxu3  ;;  %5392 = vmatmul.msk.f32.gmra.mxu1 %vm404_vm0, %v2111_v60  ;;  %v8795_v60 = vld [vmem:[#allocation18_spill] sm:$0xff] }
 0x2d0   : > { %v1893_v49 = vadd.f32 %v1819_v46, %v1417_v8  ;;  %v2059_v30 = vadd.f32 %v1985_v27, %v8794_v13  ;;  %v2298_v31 = vpop.f32.mrf.mxu0  ;;  %v1418_v11 = vadd.f32 %v8796_v4, %v8795_v60  ;;  %v8800_v60 = vld [vmem:[#allocation15_spill] sm:$0xff] }
 0x2d2   : > { %v7372_v21 = vadd.f32 %v2295_v58, %v1893_v49  ;;  %v7374_v55 = vadd.f32 %v2461_v47, %v2059_v30  ;;  %v2113_v47 = vld [vmem:[%s5834_s26 + $0x12b] sm:$0xff] }
 0x2d3   : > { %5353 = vmatmul.msk.f32.gmra.mxu0 %vm404_vm0, %v2112_v56  ;;  %v1637_v49 = vld [vmem:[%s5834_s26 + $0x12a] sm:$0xff] }
 0x2d4   : > { %5273 = vmatmul.msk.f32.gmra.mxu2 %vm404_vm0, %v1636_v62  ;;  %5313 = vmatmul.msk.f32.gmra.mxu3 %vm404_vm0, %v1636_v62  ;;  %v2464_v45 = vpop.f32.mrf.mxu1 }
 0x2d7   : > { %v1822_v28 = vpop.f32.mrf.mxu2  ;;  %v1988_v8 = vpop.f32.mrf.mxu3  ;;  %5393 = vmatmul.msk.f32.gmra.mxu1 %vm404_vm0, %v2112_v56  ;;  %v8799_v56 = vld [vmem:[#allocation23_spill] sm:$0xff] }
 0x2d8   : > { %v1894_v46 = vadd.f32 %v1822_v28, %v1418_v11  ;;  %v2060_v58 = vadd.f32 %v1988_v8, %v6868_v43  ;;  %v2301_v27 = vpop.f32.mrf.mxu0  ;;  %v1419_v4 = vadd.f32 %v8800_v60, %v8799_v56  ;;  %v8801_v8 = vld [vmem:[#allocation20_spill] sm:$0xff] }
 0x2d9   : > { %v8804_v56 = vld [vmem:[#allocation16_spill] sm:$0xff] }
 0x2da   : > { %v7385_v13 = vadd.f32 %v2298_v31, %v1894_v46  ;;  %v7387_v30 = vadd.f32 %v2464_v45, %v2060_v58  ;;  %v3030_v45 = vld [vmem:[%s5834_s26 + $0x24] sm:$0xff]  ;;  %v2554_v58 = vld [vmem:[%s5834_s26 + $0x14] sm:$0xff] }
 0x2db   : > { %5354 = vmatmul.msk.f32.gmra.mxu0 %vm404_vm0, %v2113_v47 }
 0x2dc   : > { %8797 = vst [vmem:[#allocation14_spill] sm:$0xff] %v7385_v13  ;;  %5274 = vmatmul.msk.f32.gmra.mxu2 %vm404_vm0, %v1637_v49  ;;  %5314 = vmatmul.msk.f32.gmra.mxu3 %vm404_vm0, %v1637_v49  ;;  %v2467_v62 = vpop.f32.mrf.mxu1 }
 0x2dd   : > { %8798 = vst [vmem:[#allocation17_spill] sm:$0xff] %v7387_v30 }
 0x2df   : > { %v1825_v43 = vpop.f32.mrf.mxu2  ;;  %v1991_v11 = vpop.f32.mrf.mxu3  ;;  %5394 = vmatmul.msk.f32.gmra.mxu1 %vm404_vm0, %v2113_v47  ;;  %v8803_v47 = vld [vmem:[#allocation25_spill] sm:$0xff] }
 0x2e0   : > { %v1895_v28 = vadd.f32 %v1825_v43, %v1419_v4  ;;  %v2061_v31 = vadd.f32 %v1991_v11, %v8801_v8  ;;  %v2304_v46 = vpop.f32.mrf.mxu0  ;;  %v1420_v60 = vadd.f32 %v8804_v56, %v8803_v47  ;;  %v2555_v8 = vld [vmem:[%s5834_s26 + $0x1c] sm:$0xff] }
 0x2e1   : > { %v8807_v47 = vld [vmem:[#allocation26_spill] sm:$0xff]  ;;  %v8808_v56 = vld [vmem:[#allocation21_spill] sm:$0xff] }
 0x2e2   : > { %v7398_v30 = vadd.f32 %v2301_v27, %v1895_v28  ;;  %v7400_v13 = vadd.f32 %v2467_v62, %v2061_v31  ;;  %v3031_v62 = vld [vmem:[%s5834_s26 + $0x2c] sm:$0xff] }
 0x2e3   : > { %5479 = vmatmul.msk.f32.vlgmr.msrb.gmra.mxu0 %vm404_vm0, %v3030_v45 }
 0x2e4   : > { %8802 = vst [vmem:[#allocation19_spill] sm:$0xff] %v7400_v13  ;;  %5399 = vmatmul.msk.f32.vlgmr.msrb.gmra.mxu2 %vm404_vm0, %v2554_v58  ;;  %5439 = vmatmul.msk.f32.vlgmr.msrb.gmra.mxu3 %vm404_vm0, %v2554_v58  ;;  %v2470_v49 = vpop.f32.mrf.mxu1 }
 0x2e7   : > { %v1828_v4 = vpop.f32.mrf.mxu2  ;;  %v1994_v43 = vpop.f32.mrf.mxu3  ;;  %5519 = vmatmul.msk.f32.vlgmr.msrb.gmra.mxu1 %vm404_vm0, %v3030_v45 }
 0x2e8   : > { %v1896_v11 = vadd.f32 %v1828_v4, %v1420_v60  ;;  %v2062_v27 = vadd.f32 %v1994_v43, %v6892_v37  ;;  %v2307_v28 = vpop.f32.mrf.mxu0  ;;  %v1421_v60 = vadd.f32 %v8808_v56, %v8807_v47  ;;  %v8810_v47 = vld [vmem:[#allocation27_spill] sm:$0xff]  ;;  %v8811_v56 = vld [vmem:[#allocation78_spill] sm:$0xff] }
 0x2ea   : > { %v7411_v31 = vadd.f32 %v2304_v46, %v1896_v11  ;;  %v7413_v13 = vadd.f32 %v2470_v49, %v2062_v27  ;;  %v3032_v11 = vld [vmem:[%s5834_s26 + $0x34] sm:$0xff] }
 0x2eb   : > { %5480 = vmatmul.msk.f32.gmra.mxu0 %vm404_vm0, %v3031_v62 }
 0x2ec   : > { %8805 = vst [vmem:[#allocation22_spill] sm:$0xff] %v7411_v31  ;;  %5400 = vmatmul.msk.f32.gmra.mxu2 %vm404_vm0, %v2555_v8  ;;  %5440 = vmatmul.msk.f32.gmra.mxu3 %vm404_vm0, %v2555_v8  ;;  %v2473_v58 = vpop.f32.mrf.mxu1  ;;  %v1422_v31 = vadd.f32 %v8811_v56, %v8810_v47  ;;  %v8812_v47 = vld [vmem:[#allocation29_spill] sm:$0xff]  ;;  %v8813_v56 = vld [vmem:[#allocation79_spill] sm:$0xff] }
 0x2ed   : > { %8806 = vst [vmem:[#allocation24_spill] sm:$0xff] %v7413_v13 }
 0x2ef   : > { %v1831_v4 = vpop.f32.mrf.mxu2  ;;  %v1997_v37 = vpop.f32.mrf.mxu3  ;;  %5520 = vmatmul.msk.f32.gmra.mxu1 %vm404_vm0, %v3031_v62 }
 0x2f0   : > { %v1897_v43 = vadd.f32 %v1831_v4, %v1421_v60  ;;  %v2063_v46 = vadd.f32 %v1997_v37, %v6903_v54  ;;  %v2310_v49 = vpop.f32.mrf.mxu0  ;;  %v3033_v37 = vld [vmem:[%s5834_s26 + $0x3c] sm:$0xff] }
 0x2f2   : > { %v7423_v27 = vadd.f32 %v2307_v28, %v1897_v43  ;;  %v7425_v13 = vadd.f32 %v2473_v58, %v2063_v46 }
 0x2f3   : > { %5481 = vmatmul.msk.f32.gmra.mxu0 %vm404_vm0, %v3032_v11 }
 0x2f4   : > { %8809 = vst [vmem:[#allocation28_spill] sm:$0xff] %v7425_v13  ;;  %5401 = vmatmul.msk.f32.gmra.mxu2 %vm404_vm0, %v3030_v45  ;;  %5441 = vmatmul.msk.f32.gmra.mxu3 %vm404_vm0, %v3030_v45  ;;  %v2476_v8 = vpop.f32.mrf.mxu1  ;;  %v1423_v13 = vadd.f32 %v8813_v56, %v8812_v47  ;;  %v8815_v47 = vld [vmem:[#allocation30_spill] sm:$0xff] }
 0x2f5   : > { %v1424_v56 = vadd.f32 %v6922_v33, %v8815_v47 }
 0x2f7   : > { %v1834_v60 = vpop.f32.mrf.mxu2  ;;  %v2000_v4 = vpop.f32.mrf.mxu3  ;;  %5521 = vmatmul.msk.f32.gmra.mxu1 %vm404_vm0, %v3032_v11 }
 0x2f8   : > { %v1898_v54 = vadd.f32 %v1834_v60, %v1422_v31  ;;  %v2064_v28 = vadd.f32 %v2000_v4, %v6914_v22  ;;  %v2313_v58 = vpop.f32.mrf.mxu0  ;;  %v3034_v4 = vld [vmem:[%s5834_s26 + $0x44] sm:$0xff] }
 0x2fa   : > { %v7435_v43 = vadd.f32 %v2310_v49, %v1898_v54  ;;  %v7437_v46 = vadd.f32 %v2476_v8, %v2064_v28 }
 0x2fb   : > { %5482 = vmatmul.msk.f32.gmra.mxu0 %vm404_vm0, %v3033_v37 }
 0x2fc   : > { %5402 = vmatmul.msk.f32.gmra.mxu2 %vm404_vm0, %v3031_v62  ;;  %5442 = vmatmul.msk.f32.gmra.mxu3 %vm404_vm0, %v3031_v62  ;;  %v2479_v45 = vpop.f32.mrf.mxu1 }
 0x2ff   : > { %v1837_v31 = vpop.f32.mrf.mxu2  ;;  %v2003_v60 = vpop.f32.mrf.mxu3  ;;  %5522 = vmatmul.msk.f32.gmra.mxu1 %vm404_vm0, %v3033_v37 }
 0x300   : > { %v1899_v22 = vadd.f32 %v1837_v31, %v1423_v13  ;;  %v2065_v49 = vadd.f32 %v2003_v60, %v6925_v63  ;;  %v2316_v8 = vpop.f32.mrf.mxu0 }
 0x302   : > { %v7447_v54 = vadd.f32 %v2313_v58, %v1899_v22  ;;  %v7449_v28 = vadd.f32 %v2479_v45, %v2065_v49  ;;  %v3035_v45 = vld [vmem:[%s5834_s26 + $0x4c] sm:$0xff] }
 0x303   : > { %5483 = vmatmul.msk.f32.gmra.mxu0 %vm404_vm0, %v3034_v4 }
 0x304   : > { %8814 = vst [vmem:[#allocation31_spill] sm:$0xff] %v7449_v28  ;;  %5403 = vmatmul.msk.f32.gmra.mxu2 %vm404_vm0, %v3032_v11  ;;  %5443 = vmatmul.msk.f32.gmra.mxu3 %vm404_vm0, %v3032_v11  ;;  %v2482_v62 = vpop.f32.mrf.mxu1  ;;  %v5557_v11 = vld [vmem:[%s8577_s1 + $0xf0] sm:$0xff] }
 0x305   : > { %3668 = vmatpush.msra.mxu2 %v5557_v11 }
 0x307   : > { %v1840_v13 = vpop.f32.mrf.mxu2  ;;  %v2006_v31 = vpop.f32.mrf.mxu3  ;;  %5523 = vmatmul.msk.f32.gmra.mxu1 %vm404_vm0, %v3034_v4 }
 0x308   : > { %v1900_v63 = vadd.f32 %v1840_v13, %v1424_v56  ;;  %v2066_v58 = vadd.f32 %v2006_v31, %v6936_v41  ;;  %v2319_v60 = vpop.f32.mrf.mxu0  ;;  %v5597_v41 = vld [vmem:[%s8580_s4 + $0xf0] sm:$0xff] }
 0x309   : > { %3834 = vmatpush.msra.mxu3 %v5597_v41  ;;  %v5637_v41 = vld [vmem:[%s8577_s1 + $0x110] sm:$0xff] }
 0x30a   : > { %v7459_v22 = vadd.f32 %v2316_v8, %v1900_v63  ;;  %v7461_v49 = vadd.f32 %v2482_v62, %v2066_v58  ;;  %v8818_v8 = vld [vmem:[#allocation32_spill] sm:$0xff]  ;;  %4144 = vmatpush.msra.mxu0 %v5637_v41 }
 0x30b   : > { %5484 = vmatmul.msk.f32.gmra.mxu0 %vm404_vm0, %v3035_v45  ;;  %v8819_v62 = vld [vmem:[#allocation80_spill] sm:$0xff] }
 0x30c   : > { %8816 = vst [vmem:[#allocation33_spill] sm:$0xff] %v7459_v22  ;;  %5404 = vmatmul.msk.f32.gmra.mxu2 %vm404_vm0, %v3033_v37  ;;  %5444 = vmatmul.msk.f32.gmra.mxu3 %vm404_vm0, %v3033_v37  ;;  %v2485_v33 = vpop.f32.mrf.mxu1  ;;  %v1425_v47 = vadd.f32 %v8819_v62, %v8818_v8  ;;  %v8820_v37 = vld [vmem:[#allocation82_spill] sm:$0xff]  ;;  %v5677_v8 = vld [vmem:[%s8580_s4 + $0x110] sm:$0xff] }
 0x30d   : > { %8817 = vst [vmem:[#allocation34_spill] sm:$0xff] %v7461_v49  ;;  %v3036_v49 = vld [vmem:[%s5834_s26 + $0x54] sm:$0xff]  ;;  %4310 = vmatpush.msra.mxu1 %v5677_v8  ;;  %v8825_v8 = vld [vmem:[#allocation38_spill] sm:$0xff] }
 0x30f   : > { %v1843_v56 = vpop.f32.mrf.mxu2  ;;  %v2009_v13 = vpop.f32.mrf.mxu3  ;;  %5524 = vmatmul.msk.f32.gmra.mxu1 %vm404_vm0, %v3035_v45 }
 0x310   : > { %v1901_v31 = vadd.f32 %v1843_v56, %v1425_v47  ;;  %v2067_v63 = vadd.f32 %v2009_v13, %v8820_v37  ;;  %v2322_v58 = vpop.f32.mrf.mxu0  ;;  %v3037_v37 = vld [vmem:[%s5834_s26 + $0x5c] sm:$0xff] }
 0x312   : > { %v7477_v22 = vadd.f32 %v2319_v60, %v1901_v31  ;;  %v7479_v28 = vadd.f32 %v2485_v33, %v2067_v63  ;;  %v8822_v60 = vld [vmem:[#allocation35_spill] sm:$0xff]  ;;  %v8823_v33 = vld [vmem:[#allocation81_spill] sm:$0xff] }
 0x313   : > { %5485 = vmatmul.msk.f32.gmra.mxu0 %vm404_vm0, %v3036_v49  ;;  %v1426_v62 = vadd.f32 %v8823_v33, %v8822_v60  ;;  %v8826_v60 = vld [vmem:[#allocation83_spill] sm:$0xff] }
 0x314   : > { %8821 = vst [vmem:[#allocation63_spill] sm:$0xff] %v7479_v28  ;;  %5405 = vmatmul.msk.f32.gmra.mxu2 %vm404_vm0, %v3034_v4  ;;  %5445 = vmatmul.msk.f32.gmra.mxu3 %vm404_vm0, %v3034_v4  ;;  %v2488_v11 = vpop.f32.mrf.mxu1  ;;  %v1427_v33 = vadd.f32 %v8826_v60, %v8825_v8  ;;  %v8828_v8 = vld [vmem:[#allocation41_spill] sm:$0xff]  ;;  %v8829_v60 = vld [vmem:[#allocation84_spill] sm:$0xff] }
 0x317   : > { %v1846_v47 = vpop.f32.mrf.mxu2  ;;  %v2012_v56 = vpop.f32.mrf.mxu3  ;;  %5525 = vmatmul.msk.f32.gmra.mxu1 %vm404_vm0, %v3036_v49 }
 0x318   : > { %v1902_v13 = vadd.f32 %v1846_v47, %v1426_v62  ;;  %v2068_v4 = vadd.f32 %v2012_v56, %v6970_v50  ;;  %v2325_v31 = vpop.f32.mrf.mxu0  ;;  %v3038_v56 = vld [vmem:[%s5834_s26 + $0x64] sm:$0xff] }
 0x31a   : > { %v7495_v63 = vadd.f32 %v2322_v58, %v1902_v13  ;;  %v7497_v28 = vadd.f32 %v2488_v11, %v2068_v4 }
 0x31b   : > { %5486 = vmatmul.msk.f32.gmra.mxu0 %vm404_vm0, %v3037_v37 }
 0x31c   : > { %8824 = vst [vmem:[#allocation36_spill] sm:$0xff] %v7497_v28  ;;  %5406 = vmatmul.msk.f32.gmra.mxu2 %vm404_vm0, %v3035_v45  ;;  %5446 = vmatmul.msk.f32.gmra.mxu3 %vm404_vm0, %v3035_v45  ;;  %v2491_v41 = vpop.f32.mrf.mxu1  ;;  %v1428_v28 = vadd.f32 %v8829_v60, %v8828_v8  ;;  %v8831_v8 = vld [vmem:[#allocation44_spill] sm:$0xff]  ;;  %v8832_v60 = vld [vmem:[#allocation85_spill] sm:$0xff] }
 0x31f   : > { %v1849_v62 = vpop.f32.mrf.mxu2  ;;  %v2015_v47 = vpop.f32.mrf.mxu3  ;;  %5526 = vmatmul.msk.f32.gmra.mxu1 %vm404_vm0, %v3037_v37 }
 0x320   : > { %v1903_v50 = vadd.f32 %v1849_v62, %v1427_v33  ;;  %v2069_v58 = vadd.f32 %v2015_v47, %v6981_v24  ;;  %v2328_v11 = vpop.f32.mrf.mxu0  ;;  %v3039_v47 = vld [vmem:[%s5834_s26 + $0x6c] sm:$0xff] }
 0x322   : > { %v7507_v13 = vadd.f32 %v2325_v31, %v1903_v50  ;;  %v7509_v4 = vadd.f32 %v2491_v41, %v2069_v58 }
 0x323   : > { %5487 = vmatmul.msk.f32.gmra.mxu0 %vm404_vm0, %v3038_v56 }
 0x324   : > { %8827 = vst [vmem:[#allocation37_spill] sm:$0xff] %v7509_v4  ;;  %5407 = vmatmul.msk.f32.gmra.mxu2 %vm404_vm0, %v3036_v49  ;;  %5447 = vmatmul.msk.f32.gmra.mxu3 %vm404_vm0, %v3036_v49  ;;  %v2494_v45 = vpop.f32.mrf.mxu1  ;;  %v1429_v4 = vadd.f32 %v8832_v60, %v8831_v8  ;;  %v8834_v8 = vld [vmem:[#allocation47_spill] sm:$0xff]  ;;  %v8835_v60 = vld [vmem:[#allocation86_spill] sm:$0xff] }
 0x327   : > { %v1852_v33 = vpop.f32.mrf.mxu2  ;;  %v2018_v62 = vpop.f32.mrf.mxu3  ;;  %5527 = vmatmul.msk.f32.gmra.mxu1 %vm404_vm0, %v3038_v56 }
 0x328   : > { %v1904_v24 = vadd.f32 %v1852_v33, %v1428_v28  ;;  %v2070_v31 = vadd.f32 %v2018_v62, %v6992_v57  ;;  %v2331_v41 = vpop.f32.mrf.mxu0  ;;  %v3040_v62 = vld [vmem:[%s5834_s26 + $0x74] sm:$0xff] }
 0x32a   : > { %v7519_v50 = vadd.f32 %v2328_v11, %v1904_v24  ;;  %v7521_v58 = vadd.f32 %v2494_v45, %v2070_v31 }
 0x32b   : > { %5488 = vmatmul.msk.f32.gmra.mxu0 %vm404_vm0, %v3039_v47 }
 0x32c   : > { %8830 = vst [vmem:[#allocation68_spill] sm:$0xff] %v7521_v58  ;;  %5408 = vmatmul.msk.f32.gmra.mxu2 %vm404_vm0, %v3037_v37  ;;  %5448 = vmatmul.msk.f32.gmra.mxu3 %vm404_vm0, %v3037_v37  ;;  %v2497_v49 = vpop.f32.mrf.mxu1  ;;  %v1430_v58 = vadd.f32 %v8835_v60, %v8834_v8  ;;  %v8838_v8 = vld [vmem:[#allocation50_spill] sm:$0xff]  ;;  %v8839_v60 = vld [vmem:[#allocation87_spill] sm:$0xff] }
 0x32f   : > { %v1855_v28 = vpop.f32.mrf.mxu2  ;;  %v2021_v33 = vpop.f32.mrf.mxu3  ;;  %5528 = vmatmul.msk.f32.gmra.mxu1 %vm404_vm0, %v3039_v47 }
 0x330   : > { %v1905_v57 = vadd.f32 %v1855_v28, %v1429_v4  ;;  %v2071_v11 = vadd.f32 %v2021_v33, %v7003_v36  ;;  %v2334_v45 = vpop.f32.mrf.mxu0  ;;  %v3041_v33 = vld [vmem:[%s5834_s26 + $0x7c] sm:$0xff] }
 0x332   : > { %v7531_v24 = vadd.f32 %v2331_v41, %v1905_v57  ;;  %v7533_v31 = vadd.f32 %v2497_v49, %v2071_v11 }
 0x333   : > { %5489 = vmatmul.msk.f32.gmra.mxu0 %vm404_vm0, %v3040_v62 }
 0x334   : > { %8833 = vst [vmem:[#allocation64_spill] sm:$0xff] %v7533_v31  ;;  %5409 = vmatmul.msk.f32.gmra.mxu2 %vm404_vm0, %v3038_v56  ;;  %5449 = vmatmul.msk.f32.gmra.mxu3 %vm404_vm0, %v3038_v56  ;;  %v2500_v37 = vpop.f32.mrf.mxu1  ;;  %v1431_v31 = vadd.f32 %v8839_v60, %v8838_v8  ;;  %v8843_v8 = vld [vmem:[#allocation53_spill] sm:$0xff]  ;;  %v8844_v60 = vld [vmem:[#allocation88_spill] sm:$0xff] }
 0x337   : > { %v1858_v4 = vpop.f32.mrf.mxu2  ;;  %v2024_v28 = vpop.f32.mrf.mxu3  ;;  %5529 = vmatmul.msk.f32.gmra.mxu1 %vm404_vm0, %v3040_v62 }
 0x338   : > { %v1906_v36 = vadd.f32 %v1858_v4, %v1430_v58  ;;  %v2072_v41 = vadd.f32 %v2024_v28, %v7014_v39  ;;  %v2337_v49 = vpop.f32.mrf.mxu0  ;;  %v8840_v28 = vld [vmem:[#allocation89_spill] sm:$0xff] }
 0x33a   : > { %v7543_v57 = vadd.f32 %v2334_v45, %v1906_v36  ;;  %v7545_v11 = vadd.f32 %v2500_v37, %v2072_v41  ;;  %v3042_v36 = vld [vmem:[%s5834_s26 + $0x84] sm:$0xff] }
 0x33b   : > { %5490 = vmatmul.msk.f32.gmra.mxu0 %vm404_vm0, %v3041_v33 }
 0x33c   : > { %8836 = vst [vmem:[#allocation66_spill] sm:$0xff] %v7543_v57  ;;  %5410 = vmatmul.msk.f32.gmra.mxu2 %vm404_vm0, %v3039_v47  ;;  %5450 = vmatmul.msk.f32.gmra.mxu3 %vm404_vm0, %v3039_v47  ;;  %v2503_v56 = vpop.f32.mrf.mxu1  ;;  %v1432_v57 = vadd.f32 %v8844_v60, %v8843_v8  ;;  %v8848_v8 = vld [vmem:[#allocation56_spill] sm:$0xff]  ;;  %v8849_v60 = vld [vmem:[#allocation90_spill] sm:$0xff] }
 0x33d   : > { %8837 = vst [vmem:[#allocation39_spill] sm:$0xff] %v7545_v11 }
 0x33f   : > { %v1861_v58 = vpop.f32.mrf.mxu2  ;;  %v2027_v4 = vpop.f32.mrf.mxu3  ;;  %5530 = vmatmul.msk.f32.gmra.mxu1 %vm404_vm0, %v3041_v33 }
 0x340   : > { %v1907_v39 = vadd.f32 %v1861_v58, %v1431_v31  ;;  %v2073_v45 = vadd.f32 %v2027_v4, %v8840_v28  ;;  %v2340_v37 = vpop.f32.mrf.mxu0  ;;  %v8845_v28 = vld [vmem:[#allocation91_spill] sm:$0xff] }
 0x342   : > { %v7555_v41 = vadd.f32 %v2337_v49, %v1907_v39  ;;  %v7557_v11 = vadd.f32 %v2503_v56, %v2073_v45  ;;  %v3043_v39 = vld [vmem:[%s5834_s26 + $0x8c] sm:$0xff] }
 0x343   : > { %5491 = vmatmul.msk.f32.gmra.mxu0 %vm404_vm0, %v3042_v36 }
 0x344   : > { %8841 = vst [vmem:[#allocation40_spill] sm:$0xff] %v7555_v41  ;;  %5411 = vmatmul.msk.f32.gmra.mxu2 %vm404_vm0, %v3040_v62  ;;  %5451 = vmatmul.msk.f32.gmra.mxu3 %vm404_vm0, %v3040_v62  ;;  %v2506_v47 = vpop.f32.mrf.mxu1  ;;  %v1433_v41 = vadd.f32 %v8849_v60, %v8848_v8  ;;  %v5596_v8 = vld [vmem:[%s8580_s4 + $0xe8] sm:$0xff] }
 0x345   : > { %8842 = vst [vmem:[#allocation71_spill] sm:$0xff] %v7557_v11  ;;  %3835 = vmatpush.msra.mxu3 %v5596_v8  ;;  %v5636_v8 = vld [vmem:[%s8577_s1 + $0x108] sm:$0xff] }
 0x346   : > { %4145 = vmatpush.msra.mxu0 %v5636_v8 }
 0x347   : > { %v1864_v31 = vpop.f32.mrf.mxu2  ;;  %v2030_v58 = vpop.f32.mrf.mxu3  ;;  %5531 = vmatmul.msk.f32.gmra.mxu1 %vm404_vm0, %v3042_v36 }
 0x348   : > { %v1908_v4 = vadd.f32 %v1864_v31, %v1432_v57  ;;  %v2074_v49 = vadd.f32 %v2030_v58, %v8845_v28  ;;  %v2343_v56 = vpop.f32.mrf.mxu0  ;;  %v8850_v28 = vld [vmem:[#allocation93_spill] sm:$0xff] }
 0x34a   : > { %v7567_v45 = vadd.f32 %v2340_v37, %v1908_v4  ;;  %v7569_v11 = vadd.f32 %v2506_v47, %v2074_v49  ;;  %v3044_v47 = vld [vmem:[%s5834_s26 + $0x94] sm:$0xff] }
 0x34b   : > { %5492 = vmatmul.msk.f32.gmra.mxu0 %vm404_vm0, %v3043_v39 }
 0x34c   : > { %8846 = vst [vmem:[#allocation65_spill] sm:$0xff] %v7567_v45  ;;  %5412 = vmatmul.msk.f32.gmra.mxu2 %vm404_vm0, %v3041_v33  ;;  %5452 = vmatmul.msk.f32.gmra.mxu3 %vm404_vm0, %v3041_v33  ;;  %v2509_v62 = vpop.f32.mrf.mxu1 }
 0x34d   : > { %8847 = vst [vmem:[#allocation69_spill] sm:$0xff] %v7569_v11 }
 0x34f   : > { %v1867_v57 = vpop.f32.mrf.mxu2  ;;  %v2033_v31 = vpop.f32.mrf.mxu3  ;;  %5532 = vmatmul.msk.f32.gmra.mxu1 %vm404_vm0, %v3043_v39 }
 0x350   : > { %v1909_v58 = vadd.f32 %v1867_v57, %v1433_v41  ;;  %v2075_v37 = vadd.f32 %v2033_v31, %v8850_v28  ;;  %v2346_v4 = vpop.f32.mrf.mxu0  ;;  %v5556_v41 = vld [vmem:[%s8577_s1 + $0xe8] sm:$0xff] }
 0x351   : > { %3669 = vmatpush.msra.mxu2 %v5556_v41 }
 0x352   : > { %v7579_v49 = vadd.f32 %v2343_v56, %v1909_v58  ;;  %v7581_v11 = vadd.f32 %v2509_v62, %v2075_v37  ;;  %v8853_v56 = vld [vmem:[#allocation59_spill] sm:$0xff]  ;;  %v8854_v62 = vld [vmem:[#allocation92_spill] sm:$0xff] }
 0x353   : > { %5493 = vmatmul.msk.f32.gmra.mxu0 %vm404_vm0, %v3044_v47  ;;  %v1434_v60 = vadd.f32 %v8854_v62, %v8853_v56  ;;  %v5676_v56 = vld [vmem:[%s8580_s4 + $0x108] sm:$0xff] }
 0x354   : > { %8851 = vst [vmem:[#allocation42_spill] sm:$0xff] %v7579_v49  ;;  %5413 = vmatmul.msk.f32.gmra.mxu2 %vm404_vm0, %v3042_v36  ;;  %5453 = vmatmul.msk.f32.gmra.mxu3 %vm404_vm0, %v3042_v36  ;;  %v2512_v33 = vpop.f32.mrf.mxu1  ;;  %v8855_v36 = vld [vmem:[#allocation95_spill] sm:$0xff] }
 0x355   : > { %8852 = vst [vmem:[#allocation43_spill] sm:$0xff] %v7581_v11  ;;  %v3045_v11 = vld [vmem:[%s5834_s26 + $0x9c] sm:$0xff]  ;;  %4311 = vmatpush.msra.mxu1 %v5676_v56 }
 0x357   : > { %v1870_v57 = vpop.f32.mrf.mxu2  ;;  %v2036_v31 = vpop.f32.mrf.mxu3  ;;  %5533 = vmatmul.msk.f32.gmra.mxu1 %vm404_vm0, %v3044_v47 }
 0x358   : > { %v1910_v58 = vadd.f32 %v1870_v57, %v1434_v60  ;;  %v2076_v28 = vadd.f32 %v2036_v31, %v8855_v36  ;;  %v2349_v37 = vpop.f32.mrf.mxu0 }
 0x35a   : > { %v7597_v49 = vadd.f32 %v2346_v4, %v1910_v58  ;;  %v7599_v45 = vadd.f32 %v2512_v33, %v2076_v28  ;;  %v8858_v4 = vld [vmem:[#allocation62_spill] sm:$0xff] }
 0x35b   : > { %5494 = vmatmul.msk.f32.gmra.mxu0 %vm404_vm0, %v3045_v11  ;;  %v8859_v33 = vld [vmem:[#allocation94_spill] sm:$0xff] }
 0x35c   : > { %8856 = vst [vmem:[#allocation3_spill] sm:$0xff] %v7597_v49  ;;  %5414 = vmatmul.msk.f32.gmra.mxu2 %vm404_vm0, %v3043_v39  ;;  %5454 = vmatmul.msk.f32.gmra.mxu3 %vm404_vm0, %v3043_v39  ;;  %v2515_v41 = vpop.f32.mrf.mxu1  ;;  %v1435_v62 = vadd.f32 %v8859_v33, %v8858_v4  ;;  %v8860_v39 = vld [vmem:[#allocation96_spill] sm:$0xff]  ;;  %v3046_v28 = vld [vmem:[%s5834_s26 + $0xa4] sm:$0xff] }
 0x35d   : > { %8857 = vst [vmem:[#allocation67_spill] sm:$0xff] %v7599_v45 }
 0x35f   : > { %v1873_v60 = vpop.f32.mrf.mxu2  ;;  %v2039_v57 = vpop.f32.mrf.mxu3  ;;  %5534 = vmatmul.msk.f32.gmra.mxu1 %vm404_vm0, %v3045_v11 }
 0x360   : > { %v1911_v31 = vadd.f32 %v1873_v60, %v1435_v62  ;;  %v2077_v58 = vadd.f32 %v2039_v57, %v8860_v39  ;;  %v3196_v36 = vpop.f32.mrf.mxu0  ;;  %v3047_v60 = vld [vmem:[%s5834_s26 + $0xac] sm:$0xff] }
 0x362   : > { %v7615_v45 = vadd.f32 %v2349_v37, %v1911_v31  ;;  %v7617_v49 = vadd.f32 %v2515_v41, %v2077_v58 }
 0x363   : > { %5495 = vmatmul.msk.f32.gmra.mxu0 %vm404_vm0, %v3046_v28 }
 0x364   : > { %5415 = vmatmul.msk.f32.gmra.mxu2 %vm404_vm0, %v3044_v47  ;;  %5455 = vmatmul.msk.f32.gmra.mxu3 %vm404_vm0, %v3044_v47  ;;  %v3362_v8 = vpop.f32.mrf.mxu1 }
 0x367   : > { %v2720_v56 = vpop.f32.mrf.mxu2  ;;  %v2886_v4 = vpop.f32.mrf.mxu3  ;;  %5535 = vmatmul.msk.f32.gmra.mxu1 %vm404_vm0, %v3046_v28 }
 0x368   : > { %v2828_v33 = vadd.f32 %v2720_v56, %v7092_v51  ;;  %v2994_v62 = vadd.f32 %v2886_v4, %v7094_v52  ;;  %v3199_v37 = vpop.f32.mrf.mxu0 }
 0x36a   : > { %v7626_v41 = vadd.f32 %v3196_v36, %v2828_v33  ;;  %v7628_v57 = vadd.f32 %v3362_v8, %v2994_v62  ;;  %v3048_v36 = vld [vmem:[%s5834_s26 + $0xb4] sm:$0xff] }
 0x36b   : > { %5496 = vmatmul.msk.f32.gmra.mxu0 %vm404_vm0, %v3047_v60 }
 0x36c   : > { %5416 = vmatmul.msk.f32.gmra.mxu2 %vm404_vm0, %v3045_v11  ;;  %5456 = vmatmul.msk.f32.gmra.mxu3 %vm404_vm0, %v3045_v11  ;;  %v3365_v47 = vpop.f32.mrf.mxu1 }
 0x36f   : > { %v2723_v31 = vpop.f32.mrf.mxu2  ;;  %v2889_v39 = vpop.f32.mrf.mxu3  ;;  %5536 = vmatmul.msk.f32.gmra.mxu1 %vm404_vm0, %v3047_v60 }
 0x370   : > { %v2829_v51 = vadd.f32 %v2723_v31, %v7107_v48  ;;  %v2995_v52 = vadd.f32 %v2889_v39, %v7109_v17  ;;  %v3202_v58 = vpop.f32.mrf.mxu0 }
 0x372   : > { %v7637_v8 = vadd.f32 %v3199_v37, %v2829_v51  ;;  %v7639_v56 = vadd.f32 %v3365_v47, %v2995_v52  ;;  %v3049_v37 = vld [vmem:[%s5834_s26 + $0xbc] sm:$0xff] }
 0x373   : > { %5497 = vmatmul.msk.f32.gmra.mxu0 %vm404_vm0, %v3048_v36 }
 0x374   : > { %5417 = vmatmul.msk.f32.gmra.mxu2 %vm404_vm0, %v3046_v28  ;;  %5457 = vmatmul.msk.f32.gmra.mxu3 %vm404_vm0, %v3046_v28  ;;  %v3368_v11 = vpop.f32.mrf.mxu1 }
 0x377   : > { %v2726_v4 = vpop.f32.mrf.mxu2  ;;  %v2892_v33 = vpop.f32.mrf.mxu3  ;;  %5537 = vmatmul.msk.f32.gmra.mxu1 %vm404_vm0, %v3048_v36 }
 0x378   : > { %v2830_v48 = vadd.f32 %v2726_v4, %v7122_v18  ;;  %v2996_v17 = vadd.f32 %v2892_v33, %v7124_v7  ;;  %v3205_v62 = vpop.f32.mrf.mxu0 }
 0x37a   : > { %v7648_v47 = vadd.f32 %v3202_v58, %v2830_v48  ;;  %v7650_v31 = vadd.f32 %v3368_v11, %v2996_v17  ;;  %v3050_v58 = vld [vmem:[%s5834_s26 + $0xc4] sm:$0xff] }
 0x37b   : > { %5498 = vmatmul.msk.f32.gmra.mxu0 %vm404_vm0, %v3049_v37 }
 0x37c   : > { %5418 = vmatmul.msk.f32.gmra.mxu2 %vm404_vm0, %v3047_v60  ;;  %5458 = vmatmul.msk.f32.gmra.mxu3 %vm404_vm0, %v3047_v60  ;;  %v3371_v28 = vpop.f32.mrf.mxu1 }
 0x37f   : > { %v2729_v39 = vpop.f32.mrf.mxu2  ;;  %v2895_v51 = vpop.f32.mrf.mxu3  ;;  %5538 = vmatmul.msk.f32.gmra.mxu1 %vm404_vm0, %v3049_v37 }
 0x380   : > { %v2831_v18 = vadd.f32 %v2729_v39, %v7137_v3  ;;  %v2997_v7 = vadd.f32 %v2895_v51, %v7139_v10  ;;  %v3208_v52 = vpop.f32.mrf.mxu0 }
 0x382   : > { %v7659_v11 = vadd.f32 %v3205_v62, %v2831_v18  ;;  %v7661_v4 = vadd.f32 %v3371_v28, %v2997_v7  ;;  %v3051_v62 = vld [vmem:[%s5834_s26 + $0xcc] sm:$0xff] }
 0x383   : > { %5499 = vmatmul.msk.f32.gmra.mxu0 %vm404_vm0, %v3050_v58 }
 0x384   : > { %5419 = vmatmul.msk.f32.gmra.mxu2 %vm404_vm0, %v3048_v36  ;;  %5459 = vmatmul.msk.f32.gmra.mxu3 %vm404_vm0, %v3048_v36  ;;  %v3374_v60 = vpop.f32.mrf.mxu1 }
 0x387   : > { %v2732_v33 = vpop.f32.mrf.mxu2  ;;  %v2898_v48 = vpop.f32.mrf.mxu3  ;;  %5539 = vmatmul.msk.f32.gmra.mxu1 %vm404_vm0, %v3050_v58 }
 0x388   : > { %v2832_v3 = vadd.f32 %v2732_v33, %v7152_v0  ;;  %v2998_v10 = vadd.f32 %v2898_v48, %v7154_v16  ;;  %v3211_v17 = vpop.f32.mrf.mxu0 }
 0x38a   : > { %v7670_v28 = vadd.f32 %v3208_v52, %v2832_v3  ;;  %v7672_v39 = vadd.f32 %v3374_v60, %v2998_v10  ;;  %v3052_v52 = vld [vmem:[%s5834_s26 + $0xd4] sm:$0xff] }
 0x38b   : > { %5500 = vmatmul.msk.f32.gmra.mxu0 %vm404_vm0, %v3051_v62 }
 0x38c   : > { %5420 = vmatmul.msk.f32.gmra.mxu2 %vm404_vm0, %v3049_v37  ;;  %5460 = vmatmul.msk.f32.gmra.mxu3 %vm404_vm0, %v3049_v37  ;;  %v3377_v36 = vpop.f32.mrf.mxu1 }
 0x38f   : > { %v2735_v51 = vpop.f32.mrf.mxu2  ;;  %v2901_v18 = vpop.f32.mrf.mxu3  ;;  %5540 = vmatmul.msk.f32.gmra.mxu1 %vm404_vm0, %v3051_v62 }
 0x390   : > { %v2833_v0 = vadd.f32 %v2735_v51, %v7167_v14  ;;  %v2999_v16 = vadd.f32 %v2901_v18, %v7169_v35  ;;  %v3214_v7 = vpop.f32.mrf.mxu0 }
 0x392   : > { %v7681_v60 = vadd.f32 %v3211_v17, %v2833_v0  ;;  %v7683_v33 = vadd.f32 %v3377_v36, %v2999_v16  ;;  %v3053_v17 = vld [vmem:[%s5834_s26 + $0xdc] sm:$0xff] }
 0x393   : > { %5501 = vmatmul.msk.f32.gmra.mxu0 %vm404_vm0, %v3052_v52 }
 0x394   : > { %5421 = vmatmul.msk.f32.gmra.mxu2 %vm404_vm0, %v3050_v58  ;;  %5461 = vmatmul.msk.f32.gmra.mxu3 %vm404_vm0, %v3050_v58  ;;  %v3380_v37 = vpop.f32.mrf.mxu1 }
 0x397   : > { %v2738_v48 = vpop.f32.mrf.mxu2  ;;  %v2904_v3 = vpop.f32.mrf.mxu3  ;;  %5541 = vmatmul.msk.f32.gmra.mxu1 %vm404_vm0, %v3052_v52 }
 0x398   : > { %v2834_v14 = vadd.f32 %v2738_v48, %v7182_v61  ;;  %v3000_v35 = vadd.f32 %v2904_v3, %v7184_v6  ;;  %v3217_v10 = vpop.f32.mrf.mxu0  ;;  %v5555_v61 = vld [vmem:[%s8577_s1 + $0xe0] sm:$0xff] }
 0x399   : > { %v5595_v6 = vld [vmem:[%s8580_s4 + $0xe0] sm:$0xff]  ;;  %3670 = vmatpush.msra.mxu2 %v5555_v61 }
 0x39a   : > { %v7692_v51 = vadd.f32 %v3214_v7, %v2834_v14  ;;  %v7694_v36 = vadd.f32 %v3380_v37, %v3000_v35  ;;  %3836 = vmatpush.msra.mxu3 %v5595_v6  ;;  %v3054_v37 = vld [vmem:[%s5834_s26 + $0xe4] sm:$0xff]  ;;  %v3055_v6 = vld [vmem:[%s5834_s26 + $0xec] sm:$0xff] }
 0x39b   : > { %5502 = vmatmul.msk.f32.gmra.mxu0 %vm404_vm0, %v3053_v17 }
 0x39c   : > { %5422 = vmatmul.msk.f32.gmra.mxu2 %vm404_vm0, %v3051_v62  ;;  %5462 = vmatmul.msk.f32.gmra.mxu3 %vm404_vm0, %v3051_v62  ;;  %v3383_v58 = vpop.f32.mrf.mxu1 }
 0x39f   : > { %v2741_v18 = vpop.f32.mrf.mxu2  ;;  %v2907_v0 = vpop.f32.mrf.mxu3  ;;  %5542 = vmatmul.msk.f32.gmra.mxu1 %vm404_vm0, %v3053_v17 }
 0x3a0   : > { %v2835_v16 = vadd.f32 %v2741_v18, %v7203_v2  ;;  %v3001_v7 = vadd.f32 %v2907_v0, %v7205_v19  ;;  %v3220_v62 = vpop.f32.mrf.mxu0  ;;  %v5635_v2 = vld [vmem:[%s8577_s1 + $0x100] sm:$0xff] }
 0x3a1   : > { %v5675_v19 = vld [vmem:[%s8580_s4 + $0x100] sm:$0xff]  ;;  %4146 = vmatpush.msra.mxu0 %v5635_v2 }
 0x3a2   : > { %v7709_v48 = vadd.f32 %v3217_v10, %v2835_v16  ;;  %v7711_v3 = vadd.f32 %v3383_v58, %v3001_v7  ;;  %4312 = vmatpush.msra.mxu1 %v5675_v19  ;;  %v3056_v19 = vld [vmem:[%s5834_s26 + $0xf4] sm:$0xff] }
 0x3a3   : > { %5503 = vmatmul.msk.f32.gmra.mxu0 %vm404_vm0, %v3054_v37 }
 0x3a4   : > { %5423 = vmatmul.msk.f32.gmra.mxu2 %vm404_vm0, %v3052_v52  ;;  %5463 = vmatmul.msk.f32.gmra.mxu3 %vm404_vm0, %v3052_v52  ;;  %v3386_v14 = vpop.f32.mrf.mxu1 }
 0x3a7   : > { %v2744_v35 = vpop.f32.mrf.mxu2  ;;  %v2910_v10 = vpop.f32.mrf.mxu3  ;;  %5543 = vmatmul.msk.f32.gmra.mxu1 %vm404_vm0, %v3054_v37 }
 0x3a8   : > { %v2836_v58 = vadd.f32 %v2744_v35, %v7224_v59  ;;  %v3002_v52 = vadd.f32 %v2910_v10, %v7226_v53  ;;  %v3223_v61 = vpop.f32.mrf.mxu0 }
 0x3aa   : > { %v7726_v18 = vadd.f32 %v3220_v62, %v2836_v58  ;;  %v7728_v0 = vadd.f32 %v3386_v14, %v3002_v52 }
 0x3ab   : > { %5504 = vmatmul.msk.f32.gmra.mxu0 %vm404_vm0, %v3055_v6 }
 0x3ac   : > { %5424 = vmatmul.msk.f32.gmra.mxu2 %vm404_vm0, %v3053_v17  ;;  %5464 = vmatmul.msk.f32.gmra.mxu3 %vm404_vm0, %v3053_v17  ;;  %v3389_v16 = vpop.f32.mrf.mxu1 }
 0x3af   : > { %v2747_v7 = vpop.f32.mrf.mxu2  ;;  %v2913_v2 = vpop.f32.mrf.mxu3  ;;  %5544 = vmatmul.msk.f32.gmra.mxu1 %vm404_vm0, %v3055_v6 }
 0x3b0   : > { %v2837_v59 = vadd.f32 %v2747_v7, %v7239_v15  ;;  %v3003_v53 = vadd.f32 %v2913_v2, %v7241_v44  ;;  %v3226_v62 = vpop.f32.mrf.mxu0 }
 0x3b2   : > { %v7737_v14 = vadd.f32 %v3223_v61, %v2837_v59  ;;  %v7739_v35 = vadd.f32 %v3389_v16, %v3003_v53  ;;  %v3057_v61 = vld [vmem:[%s5834_s26 + $0xfc] sm:$0xff] }
 0x3b3   : > { %5505 = vmatmul.msk.f32.gmra.mxu0 %vm404_vm0, %v3056_v19 }
 0x3b4   : > { %5425 = vmatmul.msk.f32.gmra.mxu2 %vm404_vm0, %v3054_v37  ;;  %5465 = vmatmul.msk.f32.gmra.mxu3 %vm404_vm0, %v3054_v37  ;;  %v3392_v17 = vpop.f32.mrf.mxu1 }
 0x3b7   : > { %v2750_v10 = vpop.f32.mrf.mxu2  ;;  %v2916_v58 = vpop.f32.mrf.mxu3  ;;  %5545 = vmatmul.msk.f32.gmra.mxu1 %vm404_vm0, %v3056_v19 }
 0x3b8   : > { %v2838_v15 = vadd.f32 %v2750_v10, %v7254_v25  ;;  %v3004_v44 = vadd.f32 %v2916_v58, %v7256_v12  ;;  %v3229_v52 = vpop.f32.mrf.mxu0 }
 0x3ba   : > { %v7748_v16 = vadd.f32 %v3226_v62, %v2838_v15  ;;  %v7750_v7 = vadd.f32 %v3392_v17, %v3004_v44  ;;  %v3058_v62 = vld [vmem:[%s5834_s26 + $0x104] sm:$0xff] }
 0x3bb   : > { %5506 = vmatmul.msk.f32.gmra.mxu0 %vm404_vm0, %v3057_v61 }
 0x3bc   : > { %5426 = vmatmul.msk.f32.gmra.mxu2 %vm404_vm0, %v3055_v6  ;;  %5466 = vmatmul.msk.f32.gmra.mxu3 %vm404_vm0, %v3055_v6  ;;  %v3395_v37 = vpop.f32.mrf.mxu1 }
 0x3bf   : > { %v2753_v2 = vpop.f32.mrf.mxu2  ;;  %v2919_v59 = vpop.f32.mrf.mxu3  ;;  %5546 = vmatmul.msk.f32.gmra.mxu1 %vm404_vm0, %v3057_v61 }
 0x3c0   : > { %v2839_v25 = vadd.f32 %v2753_v2, %v7269_v40  ;;  %v3005_v12 = vadd.f32 %v2919_v59, %v7271_v9  ;;  %v3232_v53 = vpop.f32.mrf.mxu0 }
 0x3c2   : > { %v7759_v17 = vadd.f32 %v3229_v52, %v2839_v25  ;;  %v7761_v10 = vadd.f32 %v3395_v37, %v3005_v12  ;;  %v3059_v52 = vld [vmem:[%s5834_s26 + $0x10c] sm:$0xff] }
 0x3c3   : > { %5507 = vmatmul.msk.f32.gmra.mxu0 %vm404_vm0, %v3058_v62 }
 0x3c4   : > { %5427 = vmatmul.msk.f32.gmra.mxu2 %vm404_vm0, %v3056_v19  ;;  %5467 = vmatmul.msk.f32.gmra.mxu3 %vm404_vm0, %v3056_v19  ;;  %v3398_v6 = vpop.f32.mrf.mxu1 }
 0x3c7   : > { %v2756_v58 = vpop.f32.mrf.mxu2  ;;  %v2922_v15 = vpop.f32.mrf.mxu3  ;;  %5547 = vmatmul.msk.f32.gmra.mxu1 %vm404_vm0, %v3058_v62 }
 0x3c8   : > { %v2840_v40 = vadd.f32 %v2756_v58, %v7284_v32  ;;  %v3006_v9 = vadd.f32 %v2922_v15, %v7286_v23  ;;  %v3235_v44 = vpop.f32.mrf.mxu0 }
 0x3ca   : > { %v7770_v37 = vadd.f32 %v3232_v53, %v2840_v40  ;;  %v7772_v2 = vadd.f32 %v3398_v6, %v3006_v9  ;;  %v3060_v53 = vld [vmem:[%s5834_s26 + $0x114] sm:$0xff] }
 0x3cb   : > { %5508 = vmatmul.msk.f32.gmra.mxu0 %vm404_vm0, %v3059_v52 }
 0x3cc   : > { %5428 = vmatmul.msk.f32.gmra.mxu2 %vm404_vm0, %v3057_v61  ;;  %5468 = vmatmul.msk.f32.gmra.mxu3 %vm404_vm0, %v3057_v61  ;;  %v3401_v19 = vpop.f32.mrf.mxu1 }
 0x3cf   : > { %v2759_v59 = vpop.f32.mrf.mxu2  ;;  %v2925_v25 = vpop.f32.mrf.mxu3  ;;  %5548 = vmatmul.msk.f32.gmra.mxu1 %vm404_vm0, %v3059_v52 }
 0x3d0   : > { %v2841_v32 = vadd.f32 %v2759_v59, %v7299_v1  ;;  %v3007_v23 = vadd.f32 %v2925_v25, %v7301_v26  ;;  %v3238_v12 = vpop.f32.mrf.mxu0 }
 0x3d2   : > { %v7781_v6 = vadd.f32 %v3235_v44, %v2841_v32  ;;  %v7783_v58 = vadd.f32 %v3401_v19, %v3007_v23  ;;  %v3061_v44 = vld [vmem:[%s5834_s26 + $0x11c] sm:$0xff] }
 0x3d3   : > { %5509 = vmatmul.msk.f32.gmra.mxu0 %vm404_vm0, %v3060_v53 }
 0x3d4   : > { %5429 = vmatmul.msk.f32.gmra.mxu2 %vm404_vm0, %v3058_v62  ;;  %5469 = vmatmul.msk.f32.gmra.mxu3 %vm404_vm0, %v3058_v62  ;;  %v3404_v61 = vpop.f32.mrf.mxu1 }
 0x3d7   : > { %v2762_v15 = vpop.f32.mrf.mxu2  ;;  %v2928_v40 = vpop.f32.mrf.mxu3  ;;  %5549 = vmatmul.msk.f32.gmra.mxu1 %vm404_vm0, %v3060_v53 }
 0x3d8   : > { %v2842_v1 = vadd.f32 %v2762_v15, %v7314_v38  ;;  %v3008_v26 = vadd.f32 %v2928_v40, %v7316_v20  ;;  %v3241_v9 = vpop.f32.mrf.mxu0 }
 0x3da   : > { %v7792_v19 = vadd.f32 %v3238_v12, %v2842_v1  ;;  %v7794_v59 = vadd.f32 %v3404_v61, %v3008_v26  ;;  %v3062_v12 = vld [vmem:[%s5834_s26 + $0x124] sm:$0xff] }
 0x3db   : > { %5510 = vmatmul.msk.f32.gmra.mxu0 %vm404_vm0, %v3061_v44 }
 0x3dc   : > { %5430 = vmatmul.msk.f32.gmra.mxu2 %vm404_vm0, %v3059_v52  ;;  %5470 = vmatmul.msk.f32.gmra.mxu3 %vm404_vm0, %v3059_v52  ;;  %v3407_v62 = vpop.f32.mrf.mxu1 }
 0x3df   : > { %v2765_v25 = vpop.f32.mrf.mxu2  ;;  %v2931_v32 = vpop.f32.mrf.mxu3  ;;  %5550 = vmatmul.msk.f32.gmra.mxu1 %vm404_vm0, %v3061_v44 }
 0x3e0   : > { %v2843_v38 = vadd.f32 %v2765_v25, %v7329_v42  ;;  %v3009_v20 = vadd.f32 %v2931_v32, %v7331_v29  ;;  %v3244_v23 = vpop.f32.mrf.mxu0 }
 0x3e2   : > { %v7803_v61 = vadd.f32 %v3241_v9, %v2843_v38  ;;  %v7805_v15 = vadd.f32 %v3407_v62, %v3009_v20  ;;  %v3063_v9 = vld [vmem:[%s5834_s26 + $0x12c] sm:$0xff] }
 0x3e3   : > { %5511 = vmatmul.msk.f32.gmra.mxu0 %vm404_vm0, %v3062_v12 }
 0x3e4   : > { %5431 = vmatmul.msk.f32.gmra.mxu2 %vm404_vm0, %v3060_v53  ;;  %5471 = vmatmul.msk.f32.gmra.mxu3 %vm404_vm0, %v3060_v53  ;;  %v3410_v52 = vpop.f32.mrf.mxu1 }
 0x3e7   : > { %v2768_v40 = vpop.f32.mrf.mxu2  ;;  %v2934_v1 = vpop.f32.mrf.mxu3  ;;  %5551 = vmatmul.msk.f32.gmra.mxu1 %vm404_vm0, %v3062_v12 }
 0x3e8   : > { %v2844_v42 = vadd.f32 %v2768_v40, %v7350_v5  ;;  %v3010_v29 = vadd.f32 %v2934_v1, %v7352_v34  ;;  %v3247_v26 = vpop.f32.mrf.mxu0 }
 0x3ea   : > { %v7814_v62 = vadd.f32 %v3244_v23, %v2844_v42  ;;  %v7816_v25 = vadd.f32 %v3410_v52, %v3010_v29  ;;  %v3064_v23 = vld [vmem:[%s5834_s26 + $0x134] sm:$0xff] }
 0x3eb   : > { %5512 = vmatmul.msk.f32.gmra.mxu0 %vm404_vm0, %v3063_v9 }
 0x3ec   : > { %5432 = vmatmul.msk.f32.gmra.mxu2 %vm404_vm0, %v3061_v44  ;;  %5472 = vmatmul.msk.f32.gmra.mxu3 %vm404_vm0, %v3061_v44  ;;  %v3413_v53 = vpop.f32.mrf.mxu1 }
 0x3ef   : > { %v2771_v32 = vpop.f32.mrf.mxu2  ;;  %v2937_v38 = vpop.f32.mrf.mxu3  ;;  %5552 = vmatmul.msk.f32.gmra.mxu1 %vm404_vm0, %v3063_v9 }
 0x3f0   : > { %v2845_v5 = vadd.f32 %v2771_v32, %v7372_v21  ;;  %v3011_v34 = vadd.f32 %v2937_v38, %v7374_v55  ;;  %v3250_v20 = vpop.f32.mrf.mxu0  ;;  %v8861_v21 = vld [vmem:[#allocation14_spill] sm:$0xff]  ;;  %v8862_v55 = vld [vmem:[#allocation17_spill] sm:$0xff] }
 0x3f2   : > { %v7825_v52 = vadd.f32 %v3247_v26, %v2845_v5  ;;  %v7827_v40 = vadd.f32 %v3413_v53, %v3011_v34  ;;  %v3065_v53 = vld [vmem:[%s5834_s26 + $0x13c] sm:$0xff] }
 0x3f3   : > { %5513 = vmatmul.msk.f32.gmra.mxu0 %vm404_vm0, %v3064_v23 }
 0x3f4   : > { %5433 = vmatmul.msk.f32.gmra.mxu2 %vm404_vm0, %v3062_v12  ;;  %5473 = vmatmul.msk.f32.gmra.mxu3 %vm404_vm0, %v3062_v12  ;;  %v3416_v44 = vpop.f32.mrf.mxu1 }
 0x3f7   : > { %v2774_v1 = vpop.f32.mrf.mxu2  ;;  %v2940_v42 = vpop.f32.mrf.mxu3  ;;  %5553 = vmatmul.msk.f32.gmra.mxu1 %vm404_vm0, %v3064_v23 }
 0x3f8   : > { %v2846_v29 = vadd.f32 %v2774_v1, %v8861_v21  ;;  %v3012_v32 = vadd.f32 %v2940_v42, %v8862_v55  ;;  %v3253_v26 = vpop.f32.mrf.mxu0  ;;  %v8864_v42 = vld [vmem:[#allocation19_spill] sm:$0xff] }
 0x3fa   : > { %v7836_v38 = vadd.f32 %v3250_v20, %v2846_v29  ;;  %v7838_v5 = vadd.f32 %v3416_v44, %v3012_v32  ;;  %v3982_v44 = vld [vmem:[%s5834_s26 + $0x26] sm:$0xff] }
 0x3fb   : > { %5514 = vmatmul.msk.f32.gmra.mxu0 %vm404_vm0, %v3065_v53  ;;  %v3506_v29 = vld [vmem:[%s5834_s26 + $0x25] sm:$0xff] }
 0x3fc   : > { %8863 = vst [vmem:[#allocation72_spill] sm:$0xff] %v7838_v5  ;;  %5434 = vmatmul.msk.f32.gmra.mxu2 %vm404_vm0, %v3063_v9  ;;  %5474 = vmatmul.msk.f32.gmra.mxu3 %vm404_vm0, %v3063_v9  ;;  %v3419_v12 = vpop.f32.mrf.mxu1 }
 0x3ff   : > { %v2777_v34 = vpop.f32.mrf.mxu2  ;;  %v2943_v23 = vpop.f32.mrf.mxu3  ;;  %5554 = vmatmul.msk.f32.gmra.mxu1 %vm404_vm0, %v3065_v53 }
 0x400   : > { %v2847_v1 = vadd.f32 %v2777_v34, %v7398_v30  ;;  %v3013_v21 = vadd.f32 %v2943_v23, %v8864_v42  ;;  %v3256_v20 = vpop.f32.mrf.mxu0  ;;  %v8866_v34 = vld [vmem:[#allocation22_spill] sm:$0xff]  ;;  %v8867_v42 = vld [vmem:[#allocation24_spill] sm:$0xff] }
 0x402   : > { %v7848_v55 = vadd.f32 %v3253_v26, %v2847_v1  ;;  %v7850_v32 = vadd.f32 %v3419_v12, %v3013_v21  ;;  %v3983_v12 = vld [vmem:[%s5834_s26 + $0x2e] sm:$0xff] }
 0x403   : > { %5639 = vmatmul.msk.f32.vlgmr.msra.gmra.mxu0 %vm404_vm0, %v3982_v44  ;;  %v3507_v1 = vld [vmem:[%s5834_s26 + $0x2d] sm:$0xff] }
 0x404   : > { %8865 = vst [vmem:[#allocation45_spill] sm:$0xff] %v7850_v32  ;;  %5559 = vmatmul.msk.f32.vlgmr.msra.gmra.mxu2 %vm404_vm0, %v3506_v29  ;;  %5599 = vmatmul.msk.f32.vlgmr.msra.gmra.mxu3 %vm404_vm0, %v3506_v29  ;;  %v3422_v9 = vpop.f32.mrf.mxu1 }
 0x407   : > { %v2780_v53 = vpop.f32.mrf.mxu2  ;;  %v2946_v30 = vpop.f32.mrf.mxu3  ;;  %5679 = vmatmul.msk.f32.vlgmr.msra.gmra.mxu1 %vm404_vm0, %v3982_v44 }
 0x408   : > { %v2848_v23 = vadd.f32 %v2780_v53, %v8866_v34  ;;  %v3014_v5 = vadd.f32 %v2946_v30, %v8867_v42  ;;  %v3259_v26 = vpop.f32.mrf.mxu0  ;;  %v8869_v34 = vld [vmem:[#allocation28_spill] sm:$0xff] }
 0x40a   : > { %v7860_v21 = vadd.f32 %v3256_v20, %v2848_v23  ;;  %v7862_v32 = vadd.f32 %v3422_v9, %v3014_v5  ;;  %v3984_v5 = vld [vmem:[%s5834_s26 + $0x36] sm:$0xff] }
 0x40b   : > { %5640 = vmatmul.msk.f32.gmra.mxu0 %vm404_vm0, %v3983_v12  ;;  %v3508_v9 = vld [vmem:[%s5834_s26 + $0x35] sm:$0xff] }
 0x40c   : > { %8868 = vst [vmem:[#allocation46_spill] sm:$0xff] %v7862_v32  ;;  %5560 = vmatmul.msk.f32.gmra.mxu2 %vm404_vm0, %v3507_v1  ;;  %5600 = vmatmul.msk.f32.gmra.mxu3 %vm404_vm0, %v3507_v1  ;;  %v3425_v44 = vpop.f32.mrf.mxu1 }
 0x40f   : > { %v2783_v29 = vpop.f32.mrf.mxu2  ;;  %v2949_v53 = vpop.f32.mrf.mxu3  ;;  %5680 = vmatmul.msk.f32.gmra.mxu1 %vm404_vm0, %v3983_v12 }
 0x410   : > { %v2849_v30 = vadd.f32 %v2783_v29, %v7423_v27  ;;  %v3015_v42 = vadd.f32 %v2949_v53, %v8869_v34  ;;  %v3262_v20 = vpop.f32.mrf.mxu0 }
 0x412   : > { %v7872_v23 = vadd.f32 %v3259_v26, %v2849_v30  ;;  %v7874_v32 = vadd.f32 %v3425_v44, %v3015_v42  ;;  %v3985_v44 = vld [vmem:[%s5834_s26 + $0x3e] sm:$0xff] }
 0x413   : > { %5641 = vmatmul.msk.f32.gmra.mxu0 %vm404_vm0, %v3984_v5  ;;  %v3509_v30 = vld [vmem:[%s5834_s26 + $0x3d] sm:$0xff] }
 0x414   : > { %5561 = vmatmul.msk.f32.gmra.mxu2 %vm404_vm0, %v3508_v9  ;;  %5601 = vmatmul.msk.f32.gmra.mxu3 %vm404_vm0, %v3508_v9  ;;  %v3428_v12 = vpop.f32.mrf.mxu1 }
 0x417   : > { %v2786_v1 = vpop.f32.mrf.mxu2  ;;  %v2952_v27 = vpop.f32.mrf.mxu3  ;;  %5681 = vmatmul.msk.f32.gmra.mxu1 %vm404_vm0, %v3984_v5 }
 0x418   : > { %v2850_v29 = vadd.f32 %v2786_v1, %v7435_v43  ;;  %v3016_v53 = vadd.f32 %v2952_v27, %v7437_v46  ;;  %v3265_v26 = vpop.f32.mrf.mxu0  ;;  %v8872_v1 = vld [vmem:[#allocation31_spill] sm:$0xff] }
 0x41a   : > { %v7884_v34 = vadd.f32 %v3262_v20, %v2850_v29  ;;  %v7886_v42 = vadd.f32 %v3428_v12, %v3016_v53  ;;  %v3986_v12 = vld [vmem:[%s5834_s26 + $0x46] sm:$0xff] }
 0x41b   : > { %5642 = vmatmul.msk.f32.gmra.mxu0 %vm404_vm0, %v3985_v44  ;;  %v3510_v29 = vld [vmem:[%s5834_s26 + $0x45] sm:$0xff] }
 0x41c   : > { %8870 = vst [vmem:[#allocation70_spill] sm:$0xff] %v7884_v34  ;;  %5562 = vmatmul.msk.f32.gmra.mxu2 %vm404_vm0, %v3509_v30  ;;  %5602 = vmatmul.msk.f32.gmra.mxu3 %vm404_vm0, %v3509_v30  ;;  %v3431_v5 = vpop.f32.mrf.mxu1 }
 0x41d   : > { %8871 = vst [vmem:[#allocation73_spill] sm:$0xff] %v7886_v42 }
 0x41f   : > { %v2789_v9 = vpop.f32.mrf.mxu2  ;;  %v2955_v43 = vpop.f32.mrf.mxu3  ;;  %5682 = vmatmul.msk.f32.gmra.mxu1 %vm404_vm0, %v3985_v44 }
 0x420   : > { %v2851_v46 = vadd.f32 %v2789_v9, %v7447_v54  ;;  %v3017_v27 = vadd.f32 %v2955_v43, %v8872_v1  ;;  %v3268_v20 = vpop.f32.mrf.mxu0  ;;  %v8874_v9 = vld [vmem:[#allocation33_spill] sm:$0xff]  ;;  %v8875_v1 = vld [vmem:[#allocation34_spill] sm:$0xff] }
 0x422   : > { %v7896_v53 = vadd.f32 %v3265_v26, %v2851_v46  ;;  %v7898_v42 = vadd.f32 %v3431_v5, %v3017_v27  ;;  %v3987_v5 = vld [vmem:[%s5834_s26 + $0x4e] sm:$0xff] }
 0x423   : > { %5643 = vmatmul.msk.f32.gmra.mxu0 %vm404_vm0, %v3986_v12  ;;  %v3511_v46 = vld [vmem:[%s5834_s26 + $0x4d] sm:$0xff] }
 0x424   : > { %8873 = vst [vmem:[#allocation48_spill] sm:$0xff] %v7898_v42  ;;  %5563 = vmatmul.msk.f32.gmra.mxu2 %vm404_vm0, %v3510_v29  ;;  %5603 = vmatmul.msk.f32.gmra.mxu3 %vm404_vm0, %v3510_v29  ;;  %v3434_v44 = vpop.f32.mrf.mxu1 }
 0x427   : > { %v2792_v30 = vpop.f32.mrf.mxu2  ;;  %v2958_v54 = vpop.f32.mrf.mxu3  ;;  %5683 = vmatmul.msk.f32.gmra.mxu1 %vm404_vm0, %v3986_v12 }
 0x428   : > { %v2852_v43 = vadd.f32 %v2792_v30, %v8874_v9  ;;  %v3018_v34 = vadd.f32 %v2958_v54, %v8875_v1  ;;  %v3271_v26 = vpop.f32.mrf.mxu0  ;;  %v8877_v9 = vld [vmem:[#allocation63_spill] sm:$0xff] }
 0x42a   : > { %v7908_v27 = vadd.f32 %v3268_v20, %v2852_v43  ;;  %v7910_v42 = vadd.f32 %v3434_v44, %v3018_v34  ;;  %v3988_v34 = vld [vmem:[%s5834_s26 + $0x56] sm:$0xff] }
 0x42b   : > { %5644 = vmatmul.msk.f32.gmra.mxu0 %vm404_vm0, %v3987_v5  ;;  %v3512_v44 = vld [vmem:[%s5834_s26 + $0x55] sm:$0xff] }
 0x42c   : > { %8876 = vst [vmem:[#allocation49_spill] sm:$0xff] %v7910_v42  ;;  %5564 = vmatmul.msk.f32.gmra.mxu2 %vm404_vm0, %v3511_v46  ;;  %5604 = vmatmul.msk.f32.gmra.mxu3 %vm404_vm0, %v3511_v46  ;;  %v3437_v12 = vpop.f32.mrf.mxu1 }
 0x42f   : > { %v2795_v29 = vpop.f32.mrf.mxu2  ;;  %v2961_v30 = vpop.f32.mrf.mxu3  ;;  %5684 = vmatmul.msk.f32.gmra.mxu1 %vm404_vm0, %v3987_v5 }
 0x430   : > { %v2853_v54 = vadd.f32 %v2795_v29, %v7477_v22  ;;  %v3019_v1 = vadd.f32 %v2961_v30, %v8877_v9  ;;  %v3274_v20 = vpop.f32.mrf.mxu0  ;;  %v8879_v30 = vld [vmem:[#allocation36_spill] sm:$0xff] }
 0x432   : > { %v7920_v43 = vadd.f32 %v3271_v26, %v2853_v54  ;;  %v7922_v42 = vadd.f32 %v3437_v12, %v3019_v1  ;;  %v3989_v12 = vld [vmem:[%s5834_s26 + $0x5e] sm:$0xff] }
 0x433   : > { %5645 = vmatmul.msk.f32.gmra.mxu0 %vm404_vm0, %v3988_v34  ;;  %v3513_v54 = vld [vmem:[%s5834_s26 + $0x5d] sm:$0xff] }
 0x434   : > { %8878 = vst [vmem:[#allocation7_spill] sm:$0xff] %v7922_v42  ;;  %5565 = vmatmul.msk.f32.gmra.mxu2 %vm404_vm0, %v3512_v44  ;;  %5605 = vmatmul.msk.f32.gmra.mxu3 %vm404_vm0, %v3512_v44  ;;  %v3440_v5 = vpop.f32.mrf.mxu1 }
 0x437   : > { %v2798_v46 = vpop.f32.mrf.mxu2  ;;  %v2964_v22 = vpop.f32.mrf.mxu3  ;;  %5685 = vmatmul.msk.f32.gmra.mxu1 %vm404_vm0, %v3988_v34 }
 0x438   : > { %v2854_v29 = vadd.f32 %v2798_v46, %v7495_v63  ;;  %v3020_v9 = vadd.f32 %v2964_v22, %v8879_v30  ;;  %v3277_v26 = vpop.f32.mrf.mxu0  ;;  %v8882_v22 = vld [vmem:[#allocation37_spill] sm:$0xff] }
 0x43a   : > { %v7932_v1 = vadd.f32 %v3274_v20, %v2854_v29  ;;  %v7934_v42 = vadd.f32 %v3440_v5, %v3020_v9  ;;  %v3990_v5 = vld [vmem:[%s5834_s26 + $0x66] sm:$0xff] }
 0x43b   : > { %5646 = vmatmul.msk.f32.gmra.mxu0 %vm404_vm0, %v3989_v12  ;;  %v3514_v29 = vld [vmem:[%s5834_s26 + $0x65] sm:$0xff] }
 0x43c   : > { %8880 = vst [vmem:[#allocation2_spill] sm:$0xff] %v7932_v1  ;;  %5566 = vmatmul.msk.f32.gmra.mxu2 %vm404_vm0, %v3513_v54  ;;  %5606 = vmatmul.msk.f32.gmra.mxu3 %vm404_vm0, %v3513_v54  ;;  %v3443_v34 = vpop.f32.mrf.mxu1 }
 0x43d   : > { %8881 = vst [vmem:[#allocation5_spill] sm:$0xff] %v7934_v42 }
 0x43f   : > { %v2801_v44 = vpop.f32.mrf.mxu2  ;;  %v2967_v63 = vpop.f32.mrf.mxu3  ;;  %5686 = vmatmul.msk.f32.gmra.mxu1 %vm404_vm0, %v3989_v12 }
 0x440   : > { %v2855_v46 = vadd.f32 %v2801_v44, %v7507_v13  ;;  %v3021_v30 = vadd.f32 %v2967_v63, %v8882_v22  ;;  %v3280_v20 = vpop.f32.mrf.mxu0  ;;  %v8885_v63 = vld [vmem:[#allocation68_spill] sm:$0xff] }
 0x442   : > { %v7944_v9 = vadd.f32 %v3277_v26, %v2855_v46  ;;  %v7946_v42 = vadd.f32 %v3443_v34, %v3021_v30  ;;  %v3991_v34 = vld [vmem:[%s5834_s26 + $0x6e] sm:$0xff] }
 0x443   : > { %5647 = vmatmul.msk.f32.gmra.mxu0 %vm404_vm0, %v3990_v5  ;;  %v3515_v46 = vld [vmem:[%s5834_s26 + $0x6d] sm:$0xff] }
 0x444   : > { %8883 = vst [vmem:[#allocation51_spill] sm:$0xff] %v7944_v9  ;;  %5567 = vmatmul.msk.f32.gmra.mxu2 %vm404_vm0, %v3514_v29  ;;  %5607 = vmatmul.msk.f32.gmra.mxu3 %vm404_vm0, %v3514_v29  ;;  %v3446_v12 = vpop.f32.mrf.mxu1 }
 0x445   : > { %8884 = vst [vmem:[#allocation52_spill] sm:$0xff] %v7946_v42 }
 0x447   : > { %v2804_v54 = vpop.f32.mrf.mxu2  ;;  %v2970_v13 = vpop.f32.mrf.mxu3  ;;  %5687 = vmatmul.msk.f32.gmra.mxu1 %vm404_vm0, %v3990_v5 }
 0x448   : > { %v2856_v44 = vadd.f32 %v2804_v54, %v7519_v50  ;;  %v3022_v22 = vadd.f32 %v2970_v13, %v8885_v63  ;;  %v3283_v26 = vpop.f32.mrf.mxu0  ;;  %v8888_v13 = vld [vmem:[#allocation64_spill] sm:$0xff] }
 0x44a   : > { %v7956_v30 = vadd.f32 %v3280_v20, %v2856_v44  ;;  %v7958_v42 = vadd.f32 %v3446_v12, %v3022_v22  ;;  %v3992_v12 = vld [vmem:[%s5834_s26 + $0x76] sm:$0xff] }
 0x44b   : > { %5648 = vmatmul.msk.f32.gmra.mxu0 %vm404_vm0, %v3991_v34  ;;  %v3516_v44 = vld [vmem:[%s5834_s26 + $0x75] sm:$0xff] }
 0x44c   : > { %8886 = vst [vmem:[#allocation9_spill] sm:$0xff] %v7956_v30  ;;  %5568 = vmatmul.msk.f32.gmra.mxu2 %vm404_vm0, %v3515_v46  ;;  %5608 = vmatmul.msk.f32.gmra.mxu3 %vm404_vm0, %v3515_v46  ;;  %v3449_v5 = vpop.f32.mrf.mxu1 }
 0x44d   : > { %8887 = vst [vmem:[#allocation4_spill] sm:$0xff] %v7958_v42 }
 0x44f   : > { %v2807_v29 = vpop.f32.mrf.mxu2  ;;  %v2973_v50 = vpop.f32.mrf.mxu3  ;;  %5688 = vmatmul.msk.f32.gmra.mxu1 %vm404_vm0, %v3991_v34 }
 0x450   : > { %v2857_v54 = vadd.f32 %v2807_v29, %v7531_v24  ;;  %v3023_v63 = vadd.f32 %v2973_v50, %v8888_v13  ;;  %v3286_v20 = vpop.f32.mrf.mxu0  ;;  %v8891_v29 = vld [vmem:[#allocation66_spill] sm:$0xff]  ;;  %v8892_v13 = vld [vmem:[#allocation39_spill] sm:$0xff] }
 0x452   : > { %v7968_v22 = vadd.f32 %v3283_v26, %v2857_v54  ;;  %v7970_v42 = vadd.f32 %v3449_v5, %v3023_v63  ;;  %v3993_v5 = vld [vmem:[%s5834_s26 + $0x7e] sm:$0xff] }
 0x453   : > { %5649 = vmatmul.msk.f32.gmra.mxu0 %vm404_vm0, %v3992_v12  ;;  %v3517_v54 = vld [vmem:[%s5834_s26 + $0x7d] sm:$0xff] }
 0x454   : > { %8889 = vst [vmem:[#allocation74_spill] sm:$0xff] %v7968_v22  ;;  %5569 = vmatmul.msk.f32.gmra.mxu2 %vm404_vm0, %v3516_v44  ;;  %5609 = vmatmul.msk.f32.gmra.mxu3 %vm404_vm0, %v3516_v44  ;;  %v3452_v34 = vpop.f32.mrf.mxu1 }
 0x455   : > { %8890 = vst [vmem:[#allocation54_spill] sm:$0xff] %v7970_v42 }
 0x457   : > { %v2810_v46 = vpop.f32.mrf.mxu2  ;;  %v2976_v24 = vpop.f32.mrf.mxu3  ;;  %5689 = vmatmul.msk.f32.gmra.mxu1 %vm404_vm0, %v3992_v12 }
 0x458   : > { %v2858_v50 = vadd.f32 %v2810_v46, %v8891_v29  ;;  %v3024_v30 = vadd.f32 %v2976_v24, %v8892_v13  ;;  %v3289_v26 = vpop.f32.mrf.mxu0  ;;  %v8895_v24 = vld [vmem:[#allocation40_spill] sm:$0xff]  ;;  %v8896_v13 = vld [vmem:[#allocation71_spill] sm:$0xff] }
 0x45a   : > { %v7980_v63 = vadd.f32 %v3286_v20, %v2858_v50  ;;  %v7982_v42 = vadd.f32 %v3452_v34, %v3024_v30  ;;  %v3994_v30 = vld [vmem:[%s5834_s26 + $0x86] sm:$0xff] }
 0x45b   : > { %5650 = vmatmul.msk.f32.gmra.mxu0 %vm404_vm0, %v3993_v5  ;;  %v3518_v34 = vld [vmem:[%s5834_s26 + $0x85] sm:$0xff] }
 0x45c   : > { %8893 = vst [vmem:[#allocation55_spill] sm:$0xff] %v7980_v63  ;;  %5570 = vmatmul.msk.f32.gmra.mxu2 %vm404_vm0, %v3517_v54  ;;  %5610 = vmatmul.msk.f32.gmra.mxu3 %vm404_vm0, %v3517_v54  ;;  %v3455_v12 = vpop.f32.mrf.mxu1 }
 0x45d   : > { %8894 = vst [vmem:[#allocation11_spill] sm:$0xff] %v7982_v42 }
 0x45f   : > { %v2813_v44 = vpop.f32.mrf.mxu2  ;;  %v2979_v46 = vpop.f32.mrf.mxu3  ;;  %5690 = vmatmul.msk.f32.gmra.mxu1 %vm404_vm0, %v3993_v5 }
 0x460   : > { %v2859_v29 = vadd.f32 %v2813_v44, %v8895_v24  ;;  %v3025_v22 = vadd.f32 %v2979_v46, %v8896_v13  ;;  %v3292_v20 = vpop.f32.mrf.mxu0  ;;  %v8899_v46 = vld [vmem:[#allocation65_spill] sm:$0xff] }
 0x461   : > { %v8900_v13 = vld [vmem:[#allocation69_spill] sm:$0xff] }
 0x462   : > { %v7992_v50 = vadd.f32 %v3289_v26, %v2859_v29  ;;  %v7994_v42 = vadd.f32 %v3455_v12, %v3025_v22  ;;  %v3995_v22 = vld [vmem:[%s5834_s26 + $0x8e] sm:$0xff] }
 0x463   : > { %5651 = vmatmul.msk.f32.gmra.mxu0 %vm404_vm0, %v3994_v30  ;;  %v3519_v12 = vld [vmem:[%s5834_s26 + $0x8d] sm:$0xff] }
 0x464   : > { %8897 = vst [vmem:[#allocation6_spill] sm:$0xff] %v7992_v50  ;;  %5571 = vmatmul.msk.f32.gmra.mxu2 %vm404_vm0, %v3518_v34  ;;  %5611 = vmatmul.msk.f32.gmra.mxu3 %vm404_vm0, %v3518_v34  ;;  %v3458_v5 = vpop.f32.mrf.mxu1 }
 0x465   : > { %8898 = vst [vmem:[#allocation75_spill] sm:$0xff] %v7994_v42 }
 0x467   : > { %v2816_v54 = vpop.f32.mrf.mxu2  ;;  %v2982_v44 = vpop.f32.mrf.mxu3  ;;  %5691 = vmatmul.msk.f32.gmra.mxu1 %vm404_vm0, %v3994_v30 }
 0x468   : > { %v2860_v24 = vadd.f32 %v2816_v54, %v8899_v46  ;;  %v3026_v63 = vadd.f32 %v2982_v44, %v8900_v13  ;;  %v3295_v26 = vpop.f32.mrf.mxu0  ;;  %v8903_v44 = vld [vmem:[#allocation42_spill] sm:$0xff]  ;;  %v8904_v13 = vld [vmem:[#allocation43_spill] sm:$0xff] }
 0x46a   : > { %v8004_v29 = vadd.f32 %v3292_v20, %v2860_v24  ;;  %v8006_v42 = vadd.f32 %v3458_v5, %v3026_v63  ;;  %v3996_v63 = vld [vmem:[%s5834_s26 + $0x96] sm:$0xff] }
 0x46b   : > { %5652 = vmatmul.msk.f32.gmra.mxu0 %vm404_vm0, %v3995_v22  ;;  %v3520_v5 = vld [vmem:[%s5834_s26 + $0x95] sm:$0xff] }
 0x46c   : > { %8901 = vst [vmem:[#allocation57_spill] sm:$0xff] %v8004_v29  ;;  %5572 = vmatmul.msk.f32.gmra.mxu2 %vm404_vm0, %v3519_v12  ;;  %5612 = vmatmul.msk.f32.gmra.mxu3 %vm404_vm0, %v3519_v12  ;;  %v3461_v30 = vpop.f32.mrf.mxu1 }
 0x46d   : > { %8902 = vst [vmem:[#allocation58_spill] sm:$0xff] %v8006_v42 }
 0x46f   : > { %v2819_v34 = vpop.f32.mrf.mxu2  ;;  %v2985_v54 = vpop.f32.mrf.mxu3  ;;  %5692 = vmatmul.msk.f32.gmra.mxu1 %vm404_vm0, %v3995_v22 }
 0x470   : > { %v2861_v46 = vadd.f32 %v2819_v34, %v8903_v44  ;;  %v3027_v50 = vadd.f32 %v2985_v54, %v8904_v13  ;;  %v3298_v20 = vpop.f32.mrf.mxu0  ;;  %v8907_v54 = vld [vmem:[#allocation3_spill] sm:$0xff] }
 0x471   : > { %v8908_v13 = vld [vmem:[#allocation67_spill] sm:$0xff] }
 0x472   : > { %v8016_v24 = vadd.f32 %v3295_v26, %v2861_v46  ;;  %v8018_v42 = vadd.f32 %v3461_v30, %v3027_v50  ;;  %v3997_v50 = vld [vmem:[%s5834_s26 + $0x9e] sm:$0xff] }
 0x473   : > { %5653 = vmatmul.msk.f32.gmra.mxu0 %vm404_vm0, %v3996_v63  ;;  %v3521_v30 = vld [vmem:[%s5834_s26 + $0x9d] sm:$0xff] }
 0x474   : > { %8905 = vst [vmem:[#allocation13_spill] sm:$0xff] %v8016_v24  ;;  %5573 = vmatmul.msk.f32.gmra.mxu2 %vm404_vm0, %v3520_v5  ;;  %5613 = vmatmul.msk.f32.gmra.mxu3 %vm404_vm0, %v3520_v5  ;;  %v3464_v22 = vpop.f32.mrf.mxu1 }
 0x475   : > { %8906 = vst [vmem:[#allocation8_spill] sm:$0xff] %v8018_v42 }
 0x477   : > { %v2822_v12 = vpop.f32.mrf.mxu2  ;;  %v2988_v34 = vpop.f32.mrf.mxu3  ;;  %5693 = vmatmul.msk.f32.gmra.mxu1 %vm404_vm0, %v3996_v63 }
 0x478   : > { %v2862_v44 = vadd.f32 %v2822_v12, %v8907_v54  ;;  %v3028_v29 = vadd.f32 %v2988_v34, %v8908_v13  ;;  %v3301_v26 = vpop.f32.mrf.mxu0 }
 0x47a   : > { %v8028_v46 = vadd.f32 %v3298_v20, %v2862_v44  ;;  %v8030_v42 = vadd.f32 %v3464_v22, %v3028_v29  ;;  %v3998_v20 = vld [vmem:[%s5834_s26 + $0xa6] sm:$0xff] }
 0x47b   : > { %5654 = vmatmul.msk.f32.gmra.mxu0 %vm404_vm0, %v3997_v50  ;;  %v3522_v29 = vld [vmem:[%s5834_s26 + $0xa5] sm:$0xff] }
 0x47c   : > { %8909 = vst [vmem:[#allocation76_spill] sm:$0xff] %v8028_v46  ;;  %5574 = vmatmul.msk.f32.gmra.mxu2 %vm404_vm0, %v3521_v30  ;;  %5614 = vmatmul.msk.f32.gmra.mxu3 %vm404_vm0, %v3521_v30  ;;  %v3467_v63 = vpop.f32.mrf.mxu1 }
 0x47d   : > { %8910 = vst [vmem:[#allocation60_spill] sm:$0xff] %v8030_v42 }
 0x47f   : > { %v2825_v5 = vpop.f32.mrf.mxu2  ;;  %v2991_v12 = vpop.f32.mrf.mxu3  ;;  %5694 = vmatmul.msk.f32.gmra.mxu1 %vm404_vm0, %v3997_v50 }
 0x480   : > { %v2863_v34 = vadd.f32 %v2825_v5, %v7615_v45  ;;  %v3029_v54 = vadd.f32 %v2991_v12, %v7617_v49  ;;  %v4148_v13 = vpop.f32.mrf.mxu0 }
 0x482   : > { %v8040_v22 = vadd.f32 %v3301_v26, %v2863_v34  ;;  %v8042_v44 = vadd.f32 %v3467_v63, %v3029_v54  ;;  %v8053_v26 = vld [vmem:[%s8578_s2] ss:$0 sm:$0xff]  ;;  %v3999_v34 = vld [vmem:[%s5834_s26 + $0xae] sm:$0xff] }
 0x483   : > { %5655 = vmatmul.msk.f32.gmra.mxu0 %vm404_vm0, %v3998_v20  ;;  %v8058_v63 = vld [vmem:[%s8581_s5] ss:$0 sm:$0xff]  ;;  %v3523_v54 = vld [vmem:[%s5834_s26 + $0xad] sm:$0xff] }
 0x484   : > { %8911 = vst [vmem:[#allocation61_spill] sm:$0xff] %v8040_v22  ;;  %5575 = vmatmul.msk.f32.gmra.mxu2 %vm404_vm0, %v3522_v29  ;;  %5615 = vmatmul.msk.f32.gmra.mxu3 %vm404_vm0, %v3522_v29  ;;  %v4314_v50 = vpop.f32.mrf.mxu1  ;;  %v4000_v22 = vld [vmem:[%s5834_s26 + $0xb6] sm:$0xff] }
 0x485   : > { %8912 = vst [vmem:[#allocation10_spill] sm:$0xff] %v8042_v44 }
 0x487   : > { %v3672_v45 = vpop.f32.mrf.mxu2  ;;  %v3838_v30 = vpop.f32.mrf.mxu3  ;;  %5695 = vmatmul.msk.f32.gmra.mxu1 %vm404_vm0, %v3998_v20  ;;  %v8070_v20 = vld [vmem:[%s8582_s6] ss:$0 sm:$0xff] }
 0x488   : > { %v3780_v49 = vadd.f32 %v3672_v45, %v7626_v41  ;;  %v3946_v5 = vadd.f32 %v3838_v30, %v7628_v57  ;;  %v4151_v12 = vpop.f32.mrf.mxu0  ;;  %v8065_v41 = vld [vmem:[%s8579_s3] ss:$0 sm:$0xff] }
 0x48a   : > { %v4256_v29 = vadd.f32 %v4148_v13, %v3780_v49  ;;  %v4422_v57 = vadd.f32 %v4314_v50, %v3946_v5 }
 0x48b   : > { %5656 = vmatmul.msk.f32.gmra.mxu0 %vm404_vm0, %v3999_v34 }
 0x48c   : > { %v4463_v45 = vmul.f32 %v8053_v26, %v4256_v29  ;;  %v4687_v30 = vmul.f32 %v8058_v63, %v4422_v57  ;;  %5576 = vmatmul.msk.f32.gmra.mxu2 %vm404_vm0, %v3523_v54  ;;  %5616 = vmatmul.msk.f32.gmra.mxu3 %vm404_vm0, %v3523_v54  ;;  %v4317_v13 = vpop.f32.mrf.mxu1 }
 0x48e   : > { %v4502_v50 = vadd.f32 %v8065_v41, %v4463_v45  ;;  %v4726_v49 = vadd.f32 %v8070_v20, %v4687_v30  ;;  %v3524_v30 = vld [vmem:[%s5834_s26 + $0xb5] sm:$0xff] }
 0x48f   : > { %v3675_v5 = vpop.f32.mrf.mxu2  ;;  %v3841_v44 = vpop.f32.mrf.mxu3  ;;  %5696 = vmatmul.msk.f32.gmra.mxu1 %vm404_vm0, %v3999_v34 }
 0x490   : > { %vm4538_vm1 = vcmp.ge.f32.partialorder %v4502_v50, 0.0  ;;  %v4574_v29 = vmul.f32 0.0, %v4502_v50  ;;  %vm4762_vm2 = vcmp.ge.f32.partialorder %v4726_v49, 0.0  ;;  %v4798_v54 = vmul.f32 0.1, %v4726_v49  ;;  %v4154_v57 = vpop.f32.mrf.mxu0 }
 0x491   : > { %v3781_v34 = vadd.f32 %v3675_v5, %v7637_v8  ;;  %v3947_v45 = vadd.f32 %v3841_v44, %v7639_v56  ;;  %v4001_v5 = vld [vmem:[%s5834_s26 + $0xbe] sm:$0xff] }
 0x492   : > { %v4610_v42 = vsel %vm4538_vm1, %v4502_v50, %v4574_v29  ;;  %v4834_v46 = vsel %vm4762_vm2, %v4726_v49, %v4798_v54  ;;  %v3525_v29 = vld [vmem:[%s5834_s26 + $0xbd] sm:$0xff] }
 0x493   : > { %4646 = vst.msk [vmem:[%s8084_s12] sm:$0xff] %vm404_vm0, %v4610_v42  ;;  %v4257_v24 = vadd.f32 %v4151_v12, %v3781_v34  ;;  %v4423_v9 = vadd.f32 %v4317_v13, %v3947_v45  ;;  %5657 = vmatmul.msk.f32.gmra.mxu0 %vm404_vm0, %v4000_v22 }
 0x494   : > { %4871 = vst.msk [vmem:[%s8090_s15] sm:$0xff] %vm4870_vm3, %v4834_v46  ;;  %5577 = vmatmul.msk.f32.gmra.mxu2 %vm404_vm0, %v3524_v30  ;;  %5617 = vmatmul.msk.f32.gmra.mxu3 %vm404_vm0, %v3524_v30  ;;  %v4320_v1 = vpop.f32.mrf.mxu1 }
 0x495   : > { %v4464_v8 = vmul.f32 %v8053_v26, %v4257_v24  ;;  %v4688_v56 = vmul.f32 %v8058_v63, %v4423_v9 }
 0x497   : > { %v4503_v44 = vadd.f32 %v8065_v41, %v4464_v8  ;;  %v4727_v42 = vadd.f32 %v8070_v20, %v4688_v56  ;;  %v3678_v12 = vpop.f32.mrf.mxu2  ;;  %v3844_v13 = vpop.f32.mrf.mxu3  ;;  %5697 = vmatmul.msk.f32.gmra.mxu1 %vm404_vm0, %v4000_v22 }
 0x498   : > { %v3782_v46 = vadd.f32 %v3678_v12, %v7648_v47  ;;  %v3948_v50 = vadd.f32 %v3844_v13, %v7650_v31  ;;  %v4157_v49 = vpop.f32.mrf.mxu0  ;;  %v4002_v13 = vld [vmem:[%s5834_s26 + $0xc6] sm:$0xff] }
 0x499   : > { %vm4539_vm4 = vcmp.ge.f32.partialorder %v4503_v44, 0.0  ;;  %v4575_v24 = vmul.f32 0.0, %v4503_v44  ;;  %vm4763_vm5 = vcmp.ge.f32.partialorder %v4727_v42, 0.0  ;;  %v4799_v9 = vmul.f32 0.1, %v4727_v42 }
 0x49a   : > { %v4258_v54 = vadd.f32 %v4154_v57, %v3782_v46  ;;  %v4424_v34 = vadd.f32 %v4320_v1, %v3948_v50 }
 0x49b   : > { %v4611_v45 = vsel %vm4539_vm4, %v4503_v44, %v4575_v24  ;;  %v4835_v30 = vsel %vm4763_vm5, %v4727_v42, %v4799_v9  ;;  %5658 = vmatmul.msk.f32.gmra.mxu0 %vm404_vm0, %v4001_v5  ;;  %v3526_v24 = vld [vmem:[%s5834_s26 + $0xc5] sm:$0xff] }
 0x49c   : > { %4647 = vst.msk [vmem:[%s8084_s12 + $0x8] sm:$0xff] %vm404_vm0, %v4611_v45  ;;  %v4465_v47 = vmul.f32 %v8053_v26, %v4258_v54  ;;  %v4689_v31 = vmul.f32 %v8058_v63, %v4424_v34  ;;  %5578 = vmatmul.msk.f32.gmra.mxu2 %vm404_vm0, %v3525_v29  ;;  %5618 = vmatmul.msk.f32.gmra.mxu3 %vm404_vm0, %v3525_v29  ;;  %v4323_v22 = vpop.f32.mrf.mxu1 }
 0x49d   : > { %4872 = vst.msk [vmem:[%s8090_s15 + $0x8] sm:$0xff] %vm4870_vm3, %v4835_v30 }
 0x49e   : > { %v4504_v1 = vadd.f32 %v8065_v41, %v4465_v47  ;;  %v4728_v57 = vadd.f32 %v8070_v20, %v4689_v31 }
 0x49f   : > { %v3681_v8 = vpop.f32.mrf.mxu2  ;;  %v3847_v56 = vpop.f32.mrf.mxu3  ;;  %5698 = vmatmul.msk.f32.gmra.mxu1 %vm404_vm0, %v4001_v5 }
 0x4a0   : > { %vm4540_vm6 = vcmp.ge.f32.partialorder %v4504_v1, 0.0  ;;  %v4576_v44 = vmul.f32 0.0, %v4504_v1  ;;  %vm4764_vm7 = vcmp.ge.f32.partialorder %v4728_v57, 0.0  ;;  %v4800_v42 = vmul.f32 0.1, %v4728_v57  ;;  %v4160_v12 = vpop.f32.mrf.mxu0 }
 0x4a1   : > { %v3783_v46 = vadd.f32 %v3681_v8, %v7659_v11  ;;  %v3949_v50 = vadd.f32 %v3847_v56, %v7661_v4 }
 0x4a2   : > { %v4612_v9 = vsel %vm4540_vm6, %v4504_v1, %v4576_v44  ;;  %v4836_v29 = vsel %vm4764_vm7, %v4728_v57, %v4800_v42  ;;  %v4003_v57 = vld [vmem:[%s5834_s26 + $0xce] sm:$0xff] }
 0x4a3   : > { %4648 = vst.msk [vmem:[%s8084_s12 + $0x10] sm:$0xff] %vm404_vm0, %v4612_v9  ;;  %v4259_v54 = vadd.f32 %v4157_v49, %v3783_v46  ;;  %v4425_v34 = vadd.f32 %v4323_v22, %v3949_v50  ;;  %5659 = vmatmul.msk.f32.gmra.mxu0 %vm404_vm0, %v4002_v13  ;;  %v3527_v44 = vld [vmem:[%s5834_s26 + $0xcd] sm:$0xff] }
 0x4a4   : > { %4873 = vst.msk [vmem:[%s8090_s15 + $0x10] sm:$0xff] %vm4870_vm3, %v4836_v29  ;;  %5579 = vmatmul.msk.f32.gmra.mxu2 %vm404_vm0, %v3526_v24  ;;  %5619 = vmatmul.msk.f32.gmra.mxu3 %vm404_vm0, %v3526_v24  ;;  %v4326_v5 = vpop.f32.mrf.mxu1 }
 0x4a5   : > { %v4466_v11 = vmul.f32 %v8053_v26, %v4259_v54  ;;  %v4690_v4 = vmul.f32 %v8058_v63, %v4425_v34 }
 0x4a7   : > { %v4505_v45 = vadd.f32 %v8065_v41, %v4466_v11  ;;  %v4729_v49 = vadd.f32 %v8070_v20, %v4690_v4  ;;  %v3684_v30 = vpop.f32.mrf.mxu2  ;;  %v3850_v47 = vpop.f32.mrf.mxu3  ;;  %5699 = vmatmul.msk.f32.gmra.mxu1 %vm404_vm0, %v4002_v13  ;;  %v4004_v4 = vld [vmem:[%s5834_s26 + $0xd6] sm:$0xff] }
 0x4a8   : > { %v3784_v31 = vadd.f32 %v3684_v30, %v7670_v28  ;;  %v3950_v22 = vadd.f32 %v3850_v47, %v7672_v39  ;;  %v4163_v1 = vpop.f32.mrf.mxu0  ;;  %v3528_v30 = vld [vmem:[%s5834_s26 + $0xd5] sm:$0xff] }
 0x4a9   : > { %vm4541_vm8 = vcmp.ge.f32.partialorder %v4505_v45, 0.0  ;;  %v4577_v8 = vmul.f32 0.0, %v4505_v45  ;;  %vm4765_vm9 = vcmp.ge.f32.partialorder %v4729_v49, 0.0  ;;  %v4801_v56 = vmul.f32 0.1, %v4729_v49 }
 0x4aa   : > { %v4260_v42 = vadd.f32 %v4160_v12, %v3784_v31  ;;  %v4426_v46 = vadd.f32 %v4326_v5, %v3950_v22 }
 0x4ab   : > { %v4613_v50 = vsel %vm4541_vm8, %v4505_v45, %v4577_v8  ;;  %v4837_v24 = vsel %vm4765_vm9, %v4729_v49, %v4801_v56  ;;  %5660 = vmatmul.msk.f32.gmra.mxu0 %vm404_vm0, %v4003_v57 }
 0x4ac   : > { %4649 = vst.msk [vmem:[%s8084_s12 + $0x18] sm:$0xff] %vm404_vm0, %v4613_v50  ;;  %v4467_v28 = vmul.f32 %v8053_v26, %v4260_v42  ;;  %v4691_v39 = vmul.f32 %v8058_v63, %v4426_v46  ;;  %5580 = vmatmul.msk.f32.gmra.mxu2 %vm404_vm0, %v3527_v44  ;;  %5620 = vmatmul.msk.f32.gmra.mxu3 %vm404_vm0, %v3527_v44  ;;  %v4329_v13 = vpop.f32.mrf.mxu1 }
 0x4ad   : > { %4874 = vst.msk [vmem:[%s8090_s15 + $0x18] sm:$0xff] %vm4870_vm3, %v4837_v24 }
 0x4ae   : > { %v4506_v12 = vadd.f32 %v8065_v41, %v4467_v28  ;;  %v4730_v9 = vadd.f32 %v8070_v20, %v4691_v39  ;;  %v4005_v28 = vld [vmem:[%s5834_s26 + $0xde] sm:$0xff] }
 0x4af   : > { %v3687_v29 = vpop.f32.mrf.mxu2  ;;  %v3853_v54 = vpop.f32.mrf.mxu3  ;;  %5700 = vmatmul.msk.f32.gmra.mxu1 %vm404_vm0, %v4003_v57 }
 0x4b0   : > { %vm4542_vm10 = vcmp.ge.f32.partialorder %v4506_v12, 0.0  ;;  %v4578_v34 = vmul.f32 0.0, %v4506_v12  ;;  %vm4766_vm11 = vcmp.ge.f32.partialorder %v4730_v9, 0.0  ;;  %v4802_v5 = vmul.f32 0.1, %v4730_v9  ;;  %v4166_v11 = vpop.f32.mrf.mxu0 }
 0x4b1   : > { %v3785_v45 = vadd.f32 %v3687_v29, %v7681_v60  ;;  %v3951_v49 = vadd.f32 %v3853_v54, %v7683_v33 }
 0x4b2   : > { %v4614_v47 = vsel %vm4542_vm10, %v4506_v12, %v4578_v34  ;;  %v4838_v31 = vsel %vm4766_vm11, %v4730_v9, %v4802_v5  ;;  %v3529_v12 = vld [vmem:[%s5834_s26 + $0xdd] sm:$0xff] }
 0x4b3   : > { %4650 = vst.msk [vmem:[%s8084_s12 + $0x20] sm:$0xff] %vm404_vm0, %v4614_v47  ;;  %v4261_v22 = vadd.f32 %v4163_v1, %v3785_v45  ;;  %v4427_v8 = vadd.f32 %v4329_v13, %v3951_v49  ;;  %5661 = vmatmul.msk.f32.gmra.mxu0 %vm404_vm0, %v4004_v4 }
 0x4b4   : > { %4875 = vst.msk [vmem:[%s8090_s15 + $0x20] sm:$0xff] %vm4870_vm3, %v4838_v31  ;;  %5581 = vmatmul.msk.f32.gmra.mxu2 %vm404_vm0, %v3528_v30  ;;  %5621 = vmatmul.msk.f32.gmra.mxu3 %vm404_vm0, %v3528_v30  ;;  %v4332_v57 = vpop.f32.mrf.mxu1 }
 0x4b5   : > { %v4468_v60 = vmul.f32 %v8053_v26, %v4261_v22  ;;  %v4692_v33 = vmul.f32 %v8058_v63, %v4427_v8  ;;  %v4006_v22 = vld [vmem:[%s5834_s26 + $0xe6] sm:$0xff] }
 0x4b7   : > { %v4507_v56 = vadd.f32 %v8065_v41, %v4468_v60  ;;  %v4731_v1 = vadd.f32 %v8070_v20, %v4692_v33  ;;  %v3690_v44 = vpop.f32.mrf.mxu2  ;;  %v3856_v42 = vpop.f32.mrf.mxu3  ;;  %5701 = vmatmul.msk.f32.gmra.mxu1 %vm404_vm0, %v4004_v4  ;;  %v3530_v60 = vld [vmem:[%s5834_s26 + $0xe5] sm:$0xff] }
 0x4b8   : > { %v3786_v46 = vadd.f32 %v3690_v44, %v7692_v51  ;;  %v3952_v50 = vadd.f32 %v3856_v42, %v7694_v36  ;;  %v4169_v24 = vpop.f32.mrf.mxu0 }
 0x4b9   : > { %vm4543_vm12 = vcmp.ge.f32.partialorder %v4507_v56, 0.0  ;;  %v4579_v39 = vmul.f32 0.0, %v4507_v56  ;;  %vm4767_vm13 = vcmp.ge.f32.partialorder %v4731_v1, 0.0  ;;  %v4803_v13 = vmul.f32 0.1, %v4731_v1 }
 0x4ba   : > { %v4262_v9 = vadd.f32 %v4166_v11, %v3786_v46  ;;  %v4428_v29 = vadd.f32 %v4332_v57, %v3952_v50 }
 0x4bb   : > { %v4615_v54 = vsel %vm4543_vm12, %v4507_v56, %v4579_v39  ;;  %v4839_v34 = vsel %vm4767_vm13, %v4731_v1, %v4803_v13  ;;  %5662 = vmatmul.msk.f32.gmra.mxu0 %vm404_vm0, %v4005_v28 }
 0x4bc   : > { %4651 = vst.msk [vmem:[%s8084_s12 + $0x28] sm:$0xff] %vm404_vm0, %v4615_v54  ;;  %v4469_v51 = vmul.f32 %v8053_v26, %v4262_v9  ;;  %v4693_v36 = vmul.f32 %v8058_v63, %v4428_v29  ;;  %5582 = vmatmul.msk.f32.gmra.mxu2 %vm404_vm0, %v3529_v12  ;;  %5622 = vmatmul.msk.f32.gmra.mxu3 %vm404_vm0, %v3529_v12  ;;  %v4335_v5 = vpop.f32.mrf.mxu1  ;;  %v4007_v9 = vld [vmem:[%s5834_s26 + $0xee] sm:$0xff] }
 0x4bd   : > { %4876 = vst.msk [vmem:[%s8090_s15 + $0x28] sm:$0xff] %vm4870_vm3, %v4839_v34  ;;  %v3531_v34 = vld [vmem:[%s5834_s26 + $0xed] sm:$0xff] }
 0x4be   : > { %v4508_v11 = vadd.f32 %v8065_v41, %v4469_v51  ;;  %v4732_v4 = vadd.f32 %v8070_v20, %v4693_v36 }
 0x4bf   : > { %v3693_v45 = vpop.f32.mrf.mxu2  ;;  %v3859_v49 = vpop.f32.mrf.mxu3  ;;  %5702 = vmatmul.msk.f32.gmra.mxu1 %vm404_vm0, %v4005_v28 }
 0x4c0   : > { %vm4544_vm14 = vcmp.ge.f32.partialorder %v4508_v11, 0.0  ;;  %v4580_v30 = vmul.f32 0.0, %v4508_v11  ;;  %vm4768_vm15 = vcmp.ge.f32.partialorder %v4732_v4, 0.0  ;;  %v4804_v47 = vmul.f32 0.1, %v4732_v4  ;;  %v4172_v31 = vpop.f32.mrf.mxu0 }
 0x4c1   : > { %v3787_v8 = vadd.f32 %v3693_v45, %v7709_v48  ;;  %v3953_v57 = vadd.f32 %v3859_v49, %v7711_v3 }
 0x4c2   : > { %v4616_v33 = vsel %vm4544_vm14, %v4508_v11, %v4580_v30  ;;  %v4840_v56 = vsel %vm4768_vm15, %v4732_v4, %v4804_v47 }
 0x4c3   : > { %4652 = vst.msk [vmem:[%s8084_s12 + $0x30] sm:$0xff] %vm404_vm0, %v4616_v33  ;;  %v4263_v1 = vadd.f32 %v4169_v24, %v3787_v8  ;;  %v4429_v44 = vadd.f32 %v4335_v5, %v3953_v57  ;;  %5663 = vmatmul.msk.f32.gmra.mxu0 %vm404_vm0, %v4006_v22  ;;  %v4008_v57 = vld [vmem:[%s5834_s26 + $0xf6] sm:$0xff] }
 0x4c4   : > { %4877 = vst.msk [vmem:[%s8090_s15 + $0x30] sm:$0xff] %vm4870_vm3, %v4840_v56  ;;  %5583 = vmatmul.msk.f32.gmra.mxu2 %vm404_vm0, %v3530_v60  ;;  %5623 = vmatmul.msk.f32.gmra.mxu3 %vm404_vm0, %v3530_v60  ;;  %v4338_v42 = vpop.f32.mrf.mxu1  ;;  %v3532_v56 = vld [vmem:[%s5834_s26 + $0xf5] sm:$0xff] }
 0x4c5   : > { %v4470_v48 = vmul.f32 %v8053_v26, %v4263_v1  ;;  %v4694_v3 = vmul.f32 %v8058_v63, %v4429_v44 }
 0x4c7   : > { %v4509_v46 = vadd.f32 %v8065_v41, %v4470_v48  ;;  %v4733_v50 = vadd.f32 %v8070_v20, %v4694_v3  ;;  %v3696_v24 = vpop.f32.mrf.mxu2  ;;  %v3862_v28 = vpop.f32.mrf.mxu3  ;;  %5703 = vmatmul.msk.f32.gmra.mxu1 %vm404_vm0, %v4006_v22 }
 0x4c8   : > { %v3788_v39 = vadd.f32 %v3696_v24, %v7726_v18  ;;  %v3954_v13 = vadd.f32 %v3862_v28, %v7728_v0  ;;  %v4175_v12 = vpop.f32.mrf.mxu0 }
 0x4c9   : > { %vm4545_vm1 = vcmp.ge.f32.partialorder %v4509_v46, 0.0  ;;  %v4581_v29 = vmul.f32 0.0, %v4509_v46  ;;  %vm4769_vm2 = vcmp.ge.f32.partialorder %v4733_v50, 0.0  ;;  %v4805_v54 = vmul.f32 0.1, %v4733_v50 }
 0x4ca   : > { %v4264_v51 = vadd.f32 %v4172_v31, %v3788_v39  ;;  %v4430_v36 = vadd.f32 %v4338_v42, %v3954_v13 }
 0x4cb   : > { %v4617_v5 = vsel %vm4545_vm1, %v4509_v46, %v4581_v29  ;;  %v4841_v11 = vsel %vm4769_vm2, %v4733_v50, %v4805_v54  ;;  %5664 = vmatmul.msk.f32.gmra.mxu0 %vm404_vm0, %v4007_v9 }
 0x4cc   : > { %4653 = vst.msk [vmem:[%s8084_s12 + $0x38] sm:$0xff] %vm404_vm0, %v4617_v5  ;;  %v4471_v18 = vmul.f32 %v8053_v26, %v4264_v51  ;;  %v4695_v0 = vmul.f32 %v8058_v63, %v4430_v36  ;;  %5584 = vmatmul.msk.f32.gmra.mxu2 %vm404_vm0, %v3531_v34  ;;  %5624 = vmatmul.msk.f32.gmra.mxu3 %vm404_vm0, %v3531_v34  ;;  %v4341_v4 = vpop.f32.mrf.mxu1  ;;  %v3533_v34 = vld [vmem:[%s5834_s26 + $0xfd] sm:$0xff] }
 0x4cd   : > { %4878 = vst.msk [vmem:[%s8090_s15 + $0x38] sm:$0xff] %vm4870_vm3, %v4841_v11 }
 0x4ce   : > { %v4510_v45 = vadd.f32 %v8065_v41, %v4471_v18  ;;  %v4734_v49 = vadd.f32 %v8070_v20, %v4695_v0 }
 0x4cf   : > { %v3699_v30 = vpop.f32.mrf.mxu2  ;;  %v3865_v47 = vpop.f32.mrf.mxu3  ;;  %5704 = vmatmul.msk.f32.gmra.mxu1 %vm404_vm0, %v4007_v9  ;;  %v4009_v9 = vld [vmem:[%s5834_s26 + $0xfe] sm:$0xff] }
 0x4d0   : > { %vm4546_vm4 = vcmp.ge.f32.partialorder %v4510_v45, 0.0  ;;  %v4582_v31 = vmul.f32 0.0, %v4510_v45  ;;  %vm4770_vm5 = vcmp.ge.f32.partialorder %v4734_v49, 0.0  ;;  %v4806_v22 = vmul.f32 0.1, %v4734_v49  ;;  %v4178_v8 = vpop.f32.mrf.mxu0 }
 0x4d1   : > { %v3789_v60 = vadd.f32 %v3699_v30, %v7737_v14  ;;  %v3955_v33 = vadd.f32 %v3865_v47, %v7739_v35 }
 0x4d2   : > { %v4618_v1 = vsel %vm4546_vm4, %v4510_v45, %v4582_v31  ;;  %v4842_v44 = vsel %vm4770_vm5, %v4734_v49, %v4806_v22  ;;  %v4010_v22 = vld [vmem:[%s5834_s26 + $0x106] sm:$0xff] }
 0x4d3   : > { %4654 = vst.msk [vmem:[%s8084_s12 + $0x40] sm:$0xff] %vm404_vm0, %v4618_v1  ;;  %v4265_v42 = vadd.f32 %v4175_v12, %v3789_v60  ;;  %v4431_v48 = vadd.f32 %v4341_v4, %v3955_v33  ;;  %5665 = vmatmul.msk.f32.gmra.mxu0 %vm404_vm0, %v4008_v57  ;;  %v3534_v60 = vld [vmem:[%s5834_s26 + $0x105] sm:$0xff] }
 0x4d4   : > { %4879 = vst.msk [vmem:[%s8090_s15 + $0x40] sm:$0xff] %vm4870_vm3, %v4842_v44  ;;  %5585 = vmatmul.msk.f32.gmra.mxu2 %vm404_vm0, %v3532_v56  ;;  %5625 = vmatmul.msk.f32.gmra.mxu3 %vm404_vm0, %v3532_v56  ;;  %v4344_v3 = vpop.f32.mrf.mxu1 }
 0x4d5   : > { %v4472_v14 = vmul.f32 %v8053_v26, %v4265_v42  ;;  %v4696_v35 = vmul.f32 %v8058_v63, %v4431_v48 }
 0x4d7   : > { %v4511_v46 = vadd.f32 %v8065_v41, %v4472_v14  ;;  %v4735_v50 = vadd.f32 %v8070_v20, %v4696_v35  ;;  %v3702_v24 = vpop.f32.mrf.mxu2  ;;  %v3868_v28 = vpop.f32.mrf.mxu3  ;;  %5705 = vmatmul.msk.f32.gmra.mxu1 %vm404_vm0, %v4008_v57 }
 0x4d8   : > { %v3790_v39 = vadd.f32 %v3702_v24, %v7748_v16  ;;  %v3956_v13 = vadd.f32 %v3868_v28, %v7750_v7  ;;  %v4181_v12 = vpop.f32.mrf.mxu0  ;;  %v4011_v28 = vld [vmem:[%s5834_s26 + $0x10e] sm:$0xff] }
 0x4d9   : > { %vm4547_vm6 = vcmp.ge.f32.partialorder %v4511_v46, 0.0  ;;  %v4583_v29 = vmul.f32 0.0, %v4511_v46  ;;  %vm4771_vm7 = vcmp.ge.f32.partialorder %v4735_v50, 0.0  ;;  %v4807_v54 = vmul.f32 0.1, %v4735_v50 }
 0x4da   : > { %v4266_v51 = vadd.f32 %v4178_v8, %v3790_v39  ;;  %v4432_v36 = vadd.f32 %v4344_v3, %v3956_v13 }
 0x4db   : > { %v4619_v5 = vsel %vm4547_vm6, %v4511_v46, %v4583_v29  ;;  %v4843_v11 = vsel %vm4771_vm7, %v4735_v50, %v4807_v54  ;;  %5666 = vmatmul.msk.f32.gmra.mxu0 %vm404_vm0, %v4009_v9 }
 0x4dc   : > { %4655 = vst.msk [vmem:[%s8084_s12 + $0x48] sm:$0xff] %vm404_vm0, %v4619_v5  ;;  %v4473_v16 = vmul.f32 %v8053_v26, %v4266_v51  ;;  %v4697_v7 = vmul.f32 %v8058_v63, %v4432_v36  ;;  %5586 = vmatmul.msk.f32.gmra.mxu2 %vm404_vm0, %v3533_v34  ;;  %5626 = vmatmul.msk.f32.gmra.mxu3 %vm404_vm0, %v3533_v34  ;;  %v4347_v18 = vpop.f32.mrf.mxu1 }
 0x4dd   : > { %4880 = vst.msk [vmem:[%s8090_s15 + $0x48] sm:$0xff] %vm4870_vm3, %v4843_v11 }
 0x4de   : > { %v4512_v0 = vadd.f32 %v8065_v41, %v4473_v16  ;;  %v4736_v4 = vadd.f32 %v8070_v20, %v4697_v7 }
 0x4df   : > { %v3705_v45 = vpop.f32.mrf.mxu2  ;;  %v3871_v49 = vpop.f32.mrf.mxu3  ;;  %5706 = vmatmul.msk.f32.gmra.mxu1 %vm404_vm0, %v4009_v9 }
 0x4e0   : > { %vm4548_vm8 = vcmp.ge.f32.partialorder %v4512_v0, 0.0  ;;  %v4584_v30 = vmul.f32 0.0, %v4512_v0  ;;  %vm4772_vm9 = vcmp.ge.f32.partialorder %v4736_v4, 0.0  ;;  %v4808_v47 = vmul.f32 0.1, %v4736_v4  ;;  %v4184_v31 = vpop.f32.mrf.mxu0 }
 0x4e1   : > { %v3791_v8 = vadd.f32 %v3705_v45, %v7759_v17  ;;  %v3957_v57 = vadd.f32 %v3871_v49, %v7761_v10 }
 0x4e2   : > { %v4620_v33 = vsel %vm4548_vm8, %v4512_v0, %v4584_v30  ;;  %v4844_v56 = vsel %vm4772_vm9, %v4736_v4, %v4808_v47  ;;  %v4012_v4 = vld [vmem:[%s5834_s26 + $0x116] sm:$0xff] }
 0x4e3   : > { %4656 = vst.msk [vmem:[%s8084_s12 + $0x50] sm:$0xff] %vm404_vm0, %v4620_v33  ;;  %v4267_v1 = vadd.f32 %v4181_v12, %v3791_v8  ;;  %v4433_v44 = vadd.f32 %v4347_v18, %v3957_v57  ;;  %5667 = vmatmul.msk.f32.gmra.mxu0 %vm404_vm0, %v4010_v22  ;;  %v3535_v12 = vld [vmem:[%s5834_s26 + $0x10d] sm:$0xff]  ;;  %v3536_v30 = vld [vmem:[%s5834_s26 + $0x115] sm:$0xff] }
 0x4e4   : > { %4881 = vst.msk [vmem:[%s8090_s15 + $0x50] sm:$0xff] %vm4870_vm3, %v4844_v56  ;;  %5587 = vmatmul.msk.f32.gmra.mxu2 %vm404_vm0, %v3534_v60  ;;  %5627 = vmatmul.msk.f32.gmra.mxu3 %vm404_vm0, %v3534_v60  ;;  %v4350_v42 = vpop.f32.mrf.mxu1 }
 0x4e5   : > { %v4474_v17 = vmul.f32 %v8053_v26, %v4267_v1  ;;  %v4698_v10 = vmul.f32 %v8058_v63, %v4433_v44 }
 0x4e7   : > { %v4513_v48 = vadd.f32 %v8065_v41, %v4474_v17  ;;  %v4737_v3 = vadd.f32 %v8070_v20, %v4698_v10  ;;  %v3708_v14 = vpop.f32.mrf.mxu2  ;;  %v3874_v35 = vpop.f32.mrf.mxu3  ;;  %5707 = vmatmul.msk.f32.gmra.mxu1 %vm404_vm0, %v4010_v22  ;;  %v4013_v10 = vld [vmem:[%s5834_s26 + $0x11e] sm:$0xff] }
 0x4e8   : > { %v3792_v46 = vadd.f32 %v3708_v14, %v7770_v37  ;;  %v3958_v50 = vadd.f32 %v3874_v35, %v7772_v2  ;;  %v4187_v24 = vpop.f32.mrf.mxu0  ;;  %v3537_v14 = vld [vmem:[%s5834_s26 + $0x11d] sm:$0xff] }
 0x4e9   : > { %vm4549_vm10 = vcmp.ge.f32.partialorder %v4513_v48, 0.0  ;;  %v4585_v39 = vmul.f32 0.0, %v4513_v48  ;;  %vm4773_vm11 = vcmp.ge.f32.partialorder %v4737_v3, 0.0  ;;  %v4809_v13 = vmul.f32 0.1, %v4737_v3 }
 0x4ea   : > { %v4268_v9 = vadd.f32 %v4184_v31, %v3792_v46  ;;  %v4434_v29 = vadd.f32 %v4350_v42, %v3958_v50 }
 0x4eb   : > { %v4621_v54 = vsel %vm4549_vm10, %v4513_v48, %v4585_v39  ;;  %v4845_v34 = vsel %vm4773_vm11, %v4737_v3, %v4809_v13  ;;  %5668 = vmatmul.msk.f32.gmra.mxu0 %vm404_vm0, %v4011_v28 }
 0x4ec   : > { %4657 = vst.msk [vmem:[%s8084_s12 + $0x58] sm:$0xff] %vm404_vm0, %v4621_v54  ;;  %v4475_v37 = vmul.f32 %v8053_v26, %v4268_v9  ;;  %v4699_v2 = vmul.f32 %v8058_v63, %v4434_v29  ;;  %5588 = vmatmul.msk.f32.gmra.mxu2 %vm404_vm0, %v3535_v12  ;;  %5628 = vmatmul.msk.f32.gmra.mxu3 %vm404_vm0, %v3535_v12  ;;  %v4353_v51 = vpop.f32.mrf.mxu1 }
 0x4ed   : > { %4882 = vst.msk [vmem:[%s8090_s15 + $0x58] sm:$0xff] %vm4870_vm3, %v4845_v34 }
 0x4ee   : > { %v4514_v36 = vadd.f32 %v8065_v41, %v4475_v37  ;;  %v4738_v5 = vadd.f32 %v8070_v20, %v4699_v2  ;;  %v4014_v37 = vld [vmem:[%s5834_s26 + $0x126] sm:$0xff] }
 0x4ef   : > { %v3711_v11 = vpop.f32.mrf.mxu2  ;;  %v3877_v16 = vpop.f32.mrf.mxu3  ;;  %5708 = vmatmul.msk.f32.gmra.mxu1 %vm404_vm0, %v4011_v28 }
 0x4f0   : > { %vm4550_vm12 = vcmp.ge.f32.partialorder %v4514_v36, 0.0  ;;  %v4586_v7 = vmul.f32 0.0, %v4514_v36  ;;  %vm4774_vm13 = vcmp.ge.f32.partialorder %v4738_v5, 0.0  ;;  %v4810_v18 = vmul.f32 0.1, %v4738_v5  ;;  %v4190_v0 = vpop.f32.mrf.mxu0 }
 0x4f1   : > { %v3793_v45 = vadd.f32 %v3711_v11, %v7781_v6  ;;  %v3959_v49 = vadd.f32 %v3877_v16, %v7783_v58 }
 0x4f2   : > { %v4622_v47 = vsel %vm4550_vm12, %v4514_v36, %v4586_v7  ;;  %v4846_v31 = vsel %vm4774_vm13, %v4738_v5, %v4810_v18  ;;  %v3538_v36 = vld [vmem:[%s5834_s26 + $0x125] sm:$0xff] }
 0x4f3   : > { %4658 = vst.msk [vmem:[%s8084_s12 + $0x60] sm:$0xff] %vm404_vm0, %v4622_v47  ;;  %v4269_v22 = vadd.f32 %v4187_v24, %v3793_v45  ;;  %v4435_v8 = vadd.f32 %v4353_v51, %v3959_v49  ;;  %5669 = vmatmul.msk.f32.gmra.mxu0 %vm404_vm0, %v4012_v4 }
 0x4f4   : > { %4883 = vst.msk [vmem:[%s8090_s15 + $0x60] sm:$0xff] %vm4870_vm3, %v4846_v31  ;;  %5589 = vmatmul.msk.f32.gmra.mxu2 %vm404_vm0, %v3536_v30  ;;  %5629 = vmatmul.msk.f32.gmra.mxu3 %vm404_vm0, %v3536_v30  ;;  %v4356_v57 = vpop.f32.mrf.mxu1 }
 0x4f5   : > { %v4476_v6 = vmul.f32 %v8053_v26, %v4269_v22  ;;  %v4700_v58 = vmul.f32 %v8058_v63, %v4435_v8  ;;  %v4015_v22 = vld [vmem:[%s5834_s26 + $0x12e] sm:$0xff] }
 0x4f7   : > { %v4515_v60 = vadd.f32 %v8065_v41, %v4476_v6  ;;  %v4739_v33 = vadd.f32 %v8070_v20, %v4700_v58  ;;  %v3714_v56 = vpop.f32.mrf.mxu2  ;;  %v3880_v1 = vpop.f32.mrf.mxu3  ;;  %5709 = vmatmul.msk.f32.gmra.mxu1 %vm404_vm0, %v4012_v4  ;;  %v3539_v6 = vld [vmem:[%s5834_s26 + $0x12d] sm:$0xff] }
 0x4f8   : > { %v3794_v44 = vadd.f32 %v3714_v56, %v7792_v19  ;;  %v3960_v42 = vadd.f32 %v3880_v1, %v7794_v59  ;;  %v4193_v17 = vpop.f32.mrf.mxu0 }
 0x4f9   : > { %vm4551_vm14 = vcmp.ge.f32.partialorder %v4515_v60, 0.0  ;;  %v4587_v48 = vmul.f32 0.0, %v4515_v60  ;;  %vm4775_vm15 = vcmp.ge.f32.partialorder %v4739_v33, 0.0  ;;  %v4811_v3 = vmul.f32 0.1, %v4739_v33 }
 0x4fa   : > { %v4270_v35 = vadd.f32 %v4190_v0, %v3794_v44  ;;  %v4436_v46 = vadd.f32 %v4356_v57, %v3960_v42 }
 0x4fb   : > { %v4623_v50 = vsel %vm4551_vm14, %v4515_v60, %v4587_v48  ;;  %v4847_v24 = vsel %vm4775_vm15, %v4739_v33, %v4811_v3  ;;  %5670 = vmatmul.msk.f32.gmra.mxu0 %vm404_vm0, %v4013_v10 }
 0x4fc   : > { %4659 = vst.msk [vmem:[%s8084_s12 + $0x68] sm:$0xff] %vm404_vm0, %v4623_v50  ;;  %v4477_v19 = vmul.f32 %v8053_v26, %v4270_v35  ;;  %v4701_v59 = vmul.f32 %v8058_v63, %v4436_v46  ;;  %5590 = vmatmul.msk.f32.gmra.mxu2 %vm404_vm0, %v3537_v14  ;;  %5630 = vmatmul.msk.f32.gmra.mxu3 %vm404_vm0, %v3537_v14  ;;  %v4359_v28 = vpop.f32.mrf.mxu1  ;;  %v4016_v35 = vld [vmem:[%s5834_s26 + $0x136] sm:$0xff] }
 0x4fd   : > { %4884 = vst.msk [vmem:[%s8090_s15 + $0x68] sm:$0xff] %vm4870_vm3, %v4847_v24  ;;  %v3540_v24 = vld [vmem:[%s5834_s26 + $0x135] sm:$0xff] }
 0x4fe   : > { %v4516_v39 = vadd.f32 %v8065_v41, %v4477_v19  ;;  %v4740_v13 = vadd.f32 %v8070_v20, %v4701_v59 }
 0x4ff   : > { %v3717_v12 = vpop.f32.mrf.mxu2  ;;  %v3883_v9 = vpop.f32.mrf.mxu3  ;;  %5710 = vmatmul.msk.f32.gmra.mxu1 %vm404_vm0, %v4013_v10 }
 0x500   : > { %vm4552_vm1 = vcmp.ge.f32.partialorder %v4516_v39, 0.0  ;;  %v4588_v29 = vmul.f32 0.0, %v4516_v39  ;;  %vm4776_vm2 = vcmp.ge.f32.partialorder %v4740_v13, 0.0  ;;  %v4812_v54 = vmul.f32 0.1, %v4740_v13  ;;  %v4196_v34 = vpop.f32.mrf.mxu0 }
 0x501   : > { %v3795_v2 = vadd.f32 %v3717_v12, %v7803_v61  ;;  %v3961_v51 = vadd.f32 %v3883_v9, %v7805_v15 }
 0x502   : > { %v4624_v5 = vsel %vm4552_vm1, %v4516_v39, %v4588_v29  ;;  %v4848_v11 = vsel %vm4776_vm2, %v4740_v13, %v4812_v54 }
 0x503   : > { %4660 = vst.msk [vmem:[%s8084_s12 + $0x70] sm:$0xff] %vm404_vm0, %v4624_v5  ;;  %v4271_v16 = vadd.f32 %v4193_v17, %v3795_v2  ;;  %v4437_v7 = vadd.f32 %v4359_v28, %v3961_v51  ;;  %5671 = vmatmul.msk.f32.gmra.mxu0 %vm404_vm0, %v4014_v37 }
 0x504   : > { %4885 = vst.msk [vmem:[%s8090_s15 + $0x70] sm:$0xff] %vm4870_vm3, %v4848_v11  ;;  %5591 = vmatmul.msk.f32.gmra.mxu2 %vm404_vm0, %v3538_v36  ;;  %5631 = vmatmul.msk.f32.gmra.mxu3 %vm404_vm0, %v3538_v36  ;;  %v4362_v18 = vpop.f32.mrf.mxu1  ;;  %v4017_v36 = vld [vmem:[%s5834_s26 + $0x13e] sm:$0xff] }
 0x505   : > { %v4478_v61 = vmul.f32 %v8053_v26, %v4271_v16  ;;  %v4702_v15 = vmul.f32 %v8058_v63, %v4437_v7  ;;  %v3541_v16 = vld [vmem:[%s5834_s26 + $0x13d] sm:$0xff] }
 0x507   : > { %v4517_v0 = vadd.f32 %v8065_v41, %v4478_v61  ;;  %v4741_v4 = vadd.f32 %v8070_v20, %v4702_v15  ;;  %v3720_v45 = vpop.f32.mrf.mxu2  ;;  %v3886_v49 = vpop.f32.mrf.mxu3  ;;  %5711 = vmatmul.msk.f32.gmra.mxu1 %vm404_vm0, %v4014_v37  ;;  %v8913_v37 = vld [vmem:[#allocation72_spill] sm:$0xff] }
 0x508   : > { %v3796_v30 = vadd.f32 %v3720_v45, %v7814_v62  ;;  %v3962_v47 = vadd.f32 %v3886_v49, %v7816_v25  ;;  %v4199_v31 = vpop.f32.mrf.mxu0 }
 0x509   : > { %vm4553_vm4 = vcmp.ge.f32.partialorder %v4517_v0, 0.0  ;;  %v4589_v8 = vmul.f32 0.0, %v4517_v0  ;;  %vm4777_vm5 = vcmp.ge.f32.partialorder %v4741_v4, 0.0  ;;  %v4813_v57 = vmul.f32 0.1, %v4741_v4 }
 0x50a   : > { %v4272_v58 = vadd.f32 %v4196_v34, %v3796_v30  ;;  %v4438_v60 = vadd.f32 %v4362_v18, %v3962_v47 }
 0x50b   : > { %v4625_v33 = vsel %vm4553_vm4, %v4517_v0, %v4589_v8  ;;  %v4849_v56 = vsel %vm4777_vm5, %v4741_v4, %v4813_v57  ;;  %5672 = vmatmul.msk.f32.gmra.mxu0 %vm404_vm0, %v4015_v22 }
 0x50c   : > { %4661 = vst.msk [vmem:[%s8084_s12 + $0x78] sm:$0xff] %vm404_vm0, %v4625_v33  ;;  %v4479_v62 = vmul.f32 %v8053_v26, %v4272_v58  ;;  %v4703_v25 = vmul.f32 %v8058_v63, %v4438_v60  ;;  %5592 = vmatmul.msk.f32.gmra.mxu2 %vm404_vm0, %v3539_v6  ;;  %5632 = vmatmul.msk.f32.gmra.mxu3 %vm404_vm0, %v3539_v6  ;;  %v4365_v1 = vpop.f32.mrf.mxu1  ;;  %v8914_v6 = vld [vmem:[#allocation45_spill] sm:$0xff] }
 0x50d   : > { %4886 = vst.msk [vmem:[%s8090_s15 + $0x78] sm:$0xff] %vm4870_vm3, %v4849_v56 }
 0x50e   : > { %v4518_v44 = vadd.f32 %v8065_v41, %v4479_v62  ;;  %v4742_v42 = vadd.f32 %v8070_v20, %v4703_v25 }
 0x50f   : > { %v3723_v17 = vpop.f32.mrf.mxu2  ;;  %v3889_v10 = vpop.f32.mrf.mxu3  ;;  %5712 = vmatmul.msk.f32.gmra.mxu1 %vm404_vm0, %v4015_v22 }
 0x510   : > { %vm4554_vm6 = vcmp.ge.f32.partialorder %v4518_v44, 0.0  ;;  %v4590_v48 = vmul.f32 0.0, %v4518_v44  ;;  %vm4778_vm7 = vcmp.ge.f32.partialorder %v4742_v42, 0.0  ;;  %v4814_v3 = vmul.f32 0.1, %v4742_v42  ;;  %v4202_v14 = vpop.f32.mrf.mxu0 }
 0x511   : > { %v3797_v46 = vadd.f32 %v3723_v17, %v7825_v52  ;;  %v3963_v50 = vadd.f32 %v3889_v10, %v7827_v40 }
 0x512   : > { %v4626_v19 = vsel %vm4554_vm6, %v4518_v44, %v4590_v48  ;;  %v4850_v59 = vsel %vm4778_vm7, %v4742_v42, %v4814_v3  ;;  %v8915_v3 = vld [vmem:[#allocation46_spill] sm:$0xff] }
 0x513   : > { %4662 = vst.msk [vmem:[%s8084_s12 + $0x80] sm:$0xff] %vm404_vm0, %v4626_v19  ;;  %v4273_v28 = vadd.f32 %v4199_v31, %v3797_v46  ;;  %v4439_v39 = vadd.f32 %v4365_v1, %v3963_v50  ;;  %5673 = vmatmul.msk.f32.gmra.mxu0 %vm404_vm0, %v4016_v35 }
 0x514   : > { %4887 = vst.msk [vmem:[%s8090_s15 + $0x80] sm:$0xff] %vm4870_vm3, %v4850_v59  ;;  %5593 = vmatmul.msk.f32.gmra.mxu2 %vm404_vm0, %v3540_v24  ;;  %5633 = vmatmul.msk.f32.gmra.mxu3 %vm404_vm0, %v3540_v24  ;;  %v4368_v13 = vpop.f32.mrf.mxu1 }
 0x515   : > { %v4480_v52 = vmul.f32 %v8053_v26, %v4273_v28  ;;  %v4704_v40 = vmul.f32 %v8058_v63, %v4439_v39  ;;  %v8410_v39 = vld [vmem:[%s8579_s3] ss:$0 sm:$0xff] }
 0x517   : > { %v4519_v12 = vadd.f32 %v8065_v41, %v4480_v52  ;;  %v4743_v9 = vadd.f32 %v8070_v20, %v4704_v40  ;;  %v3726_v29 = vpop.f32.mrf.mxu2  ;;  %v3892_v54 = vpop.f32.mrf.mxu3  ;;  %5713 = vmatmul.msk.f32.gmra.mxu1 %vm404_vm0, %v4016_v35  ;;  %v8416_v52 = vld [vmem:[%s8582_s6] ss:$0 sm:$0xff] }
 0x518   : > { %v3798_v34 = vadd.f32 %v3726_v29, %v7836_v38  ;;  %v3964_v2 = vadd.f32 %v3892_v54, %v8913_v37  ;;  %v4205_v51 = vpop.f32.mrf.mxu0 }
 0x519   : > { %vm4555_vm8 = vcmp.ge.f32.partialorder %v4519_v12, 0.0  ;;  %v4591_v5 = vmul.f32 0.0, %v4519_v12  ;;  %vm4779_vm9 = vcmp.ge.f32.partialorder %v4743_v9, 0.0  ;;  %v4815_v11 = vmul.f32 0.1, %v4743_v9 }
 0x51a   : > { %v4274_v7 = vadd.f32 %v4202_v14, %v3798_v34  ;;  %v4440_v18 = vadd.f32 %v4368_v13, %v3964_v2 }
 0x51b   : > { %v4627_v61 = vsel %vm4555_vm8, %v4519_v12, %v4591_v5  ;;  %v4851_v15 = vsel %vm4779_vm9, %v4743_v9, %v4815_v11  ;;  %5674 = vmatmul.msk.f32.gmra.mxu0 %vm404_vm0, %v4017_v36 }
 0x51c   : > { %4663 = vst.msk [vmem:[%s8084_s12 + $0x88] sm:$0xff] %vm404_vm0, %v4627_v61  ;;  %v4481_v38 = vmul.f32 %v8053_v26, %v4274_v7  ;;  %v4705_v0 = vmul.f32 %v8058_v63, %v4440_v18  ;;  %5594 = vmatmul.msk.f32.gmra.mxu2 %vm404_vm0, %v3541_v16  ;;  %5634 = vmatmul.msk.f32.gmra.mxu3 %vm404_vm0, %v3541_v16  ;;  %v4371_v4 = vpop.f32.mrf.mxu1 }
 0x51d   : > { %4888 = vst.msk [vmem:[%s8090_s15 + $0x88] sm:$0xff] %vm4870_vm3, %v4851_v15 }
 0x51e   : > { %v4520_v45 = vadd.f32 %v8065_v41, %v4481_v38  ;;  %v4744_v49 = vadd.f32 %v8070_v20, %v4705_v0  ;;  %v8916_v38 = vld [vmem:[#allocation70_spill] sm:$0xff] }
 0x51f   : > { %v3729_v30 = vpop.f32.mrf.mxu2  ;;  %v3895_v47 = vpop.f32.mrf.mxu3  ;;  %5714 = vmatmul.msk.f32.gmra.mxu1 %vm404_vm0, %v4017_v36 }
 0x520   : > { %vm4556_vm10 = vcmp.ge.f32.partialorder %v4520_v45, 0.0  ;;  %v4592_v31 = vmul.f32 0.0, %v4520_v45  ;;  %vm4780_vm11 = vcmp.ge.f32.partialorder %v4744_v49, 0.0  ;;  %v4816_v22 = vmul.f32 0.1, %v4744_v49  ;;  %v4208_v8 = vpop.f32.mrf.mxu0 }
 0x521   : > { %v3799_v57 = vadd.f32 %v3729_v30, %v7848_v55  ;;  %v3965_v58 = vadd.f32 %v3895_v47, %v8914_v6 }
 0x522   : > { %v4628_v60 = vsel %vm4556_vm10, %v4520_v45, %v4592_v31  ;;  %v4852_v33 = vsel %vm4780_vm11, %v4744_v49, %v4816_v22 }
 0x523   : > { %4664 = vst.msk [vmem:[%s8084_s12 + $0x90] sm:$0xff] %vm404_vm0, %v4628_v60  ;;  %v4275_v56 = vadd.f32 %v4205_v51, %v3799_v57  ;;  %v4441_v62 = vadd.f32 %v4371_v4, %v3965_v58  ;;  %v8917_v4 = vld [vmem:[#allocation73_spill] sm:$0xff] }
 0x524   : > { %4889 = vst.msk [vmem:[%s8090_s15 + $0x90] sm:$0xff] %vm4870_vm3, %v4852_v33  ;;  %v4374_v25 = vpop.f32.mrf.mxu1 }
 0x525   : > { %v4482_v1 = vmul.f32 %v8053_v26, %v4275_v56  ;;  %v4706_v44 = vmul.f32 %v8058_v63, %v4441_v62 }
 0x527   : > { %v4521_v42 = vadd.f32 %v8065_v41, %v4482_v1  ;;  %v4745_v55 = vadd.f32 %v8070_v20, %v4706_v44  ;;  %v3732_v17 = vpop.f32.mrf.mxu2  ;;  %v3898_v10 = vpop.f32.mrf.mxu3  ;;  %v8396_v41 = vld [vmem:[%s8578_s2] ss:$0 sm:$0xff] }
 0x528   : > { %v3800_v48 = vadd.f32 %v3732_v17, %v7860_v21  ;;  %v3966_v14 = vadd.f32 %v3898_v10, %v8915_v3  ;;  %v4211_v35 = vpop.f32.mrf.mxu0  ;;  %v8402_v20 = vld [vmem:[%s8581_s5] ss:$0 sm:$0xff]  ;;  %v8918_v17 = vld [vmem:[#allocation48_spill] sm:$0xff] }
 0x529   : > { %vm4557_vm12 = vcmp.ge.f32.partialorder %v4521_v42, 0.0  ;;  %v4593_v46 = vmul.f32 0.0, %v4521_v42  ;;  %vm4781_vm13 = vcmp.ge.f32.partialorder %v4745_v55, 0.0  ;;  %v4817_v50 = vmul.f32 0.1, %v4745_v55 }
 0x52a   : > { %v4276_v26 = vadd.f32 %v4208_v8, %v3800_v48  ;;  %v4442_v24 = vadd.f32 %v4374_v25, %v3966_v14 }
 0x52b   : > { %v4629_v63 = vsel %vm4557_vm12, %v4521_v42, %v4593_v46  ;;  %v4853_v19 = vsel %vm4781_vm13, %v4745_v55, %v4817_v50 }
 0x52c   : > { %4665 = vst.msk [vmem:[%s8084_s12 + $0x98] sm:$0xff] %vm404_vm0, %v4629_v63  ;;  %v4483_v21 = vmul.f32 %v8396_v41, %v4276_v26  ;;  %v4707_v59 = vmul.f32 %v8402_v20, %v4442_v24  ;;  %v4377_v28 = vpop.f32.mrf.mxu1 }
 0x52d   : > { %4890 = vst.msk [vmem:[%s8090_s15 + $0x98] sm:$0xff] %vm4870_vm3, %v4853_v19 }
 0x52e   : > { %v4522_v13 = vadd.f32 %v8410_v39, %v4483_v21  ;;  %v4746_v40 = vadd.f32 %v8416_v52, %v4707_v59  ;;  %v8919_v59 = vld [vmem:[#allocation49_spill] sm:$0xff] }
 0x52f   : > { %v3735_v12 = vpop.f32.mrf.mxu2  ;;  %v3901_v9 = vpop.f32.mrf.mxu3 }
 0x530   : > { %vm4558_vm14 = vcmp.ge.f32.partialorder %v4522_v13, 0.0  ;;  %v4594_v29 = vmul.f32 0.0, %v4522_v13  ;;  %vm4782_vm15 = vcmp.ge.f32.partialorder %v4746_v40, 0.0  ;;  %v4818_v54 = vmul.f32 0.1, %v4746_v40  ;;  %v4214_v34 = vpop.f32.mrf.mxu0 }
 0x531   : > { %v3801_v37 = vadd.f32 %v3735_v12, %v7872_v23  ;;  %v3967_v2 = vadd.f32 %v3901_v9, %v7874_v32 }
 0x532   : > { %v4630_v51 = vsel %vm4558_vm14, %v4522_v13, %v4594_v29  ;;  %v4854_v36 = vsel %vm4782_vm15, %v4746_v40, %v4818_v54 }
 0x533   : > { %4666 = vst.msk [vmem:[%s8084_s12 + $0xa0] sm:$0xff] %vm404_vm0, %v4630_v51  ;;  %v4277_v5 = vadd.f32 %v4211_v35, %v3801_v37  ;;  %v4443_v11 = vadd.f32 %v4377_v28, %v3967_v2 }
 0x534   : > { %4891 = vst.msk [vmem:[%s8090_s15 + $0xa0] sm:$0xff] %vm4870_vm3, %v4854_v36  ;;  %v4380_v16 = vpop.f32.mrf.mxu1 }
 0x535   : > { %v4484_v7 = vmul.f32 %v8396_v41, %v4277_v5  ;;  %v4708_v18 = vmul.f32 %v8402_v20, %v4443_v11 }
 0x537   : > { %v4523_v61 = vadd.f32 %v8410_v39, %v4484_v7  ;;  %v4747_v23 = vadd.f32 %v8416_v52, %v4708_v18  ;;  %v3738_v15 = vpop.f32.mrf.mxu2  ;;  %v3904_v32 = vpop.f32.mrf.mxu3 }
 0x538   : > { %v3802_v0 = vadd.f32 %v3738_v15, %v8916_v38  ;;  %v3968_v45 = vadd.f32 %v3904_v32, %v8917_v4  ;;  %v4217_v49 = vpop.f32.mrf.mxu0 }
 0x539   : > { %vm4559_vm1 = vcmp.ge.f32.partialorder %v4523_v61, 0.0  ;;  %v4595_v30 = vmul.f32 0.0, %v4523_v61  ;;  %vm4783_vm2 = vcmp.ge.f32.partialorder %v4747_v23, 0.0  ;;  %v4819_v47 = vmul.f32 0.1, %v4747_v23 }
 0x53a   : > { %v4278_v31 = vadd.f32 %v4214_v34, %v3802_v0  ;;  %v4444_v22 = vadd.f32 %v4380_v16, %v3968_v45 }
 0x53b   : > { %v4631_v8 = vsel %vm4559_vm1, %v4523_v61, %v4595_v30  ;;  %v4855_v57 = vsel %vm4783_vm2, %v4747_v23, %v4819_v47  ;;  %v8920_v23 = vld [vmem:[#allocation7_spill] sm:$0xff] }
 0x53c   : > { %4667 = vst.msk [vmem:[%s8084_s12 + $0xa8] sm:$0xff] %vm404_vm0, %v4631_v8  ;;  %v4485_v6 = vmul.f32 %v8396_v41, %v4278_v31  ;;  %v4709_v58 = vmul.f32 %v8402_v20, %v4444_v22  ;;  %v4383_v60 = vpop.f32.mrf.mxu1  ;;  %v8921_v8 = vld [vmem:[#allocation2_spill] sm:$0xff] }
 0x53d   : > { %4892 = vst.msk [vmem:[%s8090_s15 + $0xa8] sm:$0xff] %vm4870_vm3, %v4855_v57 }
 0x53e   : > { %v4524_v33 = vadd.f32 %v8410_v39, %v4485_v6  ;;  %v4748_v56 = vadd.f32 %v8416_v52, %v4709_v58  ;;  %v8922_v6 = vld [vmem:[#allocation5_spill] sm:$0xff] }
 0x53f   : > { %v3741_v62 = vpop.f32.mrf.mxu2  ;;  %v3907_v25 = vpop.f32.mrf.mxu3 }
 0x540   : > { %vm4560_vm4 = vcmp.ge.f32.partialorder %v4524_v33, 0.0  ;;  %v4596_v1 = vmul.f32 0.0, %v4524_v33  ;;  %vm4784_vm5 = vcmp.ge.f32.partialorder %v4748_v56, 0.0  ;;  %v4820_v44 = vmul.f32 0.1, %v4748_v56  ;;  %v4220_v42 = vpop.f32.mrf.mxu0 }
 0x541   : > { %v3803_v55 = vadd.f32 %v3741_v62, %v7896_v53  ;;  %v3969_v10 = vadd.f32 %v3907_v25, %v8918_v17 }
 0x542   : > { %v4632_v48 = vsel %vm4560_vm4, %v4524_v33, %v4596_v1  ;;  %v4856_v3 = vsel %vm4784_vm5, %v4748_v56, %v4820_v44 }
 0x543   : > { %4668 = vst.msk [vmem:[%s8084_s12 + $0xb0] sm:$0xff] %vm404_vm0, %v4632_v48  ;;  %v4279_v14 = vadd.f32 %v4217_v49, %v3803_v55  ;;  %v4445_v35 = vadd.f32 %v4383_v60, %v3969_v10 }
 0x544   : > { %4893 = vst.msk [vmem:[%s8090_s15 + $0xb0] sm:$0xff] %vm4870_vm3, %v4856_v3  ;;  %v4386_v46 = vpop.f32.mrf.mxu1 }
 0x545   : > { %v4486_v50 = vmul.f32 %v8396_v41, %v4279_v14  ;;  %v4710_v26 = vmul.f32 %v8402_v20, %v4445_v35 }
 0x547   : > { %v4525_v24 = vadd.f32 %v8410_v39, %v4486_v50  ;;  %v4749_v53 = vadd.f32 %v8416_v52, %v4710_v26  ;;  %v3744_v63 = vpop.f32.mrf.mxu2  ;;  %v3910_v19 = vpop.f32.mrf.mxu3  ;;  %v8923_v26 = vld [vmem:[#allocation51_spill] sm:$0xff] }
 0x548   : > { %v3804_v21 = vadd.f32 %v3744_v63, %v7908_v27  ;;  %v3970_v28 = vadd.f32 %v3910_v19, %v8919_v59  ;;  %v4223_v13 = vpop.f32.mrf.mxu0 }
 0x549   : > { %vm4561_vm6 = vcmp.ge.f32.partialorder %v4525_v24, 0.0  ;;  %v4597_v40 = vmul.f32 0.0, %v4525_v24  ;;  %vm4785_vm7 = vcmp.ge.f32.partialorder %v4749_v53, 0.0  ;;  %v4821_v12 = vmul.f32 0.1, %v4749_v53 }
 0x54a   : > { %v4280_v9 = vadd.f32 %v4220_v42, %v3804_v21  ;;  %v4446_v29 = vadd.f32 %v4386_v46, %v3970_v28 }
 0x54b   : > { %v4633_v54 = vsel %vm4561_vm6, %v4525_v24, %v4597_v40  ;;  %v4857_v34 = vsel %vm4785_vm7, %v4749_v53, %v4821_v12  ;;  %v8924_v53 = vld [vmem:[#allocation52_spill] sm:$0xff] }
 0x54c   : > { %4669 = vst.msk [vmem:[%s8084_s12 + $0xb8] sm:$0xff] %vm404_vm0, %v4633_v54  ;;  %v4487_v37 = vmul.f32 %v8396_v41, %v4280_v9  ;;  %v4711_v2 = vmul.f32 %v8402_v20, %v4446_v29  ;;  %v4389_v51 = vpop.f32.mrf.mxu1 }
 0x54d   : > { %4894 = vst.msk [vmem:[%s8090_s15 + $0xb8] sm:$0xff] %vm4870_vm3, %v4857_v34 }
 0x54e   : > { %v4526_v27 = vadd.f32 %v8410_v39, %v4487_v37  ;;  %v4750_v36 = vadd.f32 %v8416_v52, %v4711_v2  ;;  %v8925_v37 = vld [vmem:[#allocation9_spill] sm:$0xff] }
 0x54f   : > { %v3747_v5 = vpop.f32.mrf.mxu2  ;;  %v3913_v11 = vpop.f32.mrf.mxu3 }
 0x550   : > { %vm4562_vm8 = vcmp.ge.f32.partialorder %v4526_v27, 0.0  ;;  %v4598_v16 = vmul.f32 0.0, %v4526_v27  ;;  %vm4786_vm9 = vcmp.ge.f32.partialorder %v4750_v36, 0.0  ;;  %v4822_v7 = vmul.f32 0.1, %v4750_v36  ;;  %v4226_v18 = vpop.f32.mrf.mxu0 }
 0x551   : > { %v3805_v61 = vadd.f32 %v3747_v5, %v7920_v43  ;;  %v3971_v15 = vadd.f32 %v3913_v11, %v8920_v23 }
 0x552   : > { %v4634_v32 = vsel %vm4562_vm8, %v4526_v27, %v4598_v16  ;;  %v4858_v38 = vsel %vm4786_vm9, %v4750_v36, %v4822_v7 }
 0x553   : > { %4670 = vst.msk [vmem:[%s8084_s12 + $0xc0] sm:$0xff] %vm404_vm0, %v4634_v32  ;;  %v4281_v0 = vadd.f32 %v4223_v13, %v3805_v61  ;;  %v4447_v4 = vadd.f32 %v4389_v51, %v3971_v15  ;;  %v8926_v51 = vld [vmem:[#allocation4_spill] sm:$0xff] }
 0x554   : > { %4895 = vst.msk [vmem:[%s8090_s15 + $0xc0] sm:$0xff] %vm4870_vm3, %v4858_v38  ;;  %v4392_v45 = vpop.f32.mrf.mxu1 }
 0x555   : > { %v4488_v49 = vmul.f32 %v8396_v41, %v4281_v0  ;;  %v4712_v30 = vmul.f32 %v8402_v20, %v4447_v4 }
 0x557   : > { %v4527_v47 = vadd.f32 %v8410_v39, %v4488_v49  ;;  %v4751_v43 = vadd.f32 %v8416_v52, %v4712_v30  ;;  %v3750_v31 = vpop.f32.mrf.mxu2  ;;  %v3916_v22 = vpop.f32.mrf.mxu3 }
 0x558   : > { %v3806_v57 = vadd.f32 %v3750_v31, %v8921_v8  ;;  %v3972_v58 = vadd.f32 %v3916_v22, %v8922_v6  ;;  %v4229_v60 = vpop.f32.mrf.mxu0  ;;  %v8928_v22 = vld [vmem:[#allocation54_spill] sm:$0xff] }
 0x559   : > { %vm4563_vm10 = vcmp.ge.f32.partialorder %v4527_v47, 0.0  ;;  %v4599_v33 = vmul.f32 0.0, %v4527_v47  ;;  %vm4787_vm11 = vcmp.ge.f32.partialorder %v4751_v43, 0.0  ;;  %v4823_v56 = vmul.f32 0.1, %v4751_v43 }
 0x55a   : > { %v4282_v62 = vadd.f32 %v4226_v18, %v3806_v57  ;;  %v4448_v25 = vadd.f32 %v4392_v45, %v3972_v58 }
 0x55b   : > { %v4635_v1 = vsel %vm4563_vm10, %v4527_v47, %v4599_v33  ;;  %v4859_v44 = vsel %vm4787_vm11, %v4751_v43, %v4823_v56  ;;  %v8927_v43 = vld [vmem:[#allocation74_spill] sm:$0xff] }
 0x55c   : > { %4671 = vst.msk [vmem:[%s8084_s12 + $0xc8] sm:$0xff] %vm404_vm0, %v4635_v1  ;;  %v4489_v42 = vmul.f32 %v8396_v41, %v4282_v62  ;;  %v4713_v55 = vmul.f32 %v8402_v20, %v4448_v25  ;;  %v4395_v17 = vpop.f32.mrf.mxu1 }
 0x55d   : > { %4896 = vst.msk [vmem:[%s8090_s15 + $0xc8] sm:$0xff] %vm4870_vm3, %v4859_v44 }
 0x55e   : > { %v4528_v10 = vadd.f32 %v8410_v39, %v4489_v42  ;;  %v4752_v48 = vadd.f32 %v8416_v52, %v4713_v55  ;;  %v8929_v55 = vld [vmem:[#allocation55_spill] sm:$0xff] }
 0x55f   : > { %v3753_v3 = vpop.f32.mrf.mxu2  ;;  %v3919_v14 = vpop.f32.mrf.mxu3 }
 0x560   : > { %vm4564_vm12 = vcmp.ge.f32.partialorder %v4528_v10, 0.0  ;;  %v4600_v35 = vmul.f32 0.0, %v4528_v10  ;;  %vm4788_vm13 = vcmp.ge.f32.partialorder %v4752_v48, 0.0  ;;  %v4824_v46 = vmul.f32 0.1, %v4752_v48  ;;  %v4232_v50 = vpop.f32.mrf.mxu0 }
 0x561   : > { %v3807_v24 = vadd.f32 %v3753_v3, %v8923_v26  ;;  %v3973_v63 = vadd.f32 %v3919_v14, %v8924_v53 }
 0x562   : > { %v4636_v19 = vsel %vm4564_vm12, %v4528_v10, %v4600_v35  ;;  %v4860_v21 = vsel %vm4788_vm13, %v4752_v48, %v4824_v46  ;;  %v8930_v10 = vld [vmem:[#allocation11_spill] sm:$0xff] }
 0x563   : > { %4672 = vst.msk [vmem:[%s8084_s12 + $0xd0] sm:$0xff] %vm404_vm0, %v4636_v19  ;;  %v4283_v59 = vadd.f32 %v4229_v60, %v3807_v24  ;;  %v4449_v28 = vadd.f32 %v4395_v17, %v3973_v63 }
 0x564   : > { %4897 = vst.msk [vmem:[%s8090_s15 + $0xd0] sm:$0xff] %vm4870_vm3, %v4860_v21  ;;  %v4398_v13 = vpop.f32.mrf.mxu1 }
 0x565   : > { %v4490_v40 = vmul.f32 %v8396_v41, %v4283_v59  ;;  %v4714_v12 = vmul.f32 %v8402_v20, %v4449_v28 }
 0x567   : > { %v4529_v9 = vadd.f32 %v8410_v39, %v4490_v40  ;;  %v4753_v29 = vadd.f32 %v8416_v52, %v4714_v12  ;;  %v3756_v54 = vpop.f32.mrf.mxu2  ;;  %v3922_v34 = vpop.f32.mrf.mxu3 }
 0x568   : > { %v3808_v2 = vadd.f32 %v3756_v54, %v8925_v37  ;;  %v3974_v27 = vadd.f32 %v3922_v34, %v8926_v51  ;;  %v4235_v36 = vpop.f32.mrf.mxu0  ;;  %v8932_v54 = vld [vmem:[#allocation75_spill] sm:$0xff] }
 0x569   : > { %vm4565_vm14 = vcmp.ge.f32.partialorder %v4529_v9, 0.0  ;;  %v4601_v5 = vmul.f32 0.0, %v4529_v9  ;;  %vm4789_vm15 = vcmp.ge.f32.partialorder %v4753_v29, 0.0  ;;  %v4825_v11 = vmul.f32 0.1, %v4753_v29 }
 0x56a   : > { %v4284_v16 = vadd.f32 %v4232_v50, %v3808_v2  ;;  %v4450_v7 = vadd.f32 %v4398_v13, %v3974_v27 }
 0x56b   : > { %v4637_v18 = vsel %vm4565_vm14, %v4529_v9, %v4601_v5  ;;  %v4861_v61 = vsel %vm4789_vm15, %v4753_v29, %v4825_v11  ;;  %v8931_v9 = vld [vmem:[#allocation6_spill] sm:$0xff] }
 0x56c   : > { %4673 = vst.msk [vmem:[%s8084_s12 + $0xd8] sm:$0xff] %vm404_vm0, %v4637_v18  ;;  %v4491_v23 = vmul.f32 %v8396_v41, %v4284_v16  ;;  %v4715_v15 = vmul.f32 %v8402_v20, %v4450_v7  ;;  %v4401_v32 = vpop.f32.mrf.mxu1 }
 0x56d   : > { %4898 = vst.msk [vmem:[%s8090_s15 + $0xd8] sm:$0xff] %vm4870_vm3, %v4861_v61 }
 0x56e   : > { %v4530_v38 = vadd.f32 %v8410_v39, %v4491_v23  ;;  %v4754_v0 = vadd.f32 %v8416_v52, %v4715_v15  ;;  %v8933_v15 = vld [vmem:[#allocation57_spill] sm:$0xff] }
 0x56f   : > { %v3759_v4 = vpop.f32.mrf.mxu2  ;;  %v3925_v45 = vpop.f32.mrf.mxu3 }
 0x570   : > { %vm4566_vm1 = vcmp.ge.f32.partialorder %v4530_v38, 0.0  ;;  %v4602_v49 = vmul.f32 0.0, %v4530_v38  ;;  %vm4790_vm2 = vcmp.ge.f32.partialorder %v4754_v0, 0.0  ;;  %v4826_v30 = vmul.f32 0.1, %v4754_v0  ;;  %v4238_v47 = vpop.f32.mrf.mxu0 }
 0x571   : > { %v3809_v31 = vadd.f32 %v3759_v4, %v8927_v43  ;;  %v3975_v8 = vadd.f32 %v3925_v45, %v8928_v22 }
 0x572   : > { %v4638_v57 = vsel %vm4566_vm1, %v4530_v38, %v4602_v49  ;;  %v4862_v6 = vsel %vm4790_vm2, %v4754_v0, %v4826_v30  ;;  %v8934_v38 = vld [vmem:[#allocation58_spill] sm:$0xff] }
 0x573   : > { %4674 = vst.msk [vmem:[%s8084_s12 + $0xe0] sm:$0xff] %vm404_vm0, %v4638_v57  ;;  %v4285_v58 = vadd.f32 %v4235_v36, %v3809_v31  ;;  %v4451_v60 = vadd.f32 %v4401_v32, %v3975_v8 }
 0x574   : > { %4899 = vst.msk [vmem:[%s8090_s15 + $0xe0] sm:$0xff] %vm4870_vm3, %v4862_v6  ;;  %v4404_v33 = vpop.f32.mrf.mxu1 }
 0x575   : > { %v4492_v56 = vmul.f32 %v8396_v41, %v4285_v58  ;;  %v4716_v62 = vmul.f32 %v8402_v20, %v4451_v60 }
 0x577   : > { %v4531_v25 = vadd.f32 %v8410_v39, %v4492_v56  ;;  %v4755_v1 = vadd.f32 %v8416_v52, %v4716_v62  ;;  %v3762_v44 = vpop.f32.mrf.mxu2  ;;  %v3928_v42 = vpop.f32.mrf.mxu3 }
 0x578   : > { %v3810_v17 = vadd.f32 %v3762_v44, %v8929_v55  ;;  %v3976_v48 = vadd.f32 %v3928_v42, %v8930_v10  ;;  %v4241_v3 = vpop.f32.mrf.mxu0  ;;  %v8936_v44 = vld [vmem:[#allocation8_spill] sm:$0xff] }
 0x579   : > { %vm4567_vm4 = vcmp.ge.f32.partialorder %v4531_v25, 0.0  ;;  %v4603_v14 = vmul.f32 0.0, %v4531_v25  ;;  %vm4791_vm5 = vcmp.ge.f32.partialorder %v4755_v1, 0.0  ;;  %v4827_v35 = vmul.f32 0.1, %v4755_v1 }
 0x57a   : > { %v4286_v46 = vadd.f32 %v4238_v47, %v3810_v17  ;;  %v4452_v50 = vadd.f32 %v4404_v33, %v3976_v48 }
 0x57b   : > { %v4639_v26 = vsel %vm4567_vm4, %v4531_v25, %v4603_v14  ;;  %v4863_v24 = vsel %vm4791_vm5, %v4755_v1, %v4827_v35  ;;  %v8935_v25 = vld [vmem:[#allocation13_spill] sm:$0xff] }
 0x57c   : > { %4675 = vst.msk [vmem:[%s8084_s12 + $0xe8] sm:$0xff] %vm404_vm0, %v4639_v26  ;;  %v4493_v53 = vmul.f32 %v8396_v41, %v4286_v46  ;;  %v4717_v63 = vmul.f32 %v8402_v20, %v4452_v50  ;;  %v4407_v19 = vpop.f32.mrf.mxu1 }
 0x57d   : > { %4900 = vst.msk [vmem:[%s8090_s15 + $0xe8] sm:$0xff] %vm4870_vm3, %v4863_v24 }
 0x57e   : > { %v4532_v21 = vadd.f32 %v8410_v39, %v4493_v53  ;;  %v4756_v59 = vadd.f32 %v8416_v52, %v4717_v63  ;;  %v8937_v63 = vld [vmem:[#allocation76_spill] sm:$0xff] }
 0x57f   : > { %v3765_v28 = vpop.f32.mrf.mxu2  ;;  %v3931_v13 = vpop.f32.mrf.mxu3 }
 0x580   : > { %vm4568_vm6 = vcmp.ge.f32.partialorder %v4532_v21, 0.0  ;;  %v4604_v40 = vmul.f32 0.0, %v4532_v21  ;;  %vm4792_vm7 = vcmp.ge.f32.partialorder %v4756_v59, 0.0  ;;  %v4828_v12 = vmul.f32 0.1, %v4756_v59  ;;  %v4244_v51 = vpop.f32.mrf.mxu0 }
 0x581   : > { %v3811_v29 = vadd.f32 %v3765_v28, %v8931_v9  ;;  %v3977_v34 = vadd.f32 %v3931_v13, %v8932_v54 }
 0x582   : > { %v4640_v37 = vsel %vm4568_vm6, %v4532_v21, %v4604_v40  ;;  %v4864_v2 = vsel %vm4792_vm7, %v4756_v59, %v4828_v12  ;;  %v8938_v21 = vld [vmem:[#allocation60_spill] sm:$0xff] }
 0x583   : > { %4676 = vst.msk [vmem:[%s8084_s12 + $0xf0] sm:$0xff] %vm404_vm0, %v4640_v37  ;;  %v4287_v27 = vadd.f32 %v4241_v3, %v3811_v29  ;;  %v4453_v36 = vadd.f32 %v4407_v19, %v3977_v34 }
 0x584   : > { %4901 = vst.msk [vmem:[%s8090_s15 + $0xf0] sm:$0xff] %vm4870_vm3, %v4864_v2  ;;  %v4410_v5 = vpop.f32.mrf.mxu1 }
 0x585   : > { %v4494_v11 = vmul.f32 %v8396_v41, %v4287_v27  ;;  %v4718_v16 = vmul.f32 %v8402_v20, %v4453_v36 }
 0x587   : > { %v4533_v7 = vadd.f32 %v8410_v39, %v4494_v11  ;;  %v4757_v18 = vadd.f32 %v8416_v52, %v4718_v16  ;;  %v3768_v61 = vpop.f32.mrf.mxu2  ;;  %v3934_v23 = vpop.f32.mrf.mxu3 }
 0x588   : > { %v3812_v32 = vadd.f32 %v3768_v61, %v8933_v15  ;;  %v3978_v0 = vadd.f32 %v3934_v23, %v8934_v38  ;;  %v4247_v8 = vpop.f32.mrf.mxu0  ;;  %v8940_v61 = vld [vmem:[#allocation10_spill] sm:$0xff] }
 0x589   : > { %vm4569_vm8 = vcmp.ge.f32.partialorder %v4533_v7, 0.0  ;;  %v4605_v4 = vmul.f32 0.0, %v4533_v7  ;;  %vm4793_vm9 = vcmp.ge.f32.partialorder %v4757_v18, 0.0  ;;  %v4829_v45 = vmul.f32 0.1, %v4757_v18 }
 0x58a   : > { %v4288_v49 = vadd.f32 %v4244_v51, %v3812_v32  ;;  %v4454_v30 = vadd.f32 %v4410_v5, %v3978_v0 }
 0x58b   : > { %v4641_v47 = vsel %vm4569_vm8, %v4533_v7, %v4605_v4  ;;  %v4865_v43 = vsel %vm4793_vm9, %v4757_v18, %v4829_v45  ;;  %v8939_v7 = vld [vmem:[#allocation61_spill] sm:$0xff] }
 0x58c   : > { %4677 = vst.msk [vmem:[%s8084_s12 + $0xf8] sm:$0xff] %vm404_vm0, %v4641_v47  ;;  %v4495_v31 = vmul.f32 %v8396_v41, %v4288_v49  ;;  %v4719_v22 = vmul.f32 %v8402_v20, %v4454_v30  ;;  %v4413_v57 = vpop.f32.mrf.mxu1 }
 0x58d   : > { %4902 = vst.msk [vmem:[%s8090_s15 + $0xf8] sm:$0xff] %vm4870_vm3, %v4865_v43 }
 0x58e   : > { %v4534_v6 = vadd.f32 %v8410_v39, %v4495_v31  ;;  %v4758_v58 = vadd.f32 %v8416_v52, %v4719_v22 }
 0x58f   : > { %v3771_v60 = vpop.f32.mrf.mxu2  ;;  %v3937_v33 = vpop.f32.mrf.mxu3 }
 0x590   : > { %vm4570_vm10 = vcmp.ge.f32.partialorder %v4534_v6, 0.0  ;;  %v4606_v56 = vmul.f32 0.0, %v4534_v6  ;;  %vm4794_vm11 = vcmp.ge.f32.partialorder %v4758_v58, 0.0  ;;  %v4830_v62 = vmul.f32 0.1, %v4758_v58  ;;  %v4250_v35 = vpop.f32.mrf.mxu0 }
 0x591   : > { %v3813_v1 = vadd.f32 %v3771_v60, %v8935_v25  ;;  %v3979_v42 = vadd.f32 %v3937_v33, %v8936_v44 }
 0x592   : > { %v4642_v55 = vsel %vm4570_vm10, %v4534_v6, %v4606_v56  ;;  %v4866_v17 = vsel %vm4794_vm11, %v4758_v58, %v4830_v62 }
 0x593   : > { %4678 = vst.msk [vmem:[%s8084_s12 + $0x100] sm:$0xff] %vm404_vm0, %v4642_v55  ;;  %v4289_v10 = vadd.f32 %v4247_v8, %v3813_v1  ;;  %v4455_v48 = vadd.f32 %v4413_v57, %v3979_v42 }
 0x594   : > { %4903 = vst.msk [vmem:[%s8090_s15 + $0x100] sm:$0xff] %vm4870_vm3, %v4866_v17  ;;  %v4416_v46 = vpop.f32.mrf.mxu1 }
 0x595   : > { %v4496_v3 = vmul.f32 %v8396_v41, %v4289_v10  ;;  %v4720_v14 = vmul.f32 %v8402_v20, %v4455_v48 }
 0x597   : > { %v4535_v50 = vadd.f32 %v8410_v39, %v4496_v3  ;;  %v4759_v26 = vadd.f32 %v8416_v52, %v4720_v14  ;;  %v3774_v24 = vpop.f32.mrf.mxu2  ;;  %v3940_v53 = vpop.f32.mrf.mxu3 }
 0x598   : > { %v3814_v19 = vadd.f32 %v3774_v24, %v8937_v63  ;;  %v3980_v59 = vadd.f32 %v3940_v53, %v8938_v21  ;;  %v4253_v11 = vpop.f32.mrf.mxu0 }
 0x599   : > { %vm4571_vm12 = vcmp.ge.f32.partialorder %v4535_v50, 0.0  ;;  %v4607_v28 = vmul.f32 0.0, %v4535_v50  ;;  %vm4795_vm13 = vcmp.ge.f32.partialorder %v4759_v26, 0.0  ;;  %v4831_v13 = vmul.f32 0.1, %v4759_v26 }
 0x59a   : > { %v4290_v40 = vadd.f32 %v4250_v35, %v3814_v19  ;;  %v4456_v12 = vadd.f32 %v4416_v46, %v3980_v59 }
 0x59b   : > { %v4643_v9 = vsel %vm4571_vm12, %v4535_v50, %v4607_v28  ;;  %v4867_v29 = vsel %vm4795_vm13, %v4759_v26, %v4831_v13 }
 0x59c   : > { %4679 = vst.msk [vmem:[%s8084_s12 + $0x108] sm:$0xff] %vm404_vm0, %v4643_v9  ;;  %v4497_v54 = vmul.f32 %v8396_v41, %v4290_v40  ;;  %v4721_v34 = vmul.f32 %v8402_v20, %v4456_v12  ;;  %v4419_v16 = vpop.f32.mrf.mxu1 }
 0x59d   : > { %4904 = vst.msk [vmem:[%s8090_s15 + $0x108] sm:$0xff] %vm4870_vm3, %v4867_v29 }
 0x59e   : > { %v4536_v37 = vadd.f32 %v8410_v39, %v4497_v54  ;;  %v4760_v2 = vadd.f32 %v8416_v52, %v4721_v34 }
 0x59f   : > { %v3777_v51 = vpop.f32.mrf.mxu2  ;;  %v3943_v27 = vpop.f32.mrf.mxu3 }
 0x5a0   : > { %vm4572_vm14 = vcmp.ge.f32.partialorder %v4536_v37, 0.0  ;;  %v4608_v36 = vmul.f32 0.0, %v4536_v37  ;;  %vm4796_vm15 = vcmp.ge.f32.partialorder %v4760_v2, 0.0  ;;  %v4832_v5 = vmul.f32 0.1, %v4760_v2 }
 0x5a1   : > { %v3815_v18 = vadd.f32 %v3777_v51, %v8939_v7  ;;  %v3981_v23 = vadd.f32 %v3943_v27, %v8940_v61 }
 0x5a2   : > { %v4644_v15 = vsel %vm4572_vm14, %v4536_v37, %v4608_v36  ;;  %v4868_v32 = vsel %vm4796_vm15, %v4760_v2, %v4832_v5 }
 0x5a3   : > { %4680 = vst.msk [vmem:[%s8084_s12 + $0x110] sm:$0xff] %vm404_vm0, %v4644_v15  ;;  %v4291_v38 = vadd.f32 %v4253_v11, %v3815_v18  ;;  %v4457_v0 = vadd.f32 %v4419_v16, %v3981_v23 }
 0x5a4   : > { %4905 = vst.msk [vmem:[%s8090_s15 + $0x110] sm:$0xff] %vm4870_vm3, %v4868_v32 }
 0x5a5   : > { %v4498_v4 = vmul.f32 %v8396_v41, %v4291_v38  ;;  %v4722_v45 = vmul.f32 %v8402_v20, %v4457_v0 }
 0x5a7   : > { %v4537_v49 = vadd.f32 %v8410_v39, %v4498_v4  ;;  %v4761_v30 = vadd.f32 %v8416_v52, %v4722_v45 }
 0x5a9   : > { %vm4573_vm1 = vcmp.ge.f32.partialorder %v4537_v49, 0.0  ;;  %v4609_v47 = vmul.f32 0.0, %v4537_v49  ;;  %vm4797_vm2 = vcmp.ge.f32.partialorder %v4761_v30, 0.0  ;;  %v4833_v43 = vmul.f32 0.1, %v4761_v30 }
 0x5ab   : > { %v4645_v31 = vsel %vm4573_vm1, %v4537_v49, %v4609_v47  ;;  %v4869_v22 = vsel %vm4797_vm2, %v4761_v30, %v4833_v43 }
 0x5ac   : > { %4681 = vst.msk [vmem:[%s8084_s12 + $0x118] sm:$0xff] %vm404_vm0, %v4645_v31 }
 0x5ad   : > { %4906 = vst.msk [vmem:[%s8090_s15 + $0x118] sm:$0xff] %vm4870_vm3, %v4869_v22 }
 0x5ae PF: > { %s19_s27 = sadd.s32 1, %s5749_s27  }
 0x5af   : > { %p16_p4 = scmp.ge.s32.totalorder %s19_s27, 4  }
 0x5b1   :  { %18 = sbr.rel (!%p16_p4) target bundleno = 1 (0x1), region = 106 }

</bundles_post_ra>
